<compile_context>
chip_gen: v6e
topology: v6e:2x2x1
jax: 0.10.0
libtpu: 0.0.40
codegen_flags: <defaults>
</compile_context>

<pallas_src>
import math

import jax
import jax.numpy as jnp
from jax.experimental import pallas as pl
from jax.experimental.pallas import tpu as pltpu

W_DIM = 2
Z_DIM = 2
NUM_CLASSES = 2
X_DIM = 784
M0, S0, M1, S1 = 3.0, 1.0, 0.0, 0.1


def _round_up(n, m):
    return ((n + m - 1) // m) * m


# --- packed bias slab: every segment starts on a 128-lane boundary -----------
_BIAS_SEGS = [
    ("eb1", 256), ("eb2", 128), ("eb3", 2 * W_DIM),
    ("zb1", 256), ("zb2", 128), ("zb3", 2 * Z_DIM),
    ("db1", 128), ("db2", 256), ("db3", X_DIM),
    ("cb1", 64), ("cb2", 64), ("cb3", NUM_CLASSES),
]
_BIAS_OFF = {}
_o = 0
for _name, _w in _BIAS_SEGS:
    _BIAS_OFF[_name] = _o
    _o += _round_up(_w, 128)
BIAS_WIDTH = _o  # 2688

# --- packed small-weight slab: every segment starts on an 8-sublane boundary -
ROW_EW1Y = 0      # [1, 256]  encoderW first-layer weight row for y
ROW_DW1 = 8       # [4, 128]  decoder first layer (rows: w0, w1, z0, z1)
ROW_CW1 = 16      # [2, 64]   classifier first layer
ROW_CW2 = 24      # [64, 64]
ROW_CW3 = 88      # [64, 2]
SMALL_ROWS = 152
SMALL_COLS = 256

# lanes of the packed (BM, 128) small output
_PACK = dict(mu_w=(0, 2), ls_w=(2, 4), mu_z=(4, 6), ls_z=(6, 8),
             w=(8, 10), z=(10, 12), qy=(12, 14))
PACK_WIDTH = 128

_WEIGHT_ORDER = ["ew1x", "zw1", "ew2", "zw2", "ew3", "zw3", "dw2", "dw3",
                 "small", "bias"]


# -----------------------------------------------------------------------------
# kernel
# -----------------------------------------------------------------------------
def _csvae_kernel(x_ref, aux_ref, ew1x_ref, zw1_ref, ew2_ref, zw2_ref,
                  ew3_ref, zw3_ref, dw2_ref, dw3_ref, small_ref, bias_ref,
                  pack_out_ref, px_out_ref):
    f32 = jnp.float32

    def wmat(ref):
        # Weights may be stored bf16 in HBM; compute in f32 (exp/reparam must
        # stay f32, and v5e has no bf16 VPU/EUP).
        return ref[...].astype(f32)

    def bias(name, width):
        off = _BIAS_OFF[name]
        return bias_ref[:, off:off + width].astype(f32)   # [1, width]

    relu = lambda a: jnp.maximum(a, 0.0)
    dot = lambda a, b: jnp.dot(a, b, preferred_element_type=f32)

    x = x_ref[...].astype(f32)          # [BM, 784]
    aux = aux_ref[...].astype(f32)      # [BM, 8] = [y | eps_w | eps_z | pad]
    y_col = aux[:, 0:1]
    eps_w = aux[:, 1:1 + W_DIM]
    eps_z = aux[:, 1 + W_DIM:1 + W_DIM + Z_DIM]

    # ---- q(w | x, y): encoderW(cat(x, y)) without materializing the concat --
    ew1y = small_ref[ROW_EW1Y:ROW_EW1Y + 1, 0:256].astype(f32)   # [1, 256]
    h = relu(dot(x, wmat(ew1x_ref)) + y_col * ew1y + bias("eb1", 256))
    h = relu(dot(h, wmat(ew2_ref)) + bias("eb2", 128))
    hw = dot(h, wmat(ew3_ref)) + bias("eb3", 2 * W_DIM)          # [BM, 4]
    mu_w, ls_w = hw[:, 0:W_DIM], hw[:, W_DIM:2 * W_DIM]

    # ---- q(z | x): encoderZ(x) ----------------------------------------------
    h = relu(dot(x, wmat(zw1_ref)) + bias("zb1", 256))
    h = relu(dot(h, wmat(zw2_ref)) + bias("zb2", 128))
    hz = dot(h, wmat(zw3_ref)) + bias("zb3", 2 * Z_DIM)          # [BM, 4]
    mu_z, ls_z = hz[:, 0:Z_DIM], hz[:, Z_DIM:2 * Z_DIM]

    # ---- reparameterized samples (f32) --------------------------------------
    w = mu_w + jnp.exp(ls_w) * eps_w
    z = mu_z + jnp.exp(ls_z) * eps_z

    # ---- decoder p(x | w, z): first layer = rank-1 VPU FMAs (K=4, no MXU) ---
    dw1 = small_ref[ROW_DW1:ROW_DW1 + 4, 0:128].astype(f32)      # [4, 128]
    h = relu(w[:, 0:1] * dw1[0:1, :] + w[:, 1:2] * dw1[1:2, :]
             + z[:, 0:1] * dw1[2:3, :] + z[:, 1:2] * dw1[3:4, :]
             + bias("db1", 128))
    h = relu(dot(h, wmat(dw2_ref)) + bias("db2", 256))
    px = dot(h, wmat(dw3_ref)) + bias("db3", X_DIM)              # [BM, 784]

    # ---- classifier q(y | w): first layer = rank-1 VPU FMAs (K=2) -----------
    cw1 = small_ref[ROW_CW1:ROW_CW1 + 2, 0:64].astype(f32)       # [2, 64]
    h = relu(w[:, 0:1] * cw1[0:1, :] + w[:, 1:2] * cw1[1:2, :] + bias("cb1", 64))
    cw2 = small_ref[ROW_CW2:ROW_CW2 + 64, 0:64].astype(f32)
    h = relu(dot(h, cw2) + bias("cb2", 64))
    cw3 = small_ref[ROW_CW3:ROW_CW3 + 64, 0:NUM_CLASSES].astype(f32)
    qy = dot(h, cw3) + bias("cb3", NUM_CLASSES)                  # [BM, 2]

    # ---- lane-dense outputs: one (BM, 128) slab + one (BM, 784) block -------
    pack_out_ref[...] = jnp.zeros_like(pack_out_ref)
    pack_out_ref[:, 0:4] = hw                                    # mu_w | ls_w
    pack_out_ref[:, 4:8] = hz                                    # mu_z | ls_z
    pack_out_ref[:, 8:8 + W_DIM] = w
    pack_out_ref[:, 10:10 + Z_DIM] = z
    pack_out_ref[:, 12:12 + NUM_CLASSES] = qy
    px_out_ref[...] = px.astype(px_out_ref.dtype)


# -----------------------------------------------------------------------------
# parameters
# -----------------------------------------------------------------------------
def _init_linear(key, fan_in, fan_out):
    """PyTorch nn.Linear default init; weight stored [in, out], bias [1, out]."""
    k_w, k_b = jax.random.split(key)
    bound = 1.0 / math.sqrt(fan_in)
    w = jax.random.uniform(k_w, (fan_in, fan_out), jnp.float32, -bound, bound)
    b = jax.random.uniform(k_b, (1, fan_out), jnp.float32, -bound, bound)
    return w, b


def init_raw_params(key):
    keys = jax.random.split(key, 12)
    ew1, eb1 = _init_linear(keys[0], X_DIM + 1, 256)
    ew2, eb2 = _init_linear(keys[1], 256, 128)
    ew3, eb3 = _init_linear(keys[2], 128, 2 * W_DIM)
    zw1, zb1 = _init_linear(keys[3], X_DIM, 256)
    zw2, zb2 = _init_linear(keys[4], 256, 128)
    zw3, zb3 = _init_linear(keys[5], 128, 2 * Z_DIM)
    dw1, db1 = _init_linear(keys[6], W_DIM + Z_DIM, 128)
    dw2, db2 = _init_linear(keys[7], 128, 256)
    dw3, db3 = _init_linear(keys[8], 256, X_DIM)
    cw1, cb1 = _init_linear(keys[9], W_DIM, 64)
    cw2, cb2 = _init_linear(keys[10], 64, 64)
    cw3, cb3 = _init_linear(keys[11], 64, NUM_CLASSES)
    return dict(ew1=ew1, eb1=eb1, ew2=ew2, eb2=eb2, ew3=ew3, eb3=eb3,
                zw1=zw1, zb1=zb1, zw2=zw2, zb2=zb2, zw3=zw3, zb3=zb3,
                dw1=dw1, db1=db1, dw2=dw2, db2=db2, dw3=dw3, db3=db3,
                cw1=cw1, cb1=cb1, cw2=cw2, cb2=cb2, cw3=cw3, cb3=cb3)


def pack_params(raw, dtype=jnp.float32):
    """Pack raw (torch-layout) params into the kernel's 10 input buffers."""
    small = jnp.zeros((SMALL_ROWS, SMALL_COLS), jnp.float32)
    small = small.at[ROW_EW1Y:ROW_EW1Y + 1, 0:256].set(raw["ew1"][X_DIM:X_DIM + 1])
    small = small.at[ROW_DW1:ROW_DW1 + 4, 0:128].set(raw["dw1"])
    small = small.at[ROW_CW1:ROW_CW1 + 2, 0:64].set(raw["cw1"])
    small = small.at[ROW_CW2:ROW_CW2 + 64, 0:64].set(raw["cw2"])
    small = small.at[ROW_CW3:ROW_CW3 + 64, 0:NUM_CLASSES].set(raw["cw3"])

    bias = jnp.zeros((1, BIAS_WIDTH), jnp.float32)
    for name, width in _BIAS_SEGS:
        off = _BIAS_OFF[name]
        bias = bias.at[:, off:off + width].set(raw[name])

    packed = dict(
        ew1x=raw["ew1"][:X_DIM], zw1=raw["zw1"], ew2=raw["ew2"], zw2=raw["zw2"],
        ew3=raw["ew3"], zw3=raw["zw3"], dw2=raw["dw2"], dw3=raw["dw3"],
        small=small, bias=bias)
    return {k: v.astype(dtype) for k, v in packed.items()}


# -----------------------------------------------------------------------------
# wrapper
# -----------------------------------------------------------------------------
def csvae_forward(x, y, eps_w, eps_z, params):
    B = x.shape[0]
    f32 = jnp.float32

    # tiny per-sample side channel: [y | eps_w | eps_z | pad] -> (B, 8)
    aux = jnp.concatenate(
        [y.reshape(-1, 1).astype(f32), eps_w.astype(f32), eps_z.astype(f32),
         jnp.zeros((B, 8 - 1 - W_DIM - Z_DIM), f32)], axis=1)

    # batch grid: BM=256 fills the MXU M dim on v6e/v7x; round up to 8 rows
    # for small batches.  Weights use a constant index_map (VMEM-resident),
    # batch blocks are double-buffered, "parallel" lets v7x use both cores.
    BM = 256 if B >= 256 else _round_up(max(B, 1), 8)
    Bp = _round_up(B, BM)
    xb = x.astype(f32)
    if Bp != B:
        xb = jnp.pad(xb, ((0, Bp - B), (0, 0)))
        aux = jnp.pad(aux, ((0, Bp - B), (0, 0)))
    grid = (Bp // BM,)

    weights = [params[k] for k in _WEIGHT_ORDER]

    def data_spec(feat):
        return pl.BlockSpec((BM, feat), lambda i: (i, 0))

    def weight_spec(arr):
        return pl.BlockSpec(arr.shape, lambda i: (0, 0))

    in_specs = [data_spec(X_DIM), data_spec(8)] + [weight_spec(a) for a in weights]
    out_specs = (data_spec(PACK_WIDTH), data_spec(X_DIM))
    out_shape = (jax.ShapeDtypeStruct((Bp, PACK_WIDTH), f32),
                 jax.ShapeDtypeStruct((Bp, X_DIM), f32))

    # VMEM limit sized from the real (double-buffered) footprint + headroom.
    weight_bytes = sum(int(a.size) * a.dtype.itemsize for a in weights)
    block_bytes = BM * (X_DIM + 8 + PACK_WIDTH + X_DIM) * 4
    vmem_limit = int(2 * (weight_bytes + block_bytes) + (6 << 20))

    pack_out, px_logits = pl.pallas_call(
        _csvae_kernel,
        grid=grid,
        in_specs=in_specs,
        out_specs=out_specs,
        out_shape=out_shape,
        compiler_params=pltpu.CompilerParams(
            dimension_semantics=("parallel",),
            vmem_limit_bytes=vmem_limit),
    )(xb, aux, *weights)

    pack_out = pack_out[:B]
    px_logits = px_logits[:B]
    sl = lambda name: pack_out[:, _PACK[name][0]:_PACK[name][1]]
    mu_w, ls_w = sl("mu_w"), sl("ls_w")
    mu_z, ls_z = sl("mu_z"), sl("ls_z")
    w, z, qy_logits = sl("w"), sl("z"), sl("qy")

    # priors: constants + trivial per-label gather (host-side glue, no compute)
    ones = jnp.ones((1, W_DIM), f32)
    prior_params_w = jnp.concatenate(
        [jnp.concatenate([M0 * ones, math.log(S0) * ones], axis=1),
         jnp.concatenate([M1 * ones, math.log(S1) * ones], axis=1)], axis=0)
    pw_params = jnp.take(prior_params_w, y.astype(jnp.int32), axis=0)
    pw_mu, pw_log_sigma = pw_params[:, :W_DIM], pw_params[:, W_DIM:]
    pz_mu = jnp.zeros((B, Z_DIM), f32)
    pz_log_sigma = jnp.zeros((B, Z_DIM), f32)

    return {
        "px_logits": px_logits,                      # ContinuousBernoulli(logits=...)
        "pw": (pw_mu, pw_log_sigma),
        "pz": (pz_mu, pz_log_sigma),
        "qw": (mu_w, ls_w),
        "qz": (mu_z, ls_z),
        "w": w,
        "z": z,
        "qy_logits": qy_logits,                      # Categorical(logits=...)
    }
    # TODO(synk): torch Distribution objects (ContinuousBernoulli / Categorical /
    # Normal) have no Pallas equivalent; their parameters are returned instead.


# -----------------------------------------------------------------------------
# pure-JAX reference (mirrors the PyTorch forward, eps supplied externally)
# -----------------------------------------------------------------------------
def _reference_forward(x, y, eps_w, eps_z, p):
    relu = lambda a: jnp.maximum(a, 0.0)
    y_col = y.reshape(-1, 1).astype(jnp.float32)
    # encoderW(cat(x, y)) written as the mathematically identical split form
    h = relu(x @ p["ew1"][:X_DIM] + y_col * p["ew1"][X_DIM:X_DIM + 1] + p["eb1"])
    h = relu(h @ p["ew2"] + p["eb2"])
    hw = h @ p["ew3"] + p["eb3"]
    mu_w, ls_w = hw[:, :W_DIM], hw[:, W_DIM:]
    h = relu(x @ p["zw1"] + p["zb1"])
    h = relu(h @ p["zw2"] + p["zb2"])
    hz = h @ p["zw3"] + p["zb3"]
    mu_z, ls_z = hz[:, :Z_DIM], hz[:, Z_DIM:]
    w = mu_w + jnp.exp(ls_w) * eps_w
    z = mu_z + jnp.exp(ls_z) * eps_z
    dw1 = p["dw1"]
    h = relu(w[:, 0:1] * dw1[0:1] + w[:, 1:2] * dw1[1:2]
             + z[:, 0:1] * dw1[2:3] + z[:, 1:2] * dw1[3:4] + p["db1"])
    h = relu(h @ p["dw2"] + p["db2"])
    px = h @ p["dw3"] + p["db3"]
    cw1 = p["cw1"]
    h = relu(w[:, 0:1] * cw1[0:1] + w[:, 1:2] * cw1[1:2] + p["cb1"])
    h = relu(h @ p["cw2"] + p["cb2"])
    qy = h @ p["cw3"] + p["cb3"]
    return mu_w, ls_w, mu_z, ls_z, w, z, px, qy


if __name__ == "__main__":
    key = jax.random.PRNGKey(0)
    k_par, k_x, k_y, k_ew, k_ez = jax.random.split(key, 5)

    B = 8
    raw = init_raw_params(k_par)
    x = jax.random.uniform(k_x, (B, X_DIM), jnp.float32)        # MNIST-like pixels
    y = jax.random.randint(k_y, (B,), 0, NUM_CLASSES).astype(jnp.float32)
    eps_w = jax.random.normal(k_ew, (B, W_DIM), jnp.float32)
    eps_z = jax.random.normal(k_ez, (B, Z_DIM), jnp.float32)

    def collect(out):
        return (out["qw"][0], out["qw"][1], out["qz"][0], out["qz"][1],
                out["w"], out["z"], out["px_logits"], out["qy_logits"])

    # --- f32 weights ---------------------------------------------------------
    params_f32 = pack_params(raw, jnp.float32)
    out = csvae_forward(x, y, eps_w, eps_z, params_f32)
    jax.block_until_ready(out)
    ref = _reference_forward(x, y, eps_w, eps_z, raw)
    for g, r in zip(collect(out), ref):
        assert bool(jnp.allclose(g, r, atol=2e-4, rtol=2e-4)), "f32 mismatch"

    # --- bf16 weights (halves weight HBM traffic; compute stays f32) ---------
    params_bf16 = pack_params(raw, jnp.bfloat16)
    raw_rounded = {k: v.astype(jnp.bfloat16).astype(jnp.float32)
                   for k, v in raw.items()}
    out16 = csvae_forward(x, y, eps_w, eps_z, params_bf16)
    jax.block_until_ready(out16)
    ref16 = _reference_forward(x, y, eps_w, eps_z, raw_rounded)
    for g, r in zip(collect(out16), ref16):
        assert bool(jnp.allclose(g, r, atol=2e-3, rtol=2e-3)), "bf16 mismatch"

    print("KERNEL_OK")
</pallas_src>

<mosaic_0001>
module attributes {stable_mosaic.version = 11 : i64} {
  func.func @_csvae_kernel(%arg0: i32, %arg1: memref<8x784xf32, #tpu.memory_space<vmem>>, %arg2: memref<8x8xf32, #tpu.memory_space<vmem>>, %arg3: memref<784x256xf32, #tpu.memory_space<vmem>>, %arg4: memref<784x256xf32, #tpu.memory_space<vmem>>, %arg5: memref<256x128xf32, #tpu.memory_space<vmem>>, %arg6: memref<256x128xf32, #tpu.memory_space<vmem>>, %arg7: memref<128x4xf32, #tpu.memory_space<vmem>>, %arg8: memref<128x4xf32, #tpu.memory_space<vmem>>, %arg9: memref<128x256xf32, #tpu.memory_space<vmem>>, %arg10: memref<256x784xf32, #tpu.memory_space<vmem>>, %arg11: memref<152x256xf32, #tpu.memory_space<vmem>>, %arg12: memref<1x2688xf32, #tpu.memory_space<vmem>>, %arg13: memref<8x128xf32, #tpu.memory_space<vmem>>, %arg14: memref<8x784xf32, #tpu.memory_space<vmem>>) attributes {dimension_semantics = [#tpu.dimension_semantics<parallel>], iteration_bounds = array<i64: 1>, scalar_prefetch = 0 : i64, scratch_operands = 0 : i64, tpu.core_type = #tpu.core_type<tc>, window_params = [{transform_indices = @transform_0, window_bounds = array<i64: 8, 784>}, {transform_indices = @transform_1, window_bounds = array<i64: 8, 8>}, {pipeline_mode = #tpu.pipeline_mode<synchronous>, transform_indices = @transform_2, window_bounds = array<i64: 784, 256>}, {pipeline_mode = #tpu.pipeline_mode<synchronous>, transform_indices = @transform_3, window_bounds = array<i64: 784, 256>}, {pipeline_mode = #tpu.pipeline_mode<synchronous>, transform_indices = @transform_4, window_bounds = array<i64: 256, 128>}, {pipeline_mode = #tpu.pipeline_mode<synchronous>, transform_indices = @transform_5, window_bounds = array<i64: 256, 128>}, {pipeline_mode = #tpu.pipeline_mode<synchronous>, transform_indices = @transform_6, window_bounds = array<i64: 128, 4>}, {pipeline_mode = #tpu.pipeline_mode<synchronous>, transform_indices = @transform_7, window_bounds = array<i64: 128, 4>}, {pipeline_mode = #tpu.pipeline_mode<synchronous>, transform_indices = @transform_8, window_bounds = array<i64: 128, 256>}, {pipeline_mode = #tpu.pipeline_mode<synchronous>, transform_indices = @transform_9, window_bounds = array<i64: 256, 784>}, {pipeline_mode = #tpu.pipeline_mode<synchronous>, transform_indices = @transform_10, window_bounds = array<i64: 152, 256>}, {pipeline_mode = #tpu.pipeline_mode<synchronous>, transform_indices = @transform_11, window_bounds = array<i64: 1, 2688>}, {transform_indices = @transform_12, window_bounds = array<i64: 8, 128>}, {transform_indices = @transform_13, window_bounds = array<i64: 8, 784>}]} {
    %c0 = arith.constant 0 : index
    %c0_0 = arith.constant 0 : index
    %0 = vector.load %arg1[%c0, %c0_0] : memref<8x784xf32, #tpu.memory_space<vmem>>, vector<8x784xf32>
    %c0_1 = arith.constant 0 : index
    %c0_2 = arith.constant 0 : index
    %1 = vector.load %arg2[%c0_1, %c0_2] : memref<8x8xf32, #tpu.memory_space<vmem>>, vector<8x8xf32>
    %2 = vector.extract_strided_slice %1 {offsets = [0, 0], sizes = [8, 1], strides = [1, 1]} : vector<8x8xf32> to vector<8x1xf32>
    %3 = vector.extract_strided_slice %1 {offsets = [0, 1], sizes = [8, 2], strides = [1, 1]} : vector<8x8xf32> to vector<8x2xf32>
    %4 = vector.extract_strided_slice %1 {offsets = [0, 3], sizes = [8, 2], strides = [1, 1]} : vector<8x8xf32> to vector<8x2xf32>
    %c0_3 = arith.constant 0 : index
    %c0_4 = arith.constant 0 : index
    %5 = vector.load %arg11[%c0_3, %c0_4] : memref<152x256xf32, #tpu.memory_space<vmem>>, vector<1x256xf32>
    %c0_5 = arith.constant 0 : index
    %c0_6 = arith.constant 0 : index
    %6 = vector.load %arg3[%c0_5, %c0_6] : memref<784x256xf32, #tpu.memory_space<vmem>>, vector<784x256xf32>
    %cst = arith.constant dense<0.000000e+00> : vector<8x256xf32>
    %7 = tpu.matmul %0, %6, %cst {dimension_numbers = #tpu.dot_dimension_numbers<[1], [0], [0], [1], [0, 0, 1, 1], [], []>} : vector<8x784xf32>, vector<784x256xf32>, vector<8x256xf32> -> vector<8x256xf32>
    %8 = vector.broadcast %2 : vector<8x1xf32> to vector<8x256xf32>
    %9 = vector.broadcast %5 : vector<1x256xf32> to vector<8x256xf32>
    %10 = arith.mulf %8, %9 : vector<8x256xf32>
    %11 = arith.addf %7, %10 : vector<8x256xf32>
    %c0_7 = arith.constant 0 : index
    %c0_8 = arith.constant 0 : index
    %12 = vector.load %arg12[%c0_7, %c0_8] : memref<1x2688xf32, #tpu.memory_space<vmem>>, vector<1x256xf32>
    %13 = vector.broadcast %12 : vector<1x256xf32> to vector<8x256xf32>
    %14 = arith.addf %11, %13 : vector<8x256xf32>
    %cst_9 = arith.constant 0.000000e+00 : f32
    %15 = vector.broadcast %cst_9 : f32 to vector<8x256xf32>
    %16 = arith.maximumf %14, %15 : vector<8x256xf32>
    %c0_10 = arith.constant 0 : index
    %c0_11 = arith.constant 0 : index
    %17 = vector.load %arg5[%c0_10, %c0_11] : memref<256x128xf32, #tpu.memory_space<vmem>>, vector<256x128xf32>
    %cst_12 = arith.constant dense<0.000000e+00> : vector<8x128xf32>
    %18 = tpu.matmul %16, %17, %cst_12 {dimension_numbers = #tpu.dot_dimension_numbers<[1], [0], [0], [1], [0, 0, 1, 1], [], []>} : vector<8x256xf32>, vector<256x128xf32>, vector<8x128xf32> -> vector<8x128xf32>
    %c0_13 = arith.constant 0 : index
    %c256 = arith.constant 256 : index
    %19 = vector.load %arg12[%c0_13, %c256] : memref<1x2688xf32, #tpu.memory_space<vmem>>, vector<1x128xf32>
    %20 = vector.broadcast %19 : vector<1x128xf32> to vector<8x128xf32>
    %21 = arith.addf %18, %20 : vector<8x128xf32>
    %cst_14 = arith.constant 0.000000e+00 : f32
    %22 = vector.broadcast %cst_14 : f32 to vector<8x128xf32>
    %23 = arith.maximumf %21, %22 : vector<8x128xf32>
    %c0_15 = arith.constant 0 : index
    %c0_16 = arith.constant 0 : index
    %24 = vector.load %arg7[%c0_15, %c0_16] : memref<128x4xf32, #tpu.memory_space<vmem>>, vector<128x4xf32>
    %cst_17 = arith.constant dense<0.000000e+00> : vector<8x4xf32>
    %25 = tpu.matmul %23, %24, %cst_17 {dimension_numbers = #tpu.dot_dimension_numbers<[1], [0], [0], [1], [0, 0, 1, 1], [], []>} : vector<8x128xf32>, vector<128x4xf32>, vector<8x4xf32> -> vector<8x4xf32>
    %c0_18 = arith.constant 0 : index
    %c384 = arith.constant 384 : index
    %26 = vector.load %arg12[%c0_18, %c384] : memref<1x2688xf32, #tpu.memory_space<vmem>>, vector<1x4xf32>
    %27 = vector.broadcast %26 : vector<1x4xf32> to vector<8x4xf32>
    %28 = arith.addf %25, %27 : vector<8x4xf32>
    %29 = vector.extract_strided_slice %28 {offsets = [0, 0], sizes = [8, 2], strides = [1, 1]} : vector<8x4xf32> to vector<8x2xf32>
    %30 = vector.extract_strided_slice %28 {offsets = [0, 2], sizes = [8, 2], strides = [1, 1]} : vector<8x4xf32> to vector<8x2xf32>
    %c0_19 = arith.constant 0 : index
    %c0_20 = arith.constant 0 : index
    %31 = vector.load %arg4[%c0_19, %c0_20] : memref<784x256xf32, #tpu.memory_space<vmem>>, vector<784x256xf32>
    %cst_21 = arith.constant dense<0.000000e+00> : vector<8x256xf32>
    %32 = tpu.matmul %0, %31, %cst_21 {dimension_numbers = #tpu.dot_dimension_numbers<[1], [0], [0], [1], [0, 0, 1, 1], [], []>} : vector<8x784xf32>, vector<784x256xf32>, vector<8x256xf32> -> vector<8x256xf32>
    %c0_22 = arith.constant 0 : index
    %c512 = arith.constant 512 : index
    %33 = vector.load %arg12[%c0_22, %c512] : memref<1x2688xf32, #tpu.memory_space<vmem>>, vector<1x256xf32>
    %34 = vector.broadcast %33 : vector<1x256xf32> to vector<8x256xf32>
    %35 = arith.addf %32, %34 : vector<8x256xf32>
    %cst_23 = arith.constant 0.000000e+00 : f32
    %36 = vector.broadcast %cst_23 : f32 to vector<8x256xf32>
    %37 = arith.maximumf %35, %36 : vector<8x256xf32>
    %c0_24 = arith.constant 0 : index
    %c0_25 = arith.constant 0 : index
    %38 = vector.load %arg6[%c0_24, %c0_25] : memref<256x128xf32, #tpu.memory_space<vmem>>, vector<256x128xf32>
    %cst_26 = arith.constant dense<0.000000e+00> : vector<8x128xf32>
    %39 = tpu.matmul %37, %38, %cst_26 {dimension_numbers = #tpu.dot_dimension_numbers<[1], [0], [0], [1], [0, 0, 1, 1], [], []>} : vector<8x256xf32>, vector<256x128xf32>, vector<8x128xf32> -> vector<8x128xf32>
    %c0_27 = arith.constant 0 : index
    %c768 = arith.constant 768 : index
    %40 = vector.load %arg12[%c0_27, %c768] : memref<1x2688xf32, #tpu.memory_space<vmem>>, vector<1x128xf32>
    %41 = vector.broadcast %40 : vector<1x128xf32> to vector<8x128xf32>
    %42 = arith.addf %39, %41 : vector<8x128xf32>
    %cst_28 = arith.constant 0.000000e+00 : f32
    %43 = vector.broadcast %cst_28 : f32 to vector<8x128xf32>
    %44 = arith.maximumf %42, %43 : vector<8x128xf32>
    %c0_29 = arith.constant 0 : index
    %c0_30 = arith.constant 0 : index
    %45 = vector.load %arg8[%c0_29, %c0_30] : memref<128x4xf32, #tpu.memory_space<vmem>>, vector<128x4xf32>
    %cst_31 = arith.constant dense<0.000000e+00> : vector<8x4xf32>
    %46 = tpu.matmul %44, %45, %cst_31 {dimension_numbers = #tpu.dot_dimension_numbers<[1], [0], [0], [1], [0, 0, 1, 1], [], []>} : vector<8x128xf32>, vector<128x4xf32>, vector<8x4xf32> -> vector<8x4xf32>
    %c0_32 = arith.constant 0 : index
    %c896 = arith.constant 896 : index
    %47 = vector.load %arg12[%c0_32, %c896] : memref<1x2688xf32, #tpu.memory_space<vmem>>, vector<1x4xf32>
    %48 = vector.broadcast %47 : vector<1x4xf32> to vector<8x4xf32>
    %49 = arith.addf %46, %48 : vector<8x4xf32>
    %50 = vector.extract_strided_slice %49 {offsets = [0, 0], sizes = [8, 2], strides = [1, 1]} : vector<8x4xf32> to vector<8x2xf32>
    %51 = vector.extract_strided_slice %49 {offsets = [0, 2], sizes = [8, 2], strides = [1, 1]} : vector<8x4xf32> to vector<8x2xf32>
    %52 = math.exp %30 : vector<8x2xf32>
    %53 = arith.mulf %52, %3 : vector<8x2xf32>
    %54 = arith.addf %29, %53 : vector<8x2xf32>
    %55 = math.exp %51 : vector<8x2xf32>
    %56 = arith.mulf %55, %4 : vector<8x2xf32>
    %57 = arith.addf %50, %56 : vector<8x2xf32>
    %c8 = arith.constant 8 : index
    %c0_33 = arith.constant 0 : index
    %58 = vector.load %arg11[%c8, %c0_33] : memref<152x256xf32, #tpu.memory_space<vmem>>, vector<4x128xf32>
    %59 = vector.extract_strided_slice %54 {offsets = [0, 0], sizes = [8, 1], strides = [1, 1]} : vector<8x2xf32> to vector<8x1xf32>
    %60 = vector.extract_strided_slice %58 {offsets = [0, 0], sizes = [1, 128], strides = [1, 1]} : vector<4x128xf32> to vector<1x128xf32>
    %61 = vector.broadcast %59 : vector<8x1xf32> to vector<8x128xf32>
    %62 = vector.broadcast %60 : vector<1x128xf32> to vector<8x128xf32>
    %63 = arith.mulf %61, %62 : vector<8x128xf32>
    %64 = vector.extract_strided_slice %54 {offsets = [0, 1], sizes = [8, 1], strides = [1, 1]} : vector<8x2xf32> to vector<8x1xf32>
    %65 = vector.extract_strided_slice %58 {offsets = [1, 0], sizes = [1, 128], strides = [1, 1]} : vector<4x128xf32> to vector<1x128xf32>
    %66 = vector.broadcast %64 : vector<8x1xf32> to vector<8x128xf32>
    %67 = vector.broadcast %65 : vector<1x128xf32> to vector<8x128xf32>
    %68 = arith.mulf %66, %67 : vector<8x128xf32>
    %69 = arith.addf %63, %68 : vector<8x128xf32>
    %70 = vector.extract_strided_slice %57 {offsets = [0, 0], sizes = [8, 1], strides = [1, 1]} : vector<8x2xf32> to vector<8x1xf32>
    %71 = vector.extract_strided_slice %58 {offsets = [2, 0], sizes = [1, 128], strides = [1, 1]} : vector<4x128xf32> to vector<1x128xf32>
    %72 = vector.broadcast %70 : vector<8x1xf32> to vector<8x128xf32>
    %73 = vector.broadcast %71 : vector<1x128xf32> to vector<8x128xf32>
    %74 = arith.mulf %72, %73 : vector<8x128xf32>
    %75 = arith.addf %69, %74 : vector<8x128xf32>
    %76 = vector.extract_strided_slice %57 {offsets = [0, 1], sizes = [8, 1], strides = [1, 1]} : vector<8x2xf32> to vector<8x1xf32>
    %77 = vector.extract_strided_slice %58 {offsets = [3, 0], sizes = [1, 128], strides = [1, 1]} : vector<4x128xf32> to vector<1x128xf32>
    %78 = vector.broadcast %76 : vector<8x1xf32> to vector<8x128xf32>
    %79 = vector.broadcast %77 : vector<1x128xf32> to vector<8x128xf32>
    %80 = arith.mulf %78, %79 : vector<8x128xf32>
    %81 = arith.addf %75, %80 : vector<8x128xf32>
    %c0_34 = arith.constant 0 : index
    %c1024 = arith.constant 1024 : index
    %82 = vector.load %arg12[%c0_34, %c1024] : memref<1x2688xf32, #tpu.memory_space<vmem>>, vector<1x128xf32>
    %83 = vector.broadcast %82 : vector<1x128xf32> to vector<8x128xf32>
    %84 = arith.addf %81, %83 : vector<8x128xf32>
    %cst_35 = arith.constant 0.000000e+00 : f32
    %85 = vector.broadcast %cst_35 : f32 to vector<8x128xf32>
    %86 = arith.maximumf %84, %85 : vector<8x128xf32>
    %c0_36 = arith.constant 0 : index
    %c0_37 = arith.constant 0 : index
    %87 = vector.load %arg9[%c0_36, %c0_37] : memref<128x256xf32, #tpu.memory_space<vmem>>, vector<128x256xf32>
    %cst_38 = arith.constant dense<0.000000e+00> : vector<8x256xf32>
    %88 = tpu.matmul %86, %87, %cst_38 {dimension_numbers = #tpu.dot_dimension_numbers<[1], [0], [0], [1], [0, 0, 1, 1], [], []>} : vector<8x128xf32>, vector<128x256xf32>, vector<8x256xf32> -> vector<8x256xf32>
    %c0_39 = arith.constant 0 : index
    %c1152 = arith.constant 1152 : index
    %89 = vector.load %arg12[%c0_39, %c1152] : memref<1x2688xf32, #tpu.memory_space<vmem>>, vector<1x256xf32>
    %90 = vector.broadcast %89 : vector<1x256xf32> to vector<8x256xf32>
    %91 = arith.addf %88, %90 : vector<8x256xf32>
    %cst_40 = arith.constant 0.000000e+00 : f32
    %92 = vector.broadcast %cst_40 : f32 to vector<8x256xf32>
    %93 = arith.maximumf %91, %92 : vector<8x256xf32>
    %c0_41 = arith.constant 0 : index
    %c0_42 = arith.constant 0 : index
    %94 = vector.load %arg10[%c0_41, %c0_42] : memref<256x784xf32, #tpu.memory_space<vmem>>, vector<256x784xf32>
    %cst_43 = arith.constant dense<0.000000e+00> : vector<8x784xf32>
    %95 = tpu.matmul %93, %94, %cst_43 {dimension_numbers = #tpu.dot_dimension_numbers<[1], [0], [0], [1], [0, 0, 1, 1], [], []>} : vector<8x256xf32>, vector<256x784xf32>, vector<8x784xf32> -> vector<8x784xf32>
    %c0_44 = arith.constant 0 : index
    %c1408 = arith.constant 1408 : index
    %96 = vector.load %arg12[%c0_44, %c1408] : memref<1x2688xf32, #tpu.memory_space<vmem>>, vector<1x784xf32>
    %97 = vector.broadcast %96 : vector<1x784xf32> to vector<8x784xf32>
    %98 = arith.addf %95, %97 : vector<8x784xf32>
    %c16 = arith.constant 16 : index
    %c0_45 = arith.constant 0 : index
    %99 = vector.load %arg11[%c16, %c0_45] : memref<152x256xf32, #tpu.memory_space<vmem>>, vector<2x64xf32>
    %100 = vector.extract_strided_slice %54 {offsets = [0, 0], sizes = [8, 1], strides = [1, 1]} : vector<8x2xf32> to vector<8x1xf32>
    %101 = vector.extract_strided_slice %99 {offsets = [0, 0], sizes = [1, 64], strides = [1, 1]} : vector<2x64xf32> to vector<1x64xf32>
    %102 = vector.broadcast %100 : vector<8x1xf32> to vector<8x64xf32>
    %103 = vector.broadcast %101 : vector<1x64xf32> to vector<8x64xf32>
    %104 = arith.mulf %102, %103 : vector<8x64xf32>
    %105 = vector.extract_strided_slice %54 {offsets = [0, 1], sizes = [8, 1], strides = [1, 1]} : vector<8x2xf32> to vector<8x1xf32>
    %106 = vector.extract_strided_slice %99 {offsets = [1, 0], sizes = [1, 64], strides = [1, 1]} : vector<2x64xf32> to vector<1x64xf32>
    %107 = vector.broadcast %105 : vector<8x1xf32> to vector<8x64xf32>
    %108 = vector.broadcast %106 : vector<1x64xf32> to vector<8x64xf32>
    %109 = arith.mulf %107, %108 : vector<8x64xf32>
    %110 = arith.addf %104, %109 : vector<8x64xf32>
    %c0_46 = arith.constant 0 : index
    %c2304 = arith.constant 2304 : index
    %111 = vector.load %arg12[%c0_46, %c2304] : memref<1x2688xf32, #tpu.memory_space<vmem>>, vector<1x64xf32>
    %112 = vector.broadcast %111 : vector<1x64xf32> to vector<8x64xf32>
    %113 = arith.addf %110, %112 : vector<8x64xf32>
    %cst_47 = arith.constant 0.000000e+00 : f32
    %114 = vector.broadcast %cst_47 : f32 to vector<8x64xf32>
    %115 = arith.maximumf %113, %114 : vector<8x64xf32>
    %c24 = arith.constant 24 : index
    %c0_48 = arith.constant 0 : index
    %116 = vector.load %arg11[%c24, %c0_48] : memref<152x256xf32, #tpu.memory_space<vmem>>, vector<64x64xf32>
    %cst_49 = arith.constant dense<0.000000e+00> : vector<8x64xf32>
    %117 = tpu.matmul %115, %116, %cst_49 {dimension_numbers = #tpu.dot_dimension_numbers<[1], [0], [0], [1], [0, 0, 1, 1], [], []>} : vector<8x64xf32>, vector<64x64xf32>, vector<8x64xf32> -> vector<8x64xf32>
    %c0_50 = arith.constant 0 : index
    %c2432 = arith.constant 2432 : index
    %118 = vector.load %arg12[%c0_50, %c2432] : memref<1x2688xf32, #tpu.memory_space<vmem>>, vector<1x64xf32>
    %119 = vector.broadcast %118 : vector<1x64xf32> to vector<8x64xf32>
    %120 = arith.addf %117, %119 : vector<8x64xf32>
    %cst_51 = arith.constant 0.000000e+00 : f32
    %121 = vector.broadcast %cst_51 : f32 to vector<8x64xf32>
    %122 = arith.maximumf %120, %121 : vector<8x64xf32>
    %c88 = arith.constant 88 : index
    %c0_52 = arith.constant 0 : index
    %123 = vector.load %arg11[%c88, %c0_52] : memref<152x256xf32, #tpu.memory_space<vmem>>, vector<64x2xf32>
    %cst_53 = arith.constant dense<0.000000e+00> : vector<8x2xf32>
    %124 = tpu.matmul %122, %123, %cst_53 {dimension_numbers = #tpu.dot_dimension_numbers<[1], [0], [0], [1], [0, 0, 1, 1], [], []>} : vector<8x64xf32>, vector<64x2xf32>, vector<8x2xf32> -> vector<8x2xf32>
    %c0_54 = arith.constant 0 : index
    %c2560 = arith.constant 2560 : index
    %125 = vector.load %arg12[%c0_54, %c2560] : memref<1x2688xf32, #tpu.memory_space<vmem>>, vector<1x2xf32>
    %126 = vector.broadcast %125 : vector<1x2xf32> to vector<8x2xf32>
    %127 = arith.addf %124, %126 : vector<8x2xf32>
    %cst_55 = arith.constant 0.000000e+00 : f32
    %128 = vector.broadcast %cst_55 : f32 to vector<8x128xf32>
    %c0_56 = arith.constant 0 : index
    %c0_57 = arith.constant 0 : index
    %129 = vector.load %arg13[%c0_56, %c0_57] : memref<8x128xf32, #tpu.memory_space<vmem>>, vector<8x128xf32>
    tpu.vector_store %arg13[%c0_56, %c0_57], %128 {strides = array<i32>} : memref<8x128xf32, #tpu.memory_space<vmem>>, vector<8x128xf32>,
    %c0_58 = arith.constant 0 : index
    %c0_59 = arith.constant 0 : index
    %130 = vector.load %arg13[%c0_58, %c0_59] : memref<8x128xf32, #tpu.memory_space<vmem>>, vector<8x4xf32>
    tpu.vector_store %arg13[%c0_58, %c0_59], %28 {strides = array<i32>} : memref<8x128xf32, #tpu.memory_space<vmem>>, vector<8x4xf32>,
    %c0_60 = arith.constant 0 : index
    %c4 = arith.constant 4 : index
    %131 = vector.load %arg13[%c0_60, %c4] : memref<8x128xf32, #tpu.memory_space<vmem>>, vector<8x4xf32>
    tpu.vector_store %arg13[%c0_60, %c4], %49 {strides = array<i32>} : memref<8x128xf32, #tpu.memory_space<vmem>>, vector<8x4xf32>,
    %c0_61 = arith.constant 0 : index
    %c8_62 = arith.constant 8 : index
    %132 = vector.load %arg13[%c0_61, %c8_62] : memref<8x128xf32, #tpu.memory_space<vmem>>, vector<8x2xf32>
    tpu.vector_store %arg13[%c0_61, %c8_62], %54 {strides = array<i32>} : memref<8x128xf32, #tpu.memory_space<vmem>>, vector<8x2xf32>,
    %c0_63 = arith.constant 0 : index
    %c10 = arith.constant 10 : index
    %133 = vector.load %arg13[%c0_63, %c10] : memref<8x128xf32, #tpu.memory_space<vmem>>, vector<8x2xf32>
    tpu.vector_store %arg13[%c0_63, %c10], %57 {strides = array<i32>} : memref<8x128xf32, #tpu.memory_space<vmem>>, vector<8x2xf32>,
    %c0_64 = arith.constant 0 : index
    %c12 = arith.constant 12 : index
    %134 = vector.load %arg13[%c0_64, %c12] : memref<8x128xf32, #tpu.memory_space<vmem>>, vector<8x2xf32>
    tpu.vector_store %arg13[%c0_64, %c12], %127 {strides = array<i32>} : memref<8x128xf32, #tpu.memory_space<vmem>>, vector<8x2xf32>,
    %c0_65 = arith.constant 0 : index
    %c0_66 = arith.constant 0 : index
    %135 = vector.load %arg14[%c0_65, %c0_66] : memref<8x784xf32, #tpu.memory_space<vmem>>, vector<8x784xf32>
    tpu.vector_store %arg14[%c0_65, %c0_66], %98 {strides = array<i32>} : memref<8x784xf32, #tpu.memory_space<vmem>>, vector<8x784xf32>,
    return
  }
  func.func @transform_0(%arg0: i32) -> (i32, i32) {
    %c0_i32 = arith.constant 0 : i32
    %c0_i32_0 = arith.constant 0 : i32
    return %arg0, %c0_i32 : i32, i32
  }
  func.func @transform_1(%arg0: i32) -> (i32, i32) {
    %c0_i32 = arith.constant 0 : i32
    %c0_i32_0 = arith.constant 0 : i32
    return %arg0, %c0_i32 : i32, i32
  }
  func.func @transform_2(%arg0: i32) -> (i32, i32) {
    %c0_i32 = arith.constant 0 : i32
    %c0_i32_0 = arith.constant 0 : i32
    %c0_i32_1 = arith.constant 0 : i32
    return %c0_i32, %c0_i32_0 : i32, i32
  }
  func.func @transform_3(%arg0: i32) -> (i32, i32) {
    %c0_i32 = arith.constant 0 : i32
    %c0_i32_0 = arith.constant 0 : i32
    %c0_i32_1 = arith.constant 0 : i32
    return %c0_i32, %c0_i32_0 : i32, i32
  }
  func.func @transform_4(%arg0: i32) -> (i32, i32) {
    %c0_i32 = arith.constant 0 : i32
    %c0_i32_0 = arith.constant 0 : i32
    %c0_i32_1 = arith.constant 0 : i32
    return %c0_i32, %c0_i32_0 : i32, i32
  }
  func.func @transform_5(%arg0: i32) -> (i32, i32) {
    %c0_i32 = arith.constant 0 : i32
    %c0_i32_0 = arith.constant 0 : i32
    %c0_i32_1 = arith.constant 0 : i32
    return %c0_i32, %c0_i32_0 : i32, i32
  }
  func.func @transform_6(%arg0: i32) -> (i32, i32) {
    %c0_i32 = arith.constant 0 : i32
    %c0_i32_0 = arith.constant 0 : i32
    %c0_i32_1 = arith.constant 0 : i32
    return %c0_i32, %c0_i32_0 : i32, i32
  }
  func.func @transform_7(%arg0: i32) -> (i32, i32) {
    %c0_i32 = arith.constant 0 : i32
    %c0_i32_0 = arith.constant 0 : i32
    %c0_i32_1 = arith.constant 0 : i32
    return %c0_i32, %c0_i32_0 : i32, i32
  }
  func.func @transform_8(%arg0: i32) -> (i32, i32) {
    %c0_i32 = arith.constant 0 : i32
    %c0_i32_0 = arith.constant 0 : i32
    %c0_i32_1 = arith.constant 0 : i32
    return %c0_i32, %c0_i32_0 : i32, i32
  }
  func.func @transform_9(%arg0: i32) -> (i32, i32) {
    %c0_i32 = arith.constant 0 : i32
    %c0_i32_0 = arith.constant 0 : i32
    %c0_i32_1 = arith.constant 0 : i32
    return %c0_i32, %c0_i32_0 : i32, i32
  }
  func.func @transform_10(%arg0: i32) -> (i32, i32) {
    %c0_i32 = arith.constant 0 : i32
    %c0_i32_0 = arith.constant 0 : i32
    %c0_i32_1 = arith.constant 0 : i32
    return %c0_i32, %c0_i32_0 : i32, i32
  }
  func.func @transform_11(%arg0: i32) -> (i32, i32) {
    %c0_i32 = arith.constant 0 : i32
    %c0_i32_0 = arith.constant 0 : i32
    %c0_i32_1 = arith.constant 0 : i32
    return %c0_i32, %c0_i32_0 : i32, i32
  }
  func.func @transform_12(%arg0: i32) -> (i32, i32) {
    %c0_i32 = arith.constant 0 : i32
    %c0_i32_0 = arith.constant 0 : i32
    return %arg0, %c0_i32 : i32, i32
  }
  func.func @transform_13(%arg0: i32) -> (i32, i32) {
    %c0_i32 = arith.constant 0 : i32
    %c0_i32_0 = arith.constant 0 : i32
    return %arg0, %c0_i32 : i32, i32
  }
}

</mosaic_0001>

<bundles_post_ra>
// kernel: tpu_custom_call.1
= control target key start
LH: loop header
LB: loop body
LE: loop exit
PB: predicated region body
PF: predicated region fallthrough
CT: control target
= control target key end

     0   :  { %19 = vsyncpa [#allocation3], 0  ;;  %s5255_s0 = inlined_call_operand.vmem [shape: f32[8,784], index: 0, kind: input, shape index: {}]   ;;  %s5256_s1 = inlined_call_operand.vmem [shape: f32[8,8], index: 1, kind: input, shape index: {}]   ;;  %s5257_s2 = inlined_call_operand.vmem [shape: f32[784,256], index: 2, kind: input, shape index: {}]   ;;  %s5258_s3 = inlined_call_operand.vmem [shape: f32[784,256], index: 3, kind: input, shape index: {}]   ;;  %s5259_s4 = inlined_call_operand.hbm [shape: f32[256,128], index: 4, kind: input, shape index: {}]   ;;  %s5260_s5 = inlined_call_operand.hbm [shape: f32[256,128], index: 5, kind: input, shape index: {}]   ;;  %s5261_s6 = inlined_call_operand.vmem [shape: f32[128,4], index: 6, kind: input, shape index: {}]   ;;  %s5262_s7 = inlined_call_operand.vmem [shape: f32[128,4], index: 7, kind: input, shape index: {}]   ;;  %s5263_s8 = inlined_call_operand.hbm [shape: f32[128,256], index: 8, kind: input, shape index: {}]   ;;  %s5264_s9 = inlined_call_operand.vmem [shape: f32[256,784], index: 9, kind: input, shape index: {}]   ;;  %s5265_s10 = inlined_call_operand.vmem [shape: f32[152,256], index: 10, kind: input, shape index: {}]   ;;  %s5266_s11 = inlined_call_operand.vmem [shape: f32[1,2688], index: 11, kind: input, shape index: {}]   ;;  %s5267_s12 = inlined_call_operand.hbm [shape: f32[8,128], index: 12, kind: output, shape index: {0}]   ;;  %s5268_s13 = inlined_call_operand.hbm [shape: f32[8,784], index: 13, kind: output, shape index: {1}]  }
   0x1   :  { %20 = vsyncpa [#allocation6], 0 }
   0x2   :  { %21 = vsyncpa [#allocation4], 0 }
   0x3   :  { %22 = vsyncpa [#allocation10], 0  ;;  %s2925_s25 = smov [#allocation5]   ;;  %s2926_s27 = smov [#allocation2]  }
   0x4   :  { %s48_s26 = sshll.u32 %s2925_s25, 4  ;;  %s36_s28 = sshll.u32 %s2926_s27, 4  ;;  %s49_s26 = int_to_ptr.vmem [resolvable:$true] %s48_s26  ;;  %s37_s28 = int_to_ptr.vmem [resolvable:$true] %s36_s28 }
   0x5   :  { %s2825_s29 = scalar_lea.vmem %s49_s26, 4096  ;;  %p2830_p1 = scmp.lt.s32.totalorder %s49_s26, %s49_s26 }
   0x6   :  { %p2826_p0 = scmp.ne.s32.totalorder %s49_s26, %s2825_s29  ;;  %p2831_p2 = scmp.lt.s32.totalorder %s2825_s29, %s2825_s29 }
   0x8   :  { %p2832_p3 = por %p2831_p2, %p2830_p1 }
   0xa   :  { %p2833_p4 = pnand %p2832_p3, %p2826_p0 }
   0xc   :  { %2836 = shalt.err (!%p2833_p4)
}
   0xd   :  { %s2927_s30 = smov 128   ;;  %s2928_s14 = smov 8  }
   0xe   :  { %54 = dma.hbm_to_vmem [thread:$0]  %s5260_s5, 4096, %s49_s26, [#allocation6], %s2927_s30, %s2927_s30, %s2928_s14  }
   0xf   :  { %s2845_s17 = scalar_lea.vmem %s37_s28, 4096  ;;  %p2850_p6 = scmp.lt.s32.totalorder %s37_s28, %s37_s28 }
  0x10   :  { %p2846_p5 = scmp.ne.s32.totalorder %s37_s28, %s2845_s17  ;;  %p2851_p7 = scmp.lt.s32.totalorder %s2845_s17, %s2845_s17 }
  0x12   :  { %p2852_p8 = por %p2851_p7, %p2850_p6 }
  0x14   :  { %p2853_p9 = pnand %p2852_p8, %p2846_p5 }
  0x16   :  { %2856 = shalt.err (!%p2853_p9)
}
  0x17   :  { %42 = dma.hbm_to_vmem [thread:$0]  %s5259_s4, 4096, %s37_s28, [#allocation3], %s2927_s30, %s2927_s30, %s2928_s14  }
  0x18   :  { %s2929_s20 = smov [#allocation7]  }
  0x19   :  { %s64_s21 = sshll.u32 %s2929_s20, 4  ;;  %s65_s21 = int_to_ptr.vmem [resolvable:$true] %s64_s21 }
  0x1a   :  { %s2865_s22 = scalar_lea.vmem %s65_s21, 4096  ;;  %p2870_p11 = scmp.lt.s32.totalorder %s65_s21, %s65_s21 }
  0x1b   :  { %p2866_p10 = scmp.ne.s32.totalorder %s65_s21, %s2865_s22  ;;  %p2871_p12 = scmp.lt.s32.totalorder %s2865_s22, %s2865_s22 }
  0x1d   :  { %p2872_p13 = por %p2871_p12, %p2870_p11 }
  0x1f   :  { %p2873_p0 = pnand %p2872_p13, %p2866_p10 }
  0x21   :  { %2876 = shalt.err (!%p2873_p0)
}
  0x22   :  { %s2930_s5 = smov 256   ;;  %s2931_s23 = smov 16  }
  0x23   :  { %70 = dma.hbm_to_vmem [thread:$0]  %s5263_s8, 4096, %s65_s21, [#allocation6], %s2930_s5, %s2930_s5, %s2931_s23  }
  0x24   :  { %2917 = dma.done.wait [#allocation3], 4096  }
  0x25   :  { %2918 = vsyncadd [#allocation3], 4294963200 }
  0x26   :  { %2919 = dma.done.wait [#allocation6], 8192  }
  0x27   :  { %2920 = vsyncadd [#allocation6], 4294959104  ;;  %v126_v0 = vld [vmem:[%s5257_s2 + $0xf8] sm:$0xff]  ;;  %v125_v1 = vld [vmem:[%s5257_s2 + $0xf0] sm:$0xff]  ;;  %v2932_v15 = vmov 0.0   ;;  %vm309_vm0 = vcmask 130048  }
  0x28   :  { %v124_v2 = vld [vmem:[%s5257_s2 + $0xe8] sm:$0xff]  ;;  %313 = vmatprep.subr.mxu0 %v126_v0  ;;  %v190_v3 = vld [vmem:[%s5257_s2 + $0x2f8] sm:$0xff]  ;;  %v123_v4 = vld [vmem:[%s5257_s2 + $0xe0] sm:$0xff]  ;;  %2446 = vst [vmem:[#allocation8] sm:$0xff] %v2932_v15  ;;  %vm2934_vm1 = vmmov 0   ;;  %s2935_s24 = smov 1  }
  0x29   :  { %v189_v5 = vld [vmem:[%s5257_s2 + $0x2f0] sm:$0xff]  ;;  %314 = vmatpush1.msra.mxu0 %v125_v1  ;;  %384 = vmatprep.subr.mxu1 %v190_v3  ;;  %v122_v6 = vld [vmem:[%s5257_s2 + $0xd8] sm:$0xff]  ;;  %v188_v7 = vld [vmem:[%s5257_s2 + $0x2e8] sm:$0xff]  ;;  %s2936_s8 = smov 127   ;;  %vm2447_vm2 = vcmask 31744   ;;  %vm2453_vm3 = vcmask 64544  }
  0x2a   :  { %315 = vmatprep.subr.mxu0 %v124_v2  ;;  %385 = vmatpush1.msra.mxu1 %v189_v5  ;;  %v121_v8 = vld [vmem:[%s5257_s2 + $0xd0] sm:$0xff]  ;;  %v187_v9 = vld [vmem:[%s5257_s2 + $0x2e0] sm:$0xff]  ;;  %v186_v10 = vld [vmem:[%s5257_s2 + $0x2d8] sm:$0xff]  ;;  %vm2458_vm4 = vcmask 80960   ;;  %vm2463_vm5 = vcmask 97360   ;;  %vm2283_vm6 = vcmask 523264  }
  0x2b   :  { %316 = vmatpush1.msra.mxu0 %v123_v4  ;;  %386 = vmatprep.subr.mxu1 %v188_v7  ;;  %v120_v11 = vld [vmem:[%s5257_s2 + $0xc8] sm:$0xff]  ;;  %v185_v12 = vld [vmem:[%s5257_s2 + $0x2d0] sm:$0xff]  ;;  %v119_v13 = vld [vmem:[%s5257_s2 + $0xc0] sm:$0xff] }
  0x2c   :  { %317 = vmatprep.subr.mxu0 %v122_v6  ;;  %387 = vmatpush1.msra.mxu1 %v187_v9  ;;  %v184_v14 = vld [vmem:[%s5257_s2 + $0x2c8] sm:$0xff]  ;;  %v118_v16 = vld [vmem:[%s5257_s2 + $0xb8] sm:$0xff]  ;;  %v183_v17 = vld [vmem:[%s5257_s2 + $0x2c0] sm:$0xff] }
  0x2d   :  { %318 = vmatpush1.msra.mxu0 %v121_v8  ;;  %388 = vmatprep.subr.mxu1 %v186_v10  ;;  %v117_v18 = vld [vmem:[%s5257_s2 + $0xb0] sm:$0xff]  ;;  %v182_v19 = vld [vmem:[%s5257_s2 + $0x2b8] sm:$0xff]  ;;  %v116_v20 = vld [vmem:[%s5257_s2 + $0xa8] sm:$0xff] }
  0x2e   :  { %319 = vmatprep.subr.mxu0 %v120_v11  ;;  %389 = vmatpush1.msra.mxu1 %v185_v12  ;;  %v181_v21 = vld [vmem:[%s5257_s2 + $0x2b0] sm:$0xff]  ;;  %v115_v22 = vld [vmem:[%s5257_s2 + $0xa0] sm:$0xff]  ;;  %v180_v23 = vld [vmem:[%s5257_s2 + $0x2a8] sm:$0xff] }
  0x2f   :  { %320 = vmatpush1.msra.mxu0 %v119_v13  ;;  %390 = vmatprep.subr.mxu1 %v184_v14  ;;  %v114_v24 = vld [vmem:[%s5257_s2 + $0x98] sm:$0xff]  ;;  %v179_v25 = vld [vmem:[%s5257_s2 + $0x2a0] sm:$0xff]  ;;  %v113_v26 = vld [vmem:[%s5257_s2 + $0x90] sm:$0xff] }
  0x30   :  { %321 = vmatprep.subr.mxu0 %v118_v16  ;;  %391 = vmatpush1.msra.mxu1 %v183_v17  ;;  %v178_v27 = vld [vmem:[%s5257_s2 + $0x298] sm:$0xff]  ;;  %v112_v28 = vld [vmem:[%s5257_s2 + $0x88] sm:$0xff]  ;;  %v177_v29 = vld [vmem:[%s5257_s2 + $0x290] sm:$0xff] }
  0x31   :  { %322 = vmatpush1.msra.mxu0 %v117_v18  ;;  %392 = vmatprep.subr.mxu1 %v182_v19  ;;  %v111_v30 = vld [vmem:[%s5257_s2 + $0x80] sm:$0xff]  ;;  %v176_v31 = vld [vmem:[%s5257_s2 + $0x288] sm:$0xff]  ;;  %v110_v32 = vld [vmem:[%s5257_s2 + $0x78] sm:$0xff] }
  0x32   :  { %323 = vmatprep.subr.mxu0 %v116_v20  ;;  %393 = vmatpush1.msra.mxu1 %v181_v21  ;;  %v175_v33 = vld [vmem:[%s5257_s2 + $0x280] sm:$0xff]  ;;  %v109_v34 = vld [vmem:[%s5257_s2 + $0x70] sm:$0xff]  ;;  %v174_v35 = vld [vmem:[%s5257_s2 + $0x278] sm:$0xff] }
  0x33   :  { %324 = vmatpush1.msra.mxu0 %v115_v22  ;;  %394 = vmatprep.subr.mxu1 %v180_v23  ;;  %v108_v36 = vld [vmem:[%s5257_s2 + $0x68] sm:$0xff]  ;;  %v173_v37 = vld [vmem:[%s5257_s2 + $0x270] sm:$0xff]  ;;  %v107_v38 = vld [vmem:[%s5257_s2 + $0x60] sm:$0xff] }
  0x34   :  { %325 = vmatprep.subr.mxu0 %v114_v24  ;;  %395 = vmatpush1.msra.mxu1 %v179_v25  ;;  %v172_v39 = vld [vmem:[%s5257_s2 + $0x268] sm:$0xff]  ;;  %v106_v40 = vld [vmem:[%s5257_s2 + $0x58] sm:$0xff]  ;;  %v171_v41 = vld [vmem:[%s5257_s2 + $0x260] sm:$0xff] }
  0x35   :  { %326 = vmatpush1.msra.mxu0 %v113_v26  ;;  %396 = vmatprep.subr.mxu1 %v178_v27  ;;  %v105_v42 = vld [vmem:[%s5257_s2 + $0x50] sm:$0xff]  ;;  %v170_v43 = vld [vmem:[%s5257_s2 + $0x258] sm:$0xff]  ;;  %v104_v44 = vld [vmem:[%s5257_s2 + $0x48] sm:$0xff] }
  0x36   :  { %327 = vmatprep.subr.mxu0 %v112_v28  ;;  %397 = vmatpush1.msra.mxu1 %v177_v29  ;;  %v169_v45 = vld [vmem:[%s5257_s2 + $0x250] sm:$0xff]  ;;  %v103_v46 = vld [vmem:[%s5257_s2 + $0x40] sm:$0xff]  ;;  %v168_v47 = vld [vmem:[%s5257_s2 + $0x248] sm:$0xff] }
  0x37   :  { %328 = vmatpush1.msra.mxu0 %v111_v30  ;;  %398 = vmatprep.subr.mxu1 %v176_v31  ;;  %v102_v48 = vld [vmem:[%s5257_s2 + $0x38] sm:$0xff]  ;;  %v167_v49 = vld [vmem:[%s5257_s2 + $0x240] sm:$0xff]  ;;  %v101_v50 = vld [vmem:[%s5257_s2 + $0x30] sm:$0xff] }
  0x38   :  { %329 = vmatprep.subr.mxu0 %v110_v32  ;;  %399 = vmatpush1.msra.mxu1 %v175_v33  ;;  %v166_v51 = vld [vmem:[%s5257_s2 + $0x238] sm:$0xff]  ;;  %v100_v52 = vld [vmem:[%s5257_s2 + $0x28] sm:$0xff]  ;;  %v165_v53 = vld [vmem:[%s5257_s2 + $0x230] sm:$0xff] }
  0x39   :  { %330 = vmatpush1.msra.mxu0 %v109_v34  ;;  %400 = vmatprep.subr.mxu1 %v174_v35  ;;  %v99_v54 = vld [vmem:[%s5257_s2 + $0x20] sm:$0xff]  ;;  %v164_v55 = vld [vmem:[%s5257_s2 + $0x228] sm:$0xff]  ;;  %v98_v56 = vld [vmem:[%s5257_s2 + $0x18] sm:$0xff] }
  0x3a   :  { %331 = vmatprep.subr.mxu0 %v108_v36  ;;  %401 = vmatpush1.msra.mxu1 %v173_v37  ;;  %v163_v57 = vld [vmem:[%s5257_s2 + $0x220] sm:$0xff]  ;;  %v97_v58 = vld [vmem:[%s5257_s2 + $0x10] sm:$0xff]  ;;  %v162_v59 = vld [vmem:[%s5257_s2 + $0x218] sm:$0xff] }
  0x3b   :  { %332 = vmatpush1.msra.mxu0 %v107_v38  ;;  %402 = vmatprep.subr.mxu1 %v172_v39  ;;  %v96_v60 = vld [vmem:[%s5257_s2 + $0x8] sm:$0xff]  ;;  %v161_v61 = vld [vmem:[%s5257_s2 + $0x210] sm:$0xff]  ;;  %v95_v62 = vld [vmem:[%s5257_s2] sm:$0xff] }
  0x3c   :  { %333 = vmatprep.subr.mxu0 %v106_v40  ;;  %403 = vmatpush1.msra.mxu1 %v171_v41  ;;  %v160_v63 = vld [vmem:[%s5257_s2 + $0x208] sm:$0xff]  ;;  %v158_v0 = vld [vmem:[%s5257_s2 + $0x1f8] sm:$0xff]  ;;  %v159_v1 = vld [vmem:[%s5257_s2 + $0x200] sm:$0xff] }
  0x3d   :  { %334 = vmatpush1.msra.mxu0 %v105_v42  ;;  %404 = vmatprep.subr.mxu1 %v170_v43  ;;  %v157_v2 = vld [vmem:[%s5257_s2 + $0x1f0] sm:$0xff]  ;;  %v222_v3 = vld [vmem:[%s5257_s2 + $0x3f8] sm:$0xff]  ;;  %v156_v4 = vld [vmem:[%s5257_s2 + $0x1e8] sm:$0xff] }
  0x3e   :  { %335 = vmatprep.subr.mxu0 %v104_v44  ;;  %405 = vmatpush1.msra.mxu1 %v169_v45  ;;  %v221_v5 = vld [vmem:[%s5257_s2 + $0x3f0] sm:$0xff]  ;;  %v155_v6 = vld [vmem:[%s5257_s2 + $0x1e0] sm:$0xff]  ;;  %v220_v7 = vld [vmem:[%s5257_s2 + $0x3e8] sm:$0xff] }
  0x3f   :  { %336 = vmatpush1.msra.mxu0 %v103_v46  ;;  %406 = vmatprep.subr.mxu1 %v168_v47  ;;  %v154_v8 = vld [vmem:[%s5257_s2 + $0x1d8] sm:$0xff]  ;;  %v219_v9 = vld [vmem:[%s5257_s2 + $0x3e0] sm:$0xff]  ;;  %v153_v10 = vld [vmem:[%s5257_s2 + $0x1d0] sm:$0xff] }
  0x40   :  { %337 = vmatprep.subr.mxu0 %v102_v48  ;;  %407 = vmatpush1.msra.mxu1 %v167_v49  ;;  %v218_v11 = vld [vmem:[%s5257_s2 + $0x3d8] sm:$0xff]  ;;  %v152_v12 = vld [vmem:[%s5257_s2 + $0x1c8] sm:$0xff]  ;;  %v217_v13 = vld [vmem:[%s5257_s2 + $0x3d0] sm:$0xff] }
  0x41   :  { %338 = vmatpush1.msra.mxu0 %v101_v50  ;;  %408 = vmatprep.subr.mxu1 %v166_v51  ;;  %v151_v14 = vld [vmem:[%s5257_s2 + $0x1c0] sm:$0xff]  ;;  %v216_v16 = vld [vmem:[%s5257_s2 + $0x3c8] sm:$0xff]  ;;  %v150_v17 = vld [vmem:[%s5257_s2 + $0x1b8] sm:$0xff] }
  0x42   :  { %339 = vmatprep.subr.mxu0 %v100_v52  ;;  %409 = vmatpush1.msra.mxu1 %v165_v53  ;;  %v215_v18 = vld [vmem:[%s5257_s2 + $0x3c0] sm:$0xff]  ;;  %v149_v19 = vld [vmem:[%s5257_s2 + $0x1b0] sm:$0xff]  ;;  %v214_v20 = vld [vmem:[%s5257_s2 + $0x3b8] sm:$0xff] }
  0x43   :  { %340 = vmatpush1.msra.mxu0 %v99_v54  ;;  %410 = vmatprep.subr.mxu1 %v164_v55  ;;  %v148_v21 = vld [vmem:[%s5257_s2 + $0x1a8] sm:$0xff]  ;;  %v213_v22 = vld [vmem:[%s5257_s2 + $0x3b0] sm:$0xff]  ;;  %v147_v23 = vld [vmem:[%s5257_s2 + $0x1a0] sm:$0xff] }
  0x44   :  { %341 = vmatprep.subr.mxu0 %v98_v56  ;;  %411 = vmatpush1.msra.mxu1 %v163_v57  ;;  %v212_v24 = vld [vmem:[%s5257_s2 + $0x3a8] sm:$0xff]  ;;  %v146_v25 = vld [vmem:[%s5257_s2 + $0x198] sm:$0xff]  ;;  %v211_v26 = vld [vmem:[%s5257_s2 + $0x3a0] sm:$0xff] }
  0x45   :  { %342 = vmatpush1.msra.mxu0 %v97_v58  ;;  %412 = vmatprep.subr.mxu1 %v162_v59  ;;  %v145_v27 = vld [vmem:[%s5257_s2 + $0x190] sm:$0xff]  ;;  %v210_v28 = vld [vmem:[%s5257_s2 + $0x398] sm:$0xff]  ;;  %v144_v29 = vld [vmem:[%s5257_s2 + $0x188] sm:$0xff] }
  0x46   :  { %343 = vmatprep.subr.mxu0 %v96_v60  ;;  %413 = vmatpush1.msra.mxu1 %v161_v61  ;;  %v209_v30 = vld [vmem:[%s5257_s2 + $0x390] sm:$0xff]  ;;  %v143_v31 = vld [vmem:[%s5257_s2 + $0x180] sm:$0xff]  ;;  %v208_v32 = vld [vmem:[%s5257_s2 + $0x388] sm:$0xff] }
  0x47   :  { %344 = vmatpush1.msra.mxu0 %v95_v62  ;;  %414 = vmatprep.subr.mxu1 %v160_v63  ;;  %v142_v33 = vld [vmem:[%s5257_s2 + $0x178] sm:$0xff]  ;;  %v207_v34 = vld [vmem:[%s5257_s2 + $0x380] sm:$0xff]  ;;  %v141_v35 = vld [vmem:[%s5257_s2 + $0x170] sm:$0xff] }
  0x48   :  { %345 = vmatprep.subr.mxu0 %v158_v0  ;;  %415 = vmatpush1.msra.mxu1 %v159_v1  ;;  %v206_v36 = vld [vmem:[%s5257_s2 + $0x378] sm:$0xff]  ;;  %v140_v37 = vld [vmem:[%s5257_s2 + $0x168] sm:$0xff]  ;;  %v205_v38 = vld [vmem:[%s5257_s2 + $0x370] sm:$0xff] }
  0x49   :  { %346 = vmatpush2.msra.mxu0 %v157_v2  ;;  %416 = vmatprep.subr.mxu1 %v222_v3  ;;  %v139_v39 = vld [vmem:[%s5257_s2 + $0x160] sm:$0xff]  ;;  %v204_v40 = vld [vmem:[%s5257_s2 + $0x368] sm:$0xff]  ;;  %v138_v41 = vld [vmem:[%s5257_s2 + $0x158] sm:$0xff] }
  0x4a   :  { %347 = vmatprep.subr.mxu0 %v156_v4  ;;  %417 = vmatpush2.msra.mxu1 %v221_v5  ;;  %v203_v42 = vld [vmem:[%s5257_s2 + $0x360] sm:$0xff]  ;;  %v137_v43 = vld [vmem:[%s5257_s2 + $0x150] sm:$0xff]  ;;  %v202_v44 = vld [vmem:[%s5257_s2 + $0x358] sm:$0xff] }
  0x4b   :  { %348 = vmatpush2.msra.mxu0 %v155_v6  ;;  %418 = vmatprep.subr.mxu1 %v220_v7  ;;  %v136_v45 = vld [vmem:[%s5257_s2 + $0x148] sm:$0xff]  ;;  %v201_v46 = vld [vmem:[%s5257_s2 + $0x350] sm:$0xff]  ;;  %v135_v47 = vld [vmem:[%s5257_s2 + $0x140] sm:$0xff] }
  0x4c   :  { %349 = vmatprep.subr.mxu0 %v154_v8  ;;  %419 = vmatpush2.msra.mxu1 %v219_v9  ;;  %v200_v48 = vld [vmem:[%s5257_s2 + $0x348] sm:$0xff]  ;;  %v134_v49 = vld [vmem:[%s5257_s2 + $0x138] sm:$0xff]  ;;  %v199_v50 = vld [vmem:[%s5257_s2 + $0x340] sm:$0xff] }
  0x4d   :  { %350 = vmatpush2.msra.mxu0 %v153_v10  ;;  %420 = vmatprep.subr.mxu1 %v218_v11  ;;  %v133_v51 = vld [vmem:[%s5257_s2 + $0x130] sm:$0xff]  ;;  %v198_v52 = vld [vmem:[%s5257_s2 + $0x338] sm:$0xff]  ;;  %v132_v53 = vld [vmem:[%s5257_s2 + $0x128] sm:$0xff] }
  0x4e   :  { %351 = vmatprep.subr.mxu0 %v152_v12  ;;  %421 = vmatpush2.msra.mxu1 %v217_v13  ;;  %v197_v54 = vld [vmem:[%s5257_s2 + $0x330] sm:$0xff]  ;;  %v131_v55 = vld [vmem:[%s5257_s2 + $0x120] sm:$0xff]  ;;  %v196_v56 = vld [vmem:[%s5257_s2 + $0x328] sm:$0xff] }
  0x4f   :  { %352 = vmatpush2.msra.mxu0 %v151_v14  ;;  %422 = vmatprep.subr.mxu1 %v216_v16  ;;  %v130_v57 = vld [vmem:[%s5257_s2 + $0x118] sm:$0xff]  ;;  %v195_v58 = vld [vmem:[%s5257_s2 + $0x320] sm:$0xff]  ;;  %v129_v59 = vld [vmem:[%s5257_s2 + $0x110] sm:$0xff] }
  0x50   :  { %353 = vmatprep.subr.mxu0 %v150_v17  ;;  %423 = vmatpush2.msra.mxu1 %v215_v18  ;;  %v194_v60 = vld [vmem:[%s5257_s2 + $0x318] sm:$0xff]  ;;  %v128_v61 = vld [vmem:[%s5257_s2 + $0x108] sm:$0xff]  ;;  %v127_v63 = vld [vmem:[%s5257_s2 + $0x100] sm:$0xff]  ;;  %v2933_v17 = vmov 0  }
  0x51   :  { %354 = vmatpush2.msra.mxu0 %v149_v19  ;;  %424 = vmatprep.subr.mxu1 %v214_v20  ;;  %v3401_v62 = vld [vmem:[%s5255_s0 + $0x8] sm:$0xff]  ;;  %v193_v0 = vld [vmem:[%s5257_s2 + $0x310] sm:$0xff]  ;;  %v3412_v1 = vld [vmem:[%s5255_s0] sm:$0xff] }
  0x52   :  { %355 = vmatprep.subr.mxu0 %v148_v21  ;;  %425 = vmatpush2.msra.mxu1 %v213_v22  ;;  %v192_v2 = vld [vmem:[%s5257_s2 + $0x308] sm:$0xff]  ;;  %v254_v3 = vld [vmem:[%s5257_s2 + $0x4f8] sm:$0xff]  ;;  %v191_v4 = vld [vmem:[%s5257_s2 + $0x300] sm:$0xff] }
  0x53   :  { %356 = vmatpush2.msra.mxu0 %v147_v23  ;;  %426 = vmatprep.subr.mxu1 %v212_v24  ;;  %v89_v5 = vld [vmem:[%s5255_s0 + $0x18] sm:$0xff]  ;;  %v253_v6 = vld [vmem:[%s5257_s2 + $0x4f0] sm:$0xff]  ;;  %v252_v8 = vld [vmem:[%s5257_s2 + $0x4e8] sm:$0xff] }
  0x54   :  { %357 = vmatprep.subr.mxu0 %v146_v25  ;;  %427 = vmatpush2.msra.mxu1 %v211_v26  ;;  %v88_v7 = vld [vmem:[%s5255_s0 + $0x10] sm:$0xff]  ;;  %v251_v9 = vld [vmem:[%s5257_s2 + $0x4e0] sm:$0xff]  ;;  %v3443_v10 = vld [vmem:[%s5255_s0 + $0x28] sm:$0xff] }
  0x55   :  { %358 = vmatpush2.msra.mxu0 %v145_v27  ;;  %428 = vmatprep.subr.mxu1 %v210_v28  ;;  %v250_v11 = vld [vmem:[%s5257_s2 + $0x4d8] sm:$0xff]  ;;  %v249_v12 = vld [vmem:[%s5257_s2 + $0x4d0] sm:$0xff]  ;;  %v93_v13 = vld [vmem:[%s5256_s1] sm:$0xff] }
  0x56   :  { %359 = vmatprep.subr.mxu0 %v144_v29  ;;  %429 = vmatpush2.msra.mxu1 %v209_v30  ;;  %v248_v14 = vld [vmem:[%s5257_s2 + $0x4c8] sm:$0xff]  ;;  %v247_v16 = vld [vmem:[%s5257_s2 + $0x4c0] sm:$0xff]  ;;  %v246_v18 = vld [vmem:[%s5257_s2 + $0x4b8] sm:$0xff] }
  0x57   :  { %360 = vmatpush2.msra.mxu0 %v143_v31  ;;  %430 = vmatprep.subr.mxu1 %v208_v32  ;;  %v245_v19 = vld [vmem:[%s5257_s2 + $0x4b0] sm:$0xff]  ;;  %v244_v20 = vld [vmem:[%s5257_s2 + $0x4a8] sm:$0xff]  ;;  %v243_v21 = vld [vmem:[%s5257_s2 + $0x4a0] sm:$0xff] }
  0x58   :  { %361 = vmatprep.subr.mxu0 %v142_v33  ;;  %431 = vmatpush2.msra.mxu1 %v207_v34  ;;  %v242_v22 = vld [vmem:[%s5257_s2 + $0x498] sm:$0xff]  ;;  %v241_v23 = vld [vmem:[%s5257_s2 + $0x490] sm:$0xff]  ;;  %v240_v24 = vld [vmem:[%s5257_s2 + $0x488] sm:$0xff] }
  0x59   :  { %362 = vmatpush2.msra.mxu0 %v141_v35  ;;  %432 = vmatprep.subr.mxu1 %v206_v36  ;;  %v239_v25 = vld [vmem:[%s5257_s2 + $0x480] sm:$0xff]  ;;  %v238_v26 = vld [vmem:[%s5257_s2 + $0x478] sm:$0xff]  ;;  %v237_v27 = vld [vmem:[%s5257_s2 + $0x470] sm:$0xff] }
  0x5a   :  { %363 = vmatprep.subr.mxu0 %v140_v37  ;;  %433 = vmatpush2.msra.mxu1 %v205_v38  ;;  %v236_v28 = vld [vmem:[%s5257_s2 + $0x468] sm:$0xff]  ;;  %v235_v29 = vld [vmem:[%s5257_s2 + $0x460] sm:$0xff]  ;;  %v234_v30 = vld [vmem:[%s5257_s2 + $0x458] sm:$0xff] }
  0x5b   :  { %364 = vmatpush2.msra.mxu0 %v139_v39  ;;  %434 = vmatprep.subr.mxu1 %v204_v40  ;;  %v233_v31 = vld [vmem:[%s5257_s2 + $0x450] sm:$0xff]  ;;  %v232_v32 = vld [vmem:[%s5257_s2 + $0x448] sm:$0xff]  ;;  %v231_v33 = vld [vmem:[%s5257_s2 + $0x440] sm:$0xff] }
  0x5c   :  { %365 = vmatprep.subr.mxu0 %v138_v41  ;;  %435 = vmatpush2.msra.mxu1 %v203_v42  ;;  %v230_v34 = vld [vmem:[%s5257_s2 + $0x438] sm:$0xff]  ;;  %v229_v35 = vld [vmem:[%s5257_s2 + $0x430] sm:$0xff]  ;;  %v228_v36 = vld [vmem:[%s5257_s2 + $0x428] sm:$0xff] }
  0x5d   :  { %366 = vmatpush2.msra.mxu0 %v137_v43  ;;  %436 = vmatprep.subr.mxu1 %v202_v44  ;;  %v227_v37 = vld [vmem:[%s5257_s2 + $0x420] sm:$0xff]  ;;  %v226_v38 = vld [vmem:[%s5257_s2 + $0x418] sm:$0xff]  ;;  %v225_v39 = vld [vmem:[%s5257_s2 + $0x410] sm:$0xff] }
  0x5e   :  { %367 = vmatprep.subr.mxu0 %v136_v45  ;;  %437 = vmatpush2.msra.mxu1 %v201_v46  ;;  %v224_v40 = vld [vmem:[%s5257_s2 + $0x408] sm:$0xff]  ;;  %v223_v41 = vld [vmem:[%s5257_s2 + $0x400] sm:$0xff]  ;;  %v286_v42 = vld [vmem:[%s5257_s2 + $0x5f8] sm:$0xff] }
  0x5f   :  { %368 = vmatpush2.msra.mxu0 %v135_v47  ;;  %438 = vmatprep.subr.mxu1 %v200_v48  ;;  %v285_v43 = vld [vmem:[%s5257_s2 + $0x5f0] sm:$0xff]  ;;  %v284_v44 = vld [vmem:[%s5257_s2 + $0x5e8] sm:$0xff]  ;;  %v283_v45 = vld [vmem:[%s5257_s2 + $0x5e0] sm:$0xff] }
  0x60   :  { %369 = vmatprep.subr.mxu0 %v134_v49  ;;  %439 = vmatpush2.msra.mxu1 %v199_v50  ;;  %v282_v46 = vld [vmem:[%s5257_s2 + $0x5d8] sm:$0xff]  ;;  %v281_v47 = vld [vmem:[%s5257_s2 + $0x5d0] sm:$0xff]  ;;  %v280_v48 = vld [vmem:[%s5257_s2 + $0x5c8] sm:$0xff] }
  0x61   :  { %370 = vmatpush2.msra.mxu0 %v133_v51  ;;  %440 = vmatprep.subr.mxu1 %v198_v52  ;;  %v279_v49 = vld [vmem:[%s5257_s2 + $0x5c0] sm:$0xff]  ;;  %v278_v50 = vld [vmem:[%s5257_s2 + $0x5b8] sm:$0xff]  ;;  %v277_v51 = vld [vmem:[%s5257_s2 + $0x5b0] sm:$0xff] }
  0x62   :  { %371 = vmatprep.subr.mxu0 %v132_v53  ;;  %441 = vmatpush2.msra.mxu1 %v197_v54  ;;  %v276_v52 = vld [vmem:[%s5257_s2 + $0x5a8] sm:$0xff]  ;;  %v275_v53 = vld [vmem:[%s5257_s2 + $0x5a0] sm:$0xff]  ;;  %v274_v54 = vld [vmem:[%s5257_s2 + $0x598] sm:$0xff] }
  0x63   :  { %372 = vmatpush2.msra.mxu0 %v131_v55  ;;  %442 = vmatprep.subr.mxu1 %v196_v56  ;;  %v273_v55 = vld [vmem:[%s5257_s2 + $0x590] sm:$0xff]  ;;  %v272_v56 = vld [vmem:[%s5257_s2 + $0x588] sm:$0xff] }
  0x64   :  { %373 = vmatprep.subr.mxu0 %v130_v57  ;;  %443 = vmatpush2.msra.mxu1 %v195_v58  ;;  %v271_v57 = vld [vmem:[%s5257_s2 + $0x580] sm:$0xff]  ;;  %v270_v58 = vld [vmem:[%s5257_s2 + $0x578] sm:$0xff] }
  0x65   :  { %374 = vmatpush2.msra.mxu0 %v129_v59  ;;  %444 = vmatprep.subr.mxu1 %v194_v60  ;;  %v269_v59 = vld [vmem:[%s5257_s2 + $0x570] sm:$0xff]  ;;  %v268_v60 = vld [vmem:[%s5257_s2 + $0x568] sm:$0xff] }
  0x66   :  { %375 = vmatprep.subr.mxu0 %v128_v61  ;;  %377 = vmatprep.mubr.f32.mxu0 %v3401_v62  ;;  %v267_v61 = vld [vmem:[%s5257_s2 + $0x560] sm:$0xff] }
  0x67   :  { %376 = vmatpush2.msra.mxu0 %v127_v63  ;;  %445 = vmatpush2.msra.mxu1 %v193_v0  ;;  %v266_v63 = vld [vmem:[%s5257_s2 + $0x558] sm:$0xff]  ;;  %v265_v0 = vld [vmem:[%s5257_s2 + $0x550] sm:$0xff] }
  0x68   :  { %378 = vmatmul.mubr.f32.vlgmr.msra.gmra.mxu0 %v3412_v1  ;;  %446 = vmatprep.subr.mxu1 %v192_v2  ;;  %v264_v2 = vld [vmem:[%s5257_s2 + $0x548] sm:$0xff] }
  0x69   :  { %455 = vmatprep.subr.mxu0 %v254_v3  ;;  %447 = vmatpush2.msra.mxu1 %v191_v4  ;;  %v263_v3 = vld [vmem:[%s5257_s2 + $0x540] sm:$0xff]  ;;  %v262_v4 = vld [vmem:[%s5257_s2 + $0x538] sm:$0xff] }
  0x6a   :  { %448 = vmatprep.mubr.f32.mxu1 %v89_v5  ;;  %456 = vmatpush1.msra.mxu0 %v253_v6  ;;  %v261_v5 = vld [vmem:[%s5257_s2 + $0x530] sm:$0xff]  ;;  %v260_v6 = vld [vmem:[%s5257_s2 + $0x528] sm:$0xff] }
  0x6b   :  { %449 = vmatmul.mubr.f32.vlgmr.msra.gmra.mxu1 %v88_v7  ;;  %457 = vmatprep.subr.mxu0 %v252_v8  ;;  %v259_v7 = vld [vmem:[%s5257_s2 + $0x520] sm:$0xff]  ;;  %v258_v8 = vld [vmem:[%s5257_s2 + $0x518] sm:$0xff] }
  0x6c   :  { %458 = vmatpush1.msra.mxu0 %v251_v9  ;;  %519 = vmatprep.mubr.f32.mxu0 %v3443_v10  ;;  %v257_v9 = vld [vmem:[%s5257_s2 + $0x510] sm:$0xff] }
  0x6d   :  { %459 = vmatprep.subr.mxu0 %v250_v11  ;;  %2804 = vset.pattern.permute.xlu0 %v2933_v17  ;;  %v256_v11 = vld [vmem:[%s5257_s2 + $0x508] sm:$0xff] }
  0x6e   :  { %460 = vmatpush1.msra.mxu0 %v249_v12  ;;  %293 = vperm.xlu0 %2804, %v93_v13   ;;  %v255_v12 = vld [vmem:[%s5257_s2 + $0x500] sm:$0xff] }
  0x6f   :  { %461 = vmatprep.subr.mxu0 %v248_v14  ;;  %2805 = vset.pattern.permute.xlu1 %v2933_v17  ;;  %v3632_v13 = vld [vmem:[%s5255_s0 + $0x20] sm:$0xff]  ;;  %v290_v14 = vld [vmem:[%s5257_s2 + $0x618] sm:$0xff]  ;;  %v288_v17 = vld [vmem:[%s5257_s2 + $0x608] sm:$0xff] }
  0x70   :  { %462 = vmatpush1.msra.mxu0 %v247_v16  ;;  %v289_v16 = vld [vmem:[%s5257_s2 + $0x610] sm:$0xff] }
  0x71   :  { %463 = vmatprep.subr.mxu0 %v246_v18  ;;  %v287_v18 = vld [vmem:[%s5257_s2 + $0x600] sm:$0xff]  ;;  %s2937_s2 = smov 126  }
  0x72   :  { %464 = vmatpush1.msra.mxu0 %v245_v19  ;;  %v92_v19 = vld [vmem:[%s5255_s0 + $0x30] sm:$0xff] }
  0x73   :  { %465 = vmatprep.subr.mxu0 %v244_v20  ;;  %v644_v20 = vld [vmem:[#allocation2 + $0xf8] sm:$0xff] }
  0x74   :  { %466 = vmatpush1.msra.mxu0 %v243_v21  ;;  %v628_v21 = vld [vmem:[#allocation2 + $0x78] sm:$0xff]  ;;  %2520 = vmatprep.subr.mxu1 %v644_v20  ;;  %v818_v20 = vld [vmem:[%s5258_s3 + $0x10] sm:$0xff] }
  0x75   :  { %467 = vmatprep.subr.mxu0 %v242_v22  ;;  %v643_v22 = vld [vmem:[#allocation2 + $0xf0] sm:$0xff]  ;;  %2521 = vmatpush3.msra.mxu1 %v628_v21  ;;  %v817_v21 = vld [vmem:[%s5258_s3 + $0x8] sm:$0xff] }
  0x76   :  { %468 = vmatpush1.msra.mxu0 %v241_v23  ;;  %v627_v23 = vld [vmem:[#allocation2 + $0x70] sm:$0xff]  ;;  %2522 = vmatprep.subr.mxu1 %v643_v22  ;;  %v816_v22 = vld [vmem:[%s5258_s3] sm:$0xff] }
  0x77   :  { %469 = vmatprep.subr.mxu0 %v240_v24  ;;  %v642_v24 = vld [vmem:[#allocation2 + $0xe8] sm:$0xff]  ;;  %2523 = vmatpush3.msra.mxu1 %v627_v23  ;;  %v879_v23 = vld [vmem:[%s5258_s3 + $0x1f8] sm:$0xff] }
  0x78   :  { %470 = vmatpush1.msra.mxu0 %v239_v25  ;;  %v626_v25 = vld [vmem:[#allocation2 + $0x68] sm:$0xff]  ;;  %2524 = vmatprep.subr.mxu1 %v642_v24  ;;  %v878_v24 = vld [vmem:[%s5258_s3 + $0x1f0] sm:$0xff] }
  0x79   :  { %471 = vmatprep.subr.mxu0 %v238_v26  ;;  %v641_v26 = vld [vmem:[#allocation2 + $0xe0] sm:$0xff]  ;;  %2525 = vmatpush3.msra.mxu1 %v626_v25  ;;  %v877_v25 = vld [vmem:[%s5258_s3 + $0x1e8] sm:$0xff] }
  0x7a   :  { %472 = vmatpush1.msra.mxu0 %v237_v27  ;;  %v625_v27 = vld [vmem:[#allocation2 + $0x60] sm:$0xff]  ;;  %2526 = vmatprep.subr.mxu1 %v641_v26 }
  0x7b   :  { %473 = vmatprep.subr.mxu0 %v236_v28  ;;  %v640_v28 = vld [vmem:[#allocation2 + $0xd8] sm:$0xff]  ;;  %2527 = vmatpush3.msra.mxu1 %v625_v27  ;;  %v876_v26 = vld [vmem:[%s5258_s3 + $0x1e0] sm:$0xff] }
  0x7c   :  { %474 = vmatpush1.msra.mxu0 %v235_v29  ;;  %v624_v29 = vld [vmem:[#allocation2 + $0x58] sm:$0xff]  ;;  %2528 = vmatprep.subr.mxu1 %v640_v28  ;;  %v874_v28 = vld [vmem:[%s5258_s3 + $0x1d0] sm:$0xff] }
  0x7d   :  { %475 = vmatprep.subr.mxu0 %v234_v30  ;;  %v639_v30 = vld [vmem:[#allocation2 + $0xd0] sm:$0xff]  ;;  %2529 = vmatpush3.msra.mxu1 %v624_v29  ;;  %v875_v27 = vld [vmem:[%s5258_s3 + $0x1d8] sm:$0xff]  ;;  %v873_v29 = vld [vmem:[%s5258_s3 + $0x1c8] sm:$0xff] }
  0x7e   :  { %476 = vmatpush1.msra.mxu0 %v233_v31  ;;  %v623_v31 = vld [vmem:[#allocation2 + $0x50] sm:$0xff]  ;;  %2530 = vmatprep.subr.mxu1 %v639_v30  ;;  %v872_v30 = vld [vmem:[%s5258_s3 + $0x1c0] sm:$0xff] }
  0x7f   :  { %477 = vmatprep.subr.mxu0 %v232_v32  ;;  %v622_v32 = vld [vmem:[#allocation2 + $0x48] sm:$0xff]  ;;  %2531 = vmatpush3.msra.mxu1 %v623_v31  ;;  %v871_v31 = vld [vmem:[%s5258_s3 + $0x1b8] sm:$0xff] }
  0x80   :  { %478 = vmatpush1.msra.mxu0 %v231_v33  ;;  %v637_v33 = vld [vmem:[#allocation2 + $0xc0] sm:$0xff] }
  0x81   :  { %479 = vmatprep.subr.mxu0 %v230_v34  ;;  %v621_v34 = vld [vmem:[#allocation2 + $0x40] sm:$0xff] }
  0x82   :  { %480 = vmatpush1.msra.mxu0 %v229_v35  ;;  %v636_v35 = vld [vmem:[#allocation2 + $0xb8] sm:$0xff] }
  0x83   :  { %481 = vmatprep.subr.mxu0 %v228_v36  ;;  %v620_v36 = vld [vmem:[#allocation2 + $0x38] sm:$0xff] }
  0x84   :  { %482 = vmatpush1.msra.mxu0 %v227_v37  ;;  %v635_v37 = vld [vmem:[#allocation2 + $0xb0] sm:$0xff] }
  0x85   :  { %483 = vmatprep.subr.mxu0 %v226_v38  ;;  %v619_v38 = vld [vmem:[#allocation2 + $0x30] sm:$0xff] }
  0x86   :  { %484 = vmatpush1.msra.mxu0 %v225_v39  ;;  %v634_v39 = vld [vmem:[#allocation2 + $0xa8] sm:$0xff] }
  0x87   :  { %485 = vmatprep.subr.mxu0 %v224_v40  ;;  %v618_v40 = vld [vmem:[#allocation2 + $0x28] sm:$0xff] }
  0x88   :  { %486 = vmatpush1.msra.mxu0 %v223_v41  ;;  %v633_v41 = vld [vmem:[#allocation2 + $0xa0] sm:$0xff] }
  0x89   :  { %487 = vmatprep.subr.mxu0 %v286_v42  ;;  %v617_v42 = vld [vmem:[#allocation2 + $0x20] sm:$0xff] }
  0x8a   :  { %488 = vmatpush2.msra.mxu0 %v285_v43  ;;  %v632_v43 = vld [vmem:[#allocation2 + $0x98] sm:$0xff] }
  0x8b   :  { %489 = vmatprep.subr.mxu0 %v284_v44  ;;  %v616_v44 = vld [vmem:[#allocation2 + $0x18] sm:$0xff] }
  0x8c   :  { %490 = vmatpush2.msra.mxu0 %v283_v45  ;;  %v631_v45 = vld [vmem:[#allocation2 + $0x90] sm:$0xff] }
  0x8d   :  { %491 = vmatprep.subr.mxu0 %v282_v46  ;;  %v615_v46 = vld [vmem:[#allocation2 + $0x10] sm:$0xff] }
  0x8e   :  { %492 = vmatpush2.msra.mxu0 %v281_v47  ;;  %v630_v47 = vld [vmem:[#allocation2 + $0x88] sm:$0xff] }
  0x8f   :  { %493 = vmatprep.subr.mxu0 %v280_v48  ;;  %v614_v48 = vld [vmem:[#allocation2 + $0x8] sm:$0xff] }
  0x90   :  { %494 = vmatpush2.msra.mxu0 %v279_v49  ;;  %v629_v49 = vld [vmem:[#allocation2 + $0x80] sm:$0xff] }
  0x91   :  { %495 = vmatprep.subr.mxu0 %v278_v50  ;;  %v613_v50 = vld [vmem:[#allocation2] sm:$0xff] }
  0x92   :  { %496 = vmatpush2.msra.mxu0 %v277_v51  ;;  %v847_v51 = vld [vmem:[%s5258_s3 + $0xf8] sm:$0xff] }
  0x93   :  { %497 = vmatprep.subr.mxu0 %v276_v52  ;;  %v846_v52 = vld [vmem:[%s5258_s3 + $0xf0] sm:$0xff] }
  0x94   :  { %498 = vmatpush2.msra.mxu0 %v275_v53  ;;  %v845_v53 = vld [vmem:[%s5258_s3 + $0xe8] sm:$0xff] }
  0x95   :  { %499 = vmatprep.subr.mxu0 %v274_v54  ;;  %v844_v54 = vld [vmem:[%s5258_s3 + $0xe0] sm:$0xff] }
  0x96   :  { %500 = vmatpush2.msra.mxu0 %v273_v55  ;;  %v843_v55 = vld [vmem:[%s5258_s3 + $0xd8] sm:$0xff] }
  0x97   :  { %501 = vmatprep.subr.mxu0 %v272_v56  ;;  %v842_v56 = vld [vmem:[%s5258_s3 + $0xd0] sm:$0xff] }
  0x98   :  { %502 = vmatpush2.msra.mxu0 %v271_v57  ;;  %v840_v57 = vld [vmem:[%s5258_s3 + $0xc0] sm:$0xff] }
  0x99   :  { %503 = vmatprep.subr.mxu0 %v270_v58  ;;  %v839_v58 = vld [vmem:[%s5258_s3 + $0xb8] sm:$0xff] }
  0x9a   :  { %504 = vmatpush2.msra.mxu0 %v269_v59  ;;  %v838_v59 = vld [vmem:[%s5258_s3 + $0xb0] sm:$0xff] }
  0x9b   :  { %505 = vmatprep.subr.mxu0 %v268_v60  ;;  %v837_v60 = vld [vmem:[%s5258_s3 + $0xa8] sm:$0xff] }
  0x9c   :  { %506 = vmatpush2.msra.mxu0 %v267_v61  ;;  %v836_v61 = vld [vmem:[%s5258_s3 + $0xa0] sm:$0xff] }
  0x9d   :  { %507 = vmatprep.subr.mxu0 %v266_v63  ;;  %v835_v63 = vld [vmem:[%s5258_s3 + $0x98] sm:$0xff] }
  0x9e   :  { %508 = vmatpush2.msra.mxu0 %v265_v0  ;;  %v834_v0 = vld [vmem:[%s5258_s3 + $0x90] sm:$0xff] }
  0x9f   :  { %509 = vmatprep.subr.mxu0 %v264_v2  ;;  %v833_v2 = vld [vmem:[%s5258_s3 + $0x88] sm:$0xff] }
  0xa0   :  { %510 = vmatpush2.msra.mxu0 %v263_v3  ;;  %v832_v3 = vld [vmem:[%s5258_s3 + $0x80] sm:$0xff] }
  0xa1   :  { %511 = vmatprep.subr.mxu0 %v262_v4  ;;  %v831_v4 = vld [vmem:[%s5258_s3 + $0x78] sm:$0xff] }
  0xa2   :  { %512 = vmatpush2.msra.mxu0 %v261_v5  ;;  %v830_v5 = vld [vmem:[%s5258_s3 + $0x70] sm:$0xff] }
  0xa3   :  { %513 = vmatprep.subr.mxu0 %v260_v6  ;;  %v829_v6 = vld [vmem:[%s5258_s3 + $0x68] sm:$0xff] }
  0xa4   :  { %514 = vmatpush2.msra.mxu0 %v259_v7  ;;  %v828_v7 = vld [vmem:[%s5258_s3 + $0x60] sm:$0xff] }
  0xa5   :  { %515 = vmatprep.subr.mxu0 %v258_v8  ;;  %v827_v8 = vld [vmem:[%s5258_s3 + $0x58] sm:$0xff] }
  0xa6   :  { %516 = vmatpush2.msra.mxu0 %v257_v9  ;;  %v826_v9 = vld [vmem:[%s5258_s3 + $0x50] sm:$0xff] }
  0xa7   :  { %517 = vmatprep.subr.mxu0 %v256_v11  ;;  %v825_v11 = vld [vmem:[%s5258_s3 + $0x48] sm:$0xff] }
  0xa8   :  { %518 = vmatpush2.msra.mxu0 %v255_v12  ;;  %v824_v12 = vld [vmem:[%s5258_s3 + $0x40] sm:$0xff] }
  0xa9   :  { %520 = vmatmul.mubr.f32.vlgmr.msra.gmra.mxu0 %v3632_v13  ;;  %554 = vmatprep.subr.mxu0 %v290_v14  ;;  %v823_v14 = vld [vmem:[%s5258_s3 + $0x38] sm:$0xff] }
  0xaa   :  { %555 = vmatpush1.msra.mxu0 %v289_v16  ;;  %590 = vmatprep.mubr.f32.mxu0 %v2932_v15  ;;  %v822_v16 = vld [vmem:[%s5258_s3 + $0x30] sm:$0xff] }
  0xab   :  { %556 = vmatprep.subr.mxu0 %v288_v17  ;;  %v821_v17 = vld [vmem:[%s5258_s3 + $0x28] sm:$0xff] }
  0xac   :  { %557 = vmatpush1.msra.mxu0 %v287_v18  ;;  %v820_v18 = vld [vmem:[%s5258_s3 + $0x20] sm:$0xff] }
  0xad   :  { %2508 = vmatmul.mubr.msk.f32.vlgmr.msra.gmra.mxu0 %vm309_vm0, %v92_v19  ;;  %1024 = vmatprep.subr.mxu0 %v847_v51  ;;  %v819_v19 = vld [vmem:[%s5258_s3 + $0x18] sm:$0xff] }
  0xae   :  { %1088 = vmatprep.mubr.f32.mxu0 %v3401_v62  ;;  %v638_v62 = vld [vmem:[#allocation2 + $0xc8] sm:$0xff]  ;;  %1025 = vmatpush1.msra.mxu0 %v846_v52 }
  0xaf   :  { %2532 = vmatprep.subr.mxu1 %v638_v62  ;;  %1026 = vmatprep.subr.mxu0 %v845_v53  ;;  %v870_v62 = vld [vmem:[%s5258_s3 + $0x1b0] sm:$0xff] }
  0xb0   :  { %2533 = vmatpush3.msra.mxu1 %v622_v32  ;;  %1027 = vmatpush1.msra.mxu0 %v844_v54  ;;  %v869_v32 = vld [vmem:[%s5258_s3 + $0x1a8] sm:$0xff] }
  0xb1   :  { %2534 = vmatprep.subr.mxu1 %v637_v33  ;;  %1028 = vmatprep.subr.mxu0 %v843_v55  ;;  %v868_v33 = vld [vmem:[%s5258_s3 + $0x1a0] sm:$0xff] }
  0xb2   :  { %2535 = vmatpush3.msra.mxu1 %v621_v34  ;;  %1029 = vmatpush1.msra.mxu0 %v842_v56  ;;  %v867_v34 = vld [vmem:[%s5258_s3 + $0x198] sm:$0xff] }
  0xb3   :  { %2536 = vmatprep.subr.mxu1 %v636_v35  ;;  %v866_v35 = vld [vmem:[%s5258_s3 + $0x190] sm:$0xff] }
  0xb4   :  { %2537 = vmatpush3.msra.mxu1 %v620_v36  ;;  %v865_v36 = vld [vmem:[%s5258_s3 + $0x188] sm:$0xff] }
  0xb5   :  { %2538 = vmatprep.subr.mxu1 %v635_v37  ;;  %v864_v37 = vld [vmem:[%s5258_s3 + $0x180] sm:$0xff] }
  0xb6   :  { %2539 = vmatpush3.msra.mxu1 %v619_v38  ;;  %v863_v38 = vld [vmem:[%s5258_s3 + $0x178] sm:$0xff] }
  0xb7   :  { %2540 = vmatprep.subr.mxu1 %v634_v39  ;;  %v862_v39 = vld [vmem:[%s5258_s3 + $0x170] sm:$0xff] }
  0xb8   :  { %2541 = vmatpush3.msra.mxu1 %v618_v40  ;;  %v861_v40 = vld [vmem:[%s5258_s3 + $0x168] sm:$0xff] }
  0xb9   :  { %2542 = vmatprep.subr.mxu1 %v633_v41  ;;  %v860_v41 = vld [vmem:[%s5258_s3 + $0x160] sm:$0xff] }
  0xba   :  { %2543 = vmatpush3.msra.mxu1 %v617_v42  ;;  %v859_v42 = vld [vmem:[%s5258_s3 + $0x158] sm:$0xff] }
  0xbb   :  { %2544 = vmatprep.subr.mxu1 %v632_v43  ;;  %v858_v43 = vld [vmem:[%s5258_s3 + $0x150] sm:$0xff] }
  0xbc   :  { %2545 = vmatpush3.msra.mxu1 %v616_v44  ;;  %v857_v44 = vld [vmem:[%s5258_s3 + $0x148] sm:$0xff] }
  0xbd   :  { %2546 = vmatprep.subr.mxu1 %v631_v45  ;;  %v297_v45 = vlaneseq }
  0xbe   :  { %2547 = vmatpush3.msra.mxu1 %v615_v46 }
  0xbf   :  { %2548 = vmatprep.subr.mxu1 %v630_v47  ;;  %v3819_v46 = vshrl.u32 %v297_v45, 7  ;;  %v974_v45 = vld [vmem:[%s5258_s3 + $0x4f0] sm:$0xff] }
  0xc0   :  { %2549 = vmatpush3.msra.mxu1 %v614_v48  ;;  %v94_v48 = vld [vmem:[%s5265_s10] ss:$8 sm:$0x3] }
  0xc1   :  { %2550 = vmatprep.subr.mxu1 %v629_v49  ;;  %v3822_v47 = vsub.s32 0, %v3819_v46  ;;  %v3828_v49 = vsub.s32 1, %v3819_v46 }
  0xc2   :  { %2551 = vmatpush3.msra.mxu1 %v613_v50 }
  0xc3   :  { %2677 = vmatprep.subr.mxu1 %v2932_v15  ;;  %v841_v15 = vld [vmem:[%s5258_s3 + $0xc8] sm:$0xff]  ;;  %v300_v50 = vrot.slane %v94_v48, %v3822_v47  ;;  %v304_v52 = vrot.slane %v94_v48, %v3828_v49 }
  0xc4   :  { %1030 = vmatprep.subr.mxu0 %v841_v15  ;;  %v973_v48 = vld [vmem:[%s5258_s3 + $0x4e8] sm:$0xff] }
  0xc5   :  { %1031 = vmatpush1.msra.mxu0 %v840_v57 }
  0xc6   :  { %1032 = vmatprep.subr.mxu0 %v839_v58 }
  0xc7   :  { %1033 = vmatpush1.msra.mxu0 %v838_v59 }
  0xc8   :  { %1034 = vmatprep.subr.mxu0 %v837_v60 }
  0xc9   :  { %1035 = vmatpush1.msra.mxu0 %v836_v61 }
  0xca   :  { %1036 = vmatprep.subr.mxu0 %v835_v63  ;;  %v597_v63 = vld [vmem:[%s5266_s11] sm:$0x3] }
  0xcb   :  { %1037 = vmatpush1.msra.mxu0 %v834_v0 }
  0xcc   :  { %1038 = vmatprep.subr.mxu0 %v833_v2 }
  0xcd   :  { %1039 = vmatpush1.msra.mxu0 %v832_v3 }
  0xce   :  { %1040 = vmatprep.subr.mxu0 %v831_v4 }
  0xcf   :  { %1041 = vmatpush1.msra.mxu0 %v830_v5  ;;  %v602_v5 = vrot.slane %v597_v63, %v3822_v47 }
  0xd0   :  { %1042 = vmatprep.subr.mxu0 %v829_v6 }
  0xd1   :  { %1043 = vmatpush1.msra.mxu0 %v828_v7 }
  0xd2   :  { %1044 = vmatprep.subr.mxu0 %v827_v8  ;;  %v606_v8 = vrot.slane %v597_v63, %v3828_v49  ;;  %v957_v63 = vld [vmem:[%s5258_s3 + $0x468] sm:$0xff] }
  0xd3   :  { %1045 = vmatpush1.msra.mxu0 %v826_v9 }
  0xd4   :  { %1046 = vmatprep.subr.mxu0 %v825_v11 }
  0xd5   :  { %1047 = vmatpush1.msra.mxu0 %v824_v12 }
  0xd6   :  { %1048 = vmatprep.subr.mxu0 %v823_v14 }
  0xd7   :  { %1049 = vmatpush1.msra.mxu0 %v822_v16 }
  0xd8   :  { %1050 = vmatprep.subr.mxu0 %v821_v17 }
  0xd9   :  { %1051 = vmatpush1.msra.mxu0 %v820_v18  ;;  %v738_v18 = vld [vmem:[%s5261_s6 + $0x78] sm:$0xff] }
  0xda   :  { %1052 = vmatprep.subr.mxu0 %v819_v19  ;;  %v737_v19 = vld [vmem:[%s5261_s6 + $0x70] sm:$0xff] }
  0xdb   :  { %1053 = vmatpush1.msra.mxu0 %v818_v20  ;;  %v3843_v20 = vld [vmem:[#allocation8] sm:$0xff] }
  0xdc   :  { %1054 = vmatprep.subr.mxu0 %v817_v21  ;;  %v736_v21 = vld [vmem:[%s5261_s6 + $0x68] sm:$0xff] }
  0xdd   :  { %1055 = vmatpush1.msra.mxu0 %v816_v22  ;;  %v735_v22 = vld [vmem:[%s5261_s6 + $0x60] sm:$0xff] }
  0xde   :  { %1056 = vmatprep.subr.mxu0 %v879_v23  ;;  %v734_v23 = vld [vmem:[%s5261_s6 + $0x58] sm:$0xff] }
  0xdf   :  { %1057 = vmatpush2.msra.mxu0 %v878_v24  ;;  %v733_v24 = vld [vmem:[%s5261_s6 + $0x50] sm:$0xff] }
  0xe0   :  { %1058 = vmatprep.subr.mxu0 %v877_v25  ;;  %v732_v25 = vld [vmem:[%s5261_s6 + $0x48] sm:$0xff] }
  0xe1   :  { %1059 = vmatpush2.msra.mxu0 %v876_v26  ;;  %v731_v26 = vld [vmem:[%s5261_s6 + $0x40] sm:$0xff] }
  0xe2   :  { %1060 = vmatprep.subr.mxu0 %v875_v27  ;;  %v730_v27 = vld [vmem:[%s5261_s6 + $0x38] sm:$0xff] }
  0xe3   :  { %1061 = vmatpush2.msra.mxu0 %v874_v28  ;;  %v729_v28 = vld [vmem:[%s5261_s6 + $0x30] sm:$0xff] }
  0xe4   :  { %1062 = vmatprep.subr.mxu0 %v873_v29  ;;  %v728_v29 = vld [vmem:[%s5261_s6 + $0x28] sm:$0xff] }
  0xe5   :  { %1063 = vmatpush2.msra.mxu0 %v872_v30  ;;  %v727_v30 = vld [vmem:[%s5261_s6 + $0x20] sm:$0xff] }
  0xe6   :  { %1064 = vmatprep.subr.mxu0 %v871_v31  ;;  %v856_v31 = vld [vmem:[%s5258_s3 + $0x140] sm:$0xff] }
  0xe7   :  { %1065 = vmatpush2.msra.mxu0 %v870_v62  ;;  %v855_v62 = vld [vmem:[%s5258_s3 + $0x138] sm:$0xff] }
  0xe8   :  { %1066 = vmatprep.subr.mxu0 %v869_v32  ;;  %v726_v32 = vld [vmem:[%s5261_s6 + $0x18] sm:$0xff] }
  0xe9   :  { %1067 = vmatpush2.msra.mxu0 %v868_v33  ;;  %v294_v51 = vpop.permute.xlu0 %293  ;;  %v854_v33 = vld [vmem:[%s5258_s3 + $0x130] sm:$0xff] }
  0xea   :  { %1068 = vmatprep.subr.mxu0 %v867_v34  ;;  %v307_v54 = vmul.f32 %v300_v50, %v294_v51  ;;  %v308_v55 = vmul.f32 %v304_v52, %v294_v51  ;;  %v853_v34 = vld [vmem:[%s5258_s3 + $0x128] sm:$0xff]  ;;  %v972_v50 = vld [vmem:[%s5258_s3 + $0x4e0] sm:$0xff]  ;;  %v970_v51 = vld [vmem:[%s5258_s3 + $0x4d0] sm:$0xff] }
  0xeb   :  { %1069 = vmatpush2.msra.mxu0 %v866_v35  ;;  %v725_v35 = vld [vmem:[%s5261_s6 + $0x10] sm:$0xff]  ;;  %v968_v52 = vld [vmem:[%s5258_s3 + $0x4c0] sm:$0xff] }
  0xec   :  { %1070 = vmatprep.subr.mxu0 %v865_v36  ;;  %v852_v36 = vld [vmem:[%s5258_s3 + $0x120] sm:$0xff] }
  0xed   :  { %1071 = vmatpush2.msra.mxu0 %v864_v37  ;;  %v851_v37 = vld [vmem:[%s5258_s3 + $0x118] sm:$0xff] }
  0xee   :  { %1072 = vmatprep.subr.mxu0 %v863_v38  ;;  %v724_v38 = vld [vmem:[%s5261_s6 + $0x8] sm:$0xff] }
  0xef   :  { %1073 = vmatpush2.msra.mxu0 %v862_v39  ;;  %v850_v39 = vld [vmem:[%s5258_s3 + $0x110] sm:$0xff] }
  0xf0   :  { %1074 = vmatprep.subr.mxu0 %v861_v40  ;;  %v849_v40 = vld [vmem:[%s5258_s3 + $0x108] sm:$0xff] }
  0xf1   :  { %1075 = vmatpush2.msra.mxu0 %v860_v41  ;;  %v723_v41 = vld [vmem:[%s5261_s6] sm:$0xff] }
  0xf2   :  { %1076 = vmatprep.subr.mxu0 %v859_v42  ;;  %v848_v42 = vld [vmem:[%s5258_s3 + $0x100] sm:$0xff] }
  0xf3   :  { %1077 = vmatpush2.msra.mxu0 %v858_v43  ;;  %v911_v43 = vld [vmem:[%s5258_s3 + $0x2f8] sm:$0xff] }
  0xf4   :  { %1078 = vmatprep.subr.mxu0 %v857_v44  ;;  %v975_v44 = vld [vmem:[%s5258_s3 + $0x4f8] sm:$0xff] }
  0xf5   :  { %1079 = vmatpush2.msra.mxu0 %v856_v31  ;;  %v994_v31 = vld [vmem:[%s5258_s3 + $0x590] sm:$0xff] }
  0xf6   :  { %1080 = vmatprep.subr.mxu0 %v855_v62  ;;  %v993_v62 = vld [vmem:[%s5258_s3 + $0x588] sm:$0xff] }
  0xf7   :  { %1081 = vmatpush2.msra.mxu0 %v854_v33  ;;  %v991_v33 = vld [vmem:[%s5258_s3 + $0x578] sm:$0xff] }
  0xf8   :  { %1082 = vmatprep.subr.mxu0 %v853_v34  ;;  %v990_v34 = vld [vmem:[%s5258_s3 + $0x570] sm:$0xff] }
  0xf9   :  { %1083 = vmatpush2.msra.mxu0 %v852_v36  ;;  %v988_v36 = vld [vmem:[%s5258_s3 + $0x560] sm:$0xff] }
  0xfa   :  { %1084 = vmatprep.subr.mxu0 %v851_v37  ;;  %v987_v37 = vld [vmem:[%s5258_s3 + $0x558] sm:$0xff] }
  0xfb   :  { %1085 = vmatpush2.msra.mxu0 %v850_v39  ;;  %v985_v39 = vld [vmem:[%s5258_s3 + $0x548] sm:$0xff] }
  0xfc   :  { %1086 = vmatprep.subr.mxu0 %v849_v40  ;;  %v984_v40 = vld [vmem:[%s5258_s3 + $0x540] sm:$0xff] }
  0xfd   :  { %1087 = vmatpush2.msra.mxu0 %v848_v42  ;;  %v982_v42 = vld [vmem:[%s5258_s3 + $0x530] sm:$0xff] }
  0xfe   :  { %1166 = vmatprep.subr.mxu0 %v975_v44  ;;  %1089 = vmatmul.mubr.f32.vlgmr.msra.gmra.mxu0 %v3412_v1  ;;  %v971_v1 = vld [vmem:[%s5258_s3 + $0x4d8] sm:$0xff]  ;;  %v980_v44 = vld [vmem:[%s5258_s3 + $0x520] sm:$0xff] }
  0xff   :  { %1167 = vmatpush1.msra.mxu0 %v974_v45  ;;  %1230 = vmatprep.mubr.f32.mxu0 %v3443_v10  ;;  %v969_v10 = vld [vmem:[%s5258_s3 + $0x4c8] sm:$0xff]  ;;  %v979_v45 = vld [vmem:[%s5258_s3 + $0x518] sm:$0xff] }
 0x100   :  { %1168 = vmatprep.subr.mxu0 %v973_v48  ;;  %v978_v48 = vld [vmem:[%s5258_s3 + $0x510] sm:$0xff] }
 0x101   :  { %1169 = vmatpush1.msra.mxu0 %v972_v50  ;;  %v977_v50 = vld [vmem:[%s5258_s3 + $0x508] sm:$0xff] }
 0x102   :  { %1170 = vmatprep.subr.mxu0 %v971_v1  ;;  %v976_v1 = vld [vmem:[%s5258_s3 + $0x500] sm:$0xff] }
 0x103   :  { %1171 = vmatpush1.msra.mxu0 %v970_v51  ;;  %v4133_v51 = vld [vmem:[%s5256_s1] sm:$0xff] }
 0x104   :  { %1172 = vmatprep.subr.mxu0 %v969_v10  ;;  %1515 = vrot.lane.b32.xlu0 %v4133_v51, %s2935_s24 }
 0x105   :  { %1173 = vmatpush1.msra.mxu0 %v968_v52  ;;  %v2509_v52 = vld [vmem:[%s5266_s11 + $0x2] ss:$0 sm:$0xff]  ;;  %1526 = vrot.lane.b32.xlu1 %v4133_v51, %s2936_s8  ;;  %v1320_v51 = vld [vmem:[#allocation5 + $0x50] sm:$0xff] }
 0x128   :  { %v379_v53 = vpop.f32.mrf.mxu0 }
 0x129   :  { %v380_v57 = vadd.f32 %v379_v53, %v307_v54  ;;  %v967_v53 = vld [vmem:[%s5258_s3 + $0x4b8] sm:$0xff]  ;;  %v966_v54 = vld [vmem:[%s5258_s3 + $0x4b0] sm:$0xff] }
 0x12a   :  { %v381_v56 = vpop.f32.mrf.mxu0  ;;  %1174 = vmatprep.subr.mxu0 %v967_v53 }
 0x12b   :  { %v450_v15 = vpop.f32.mrf.mxu1  ;;  %v382_v58 = vadd.f32 %v381_v56, %v308_v55  ;;  %1175 = vmatpush1.msra.mxu0 %v966_v54  ;;  %v965_v55 = vld [vmem:[%s5258_s3 + $0x4a8] sm:$0xff]  ;;  %v964_v56 = vld [vmem:[%s5258_s3 + $0x4a0] sm:$0xff] }
 0x12c   :  { %v451_v61 = vadd.f32 %v450_v15, %v380_v57  ;;  %1176 = vmatprep.subr.mxu0 %v965_v55  ;;  %v963_v15 = vld [vmem:[%s5258_s3 + $0x498] sm:$0xff]  ;;  %v962_v57 = vld [vmem:[%s5258_s3 + $0x490] sm:$0xff] }
 0x12d   :  { %v452_v59 = vpop.f32.mrf.mxu1  ;;  %1177 = vmatpush1.msra.mxu0 %v964_v56 }
 0x12e   :  { %v453_v2 = vadd.f32 %v452_v59, %v382_v58  ;;  %1178 = vmatprep.subr.mxu0 %v963_v15  ;;  %v961_v58 = vld [vmem:[%s5258_s3 + $0x488] sm:$0xff]  ;;  %v960_v59 = vld [vmem:[%s5258_s3 + $0x480] sm:$0xff] }
 0x12f   :  { %1179 = vmatpush1.msra.mxu0 %v962_v57  ;;  %v909_v15 = vld [vmem:[%s5258_s3 + $0x2e8] sm:$0xff]  ;;  %v908_v57 = vld [vmem:[%s5258_s3 + $0x2e0] sm:$0xff] }
 0x130   :  { %1180 = vmatprep.subr.mxu0 %v961_v58  ;;  %v907_v58 = vld [vmem:[%s5258_s3 + $0x2d8] sm:$0xff] }
 0x131   :  { %1181 = vmatpush1.msra.mxu0 %v960_v59  ;;  %v2814_v59 = vld [vmem:[%s5255_s0 + $0x18] sm:$0xff] }
 0x169   :  { %v521_v60 = vpop.f32.mrf.mxu0 }
 0x16a   :  { %v522_v3 = vadd.f32 %v521_v60, %v451_v61  ;;  %v959_v60 = vld [vmem:[%s5258_s3 + $0x478] sm:$0xff]  ;;  %v958_v61 = vld [vmem:[%s5258_s3 + $0x470] sm:$0xff] }
 0x16b   :  { %v523_v0 = vpop.f32.mrf.mxu0  ;;  %1182 = vmatprep.subr.mxu0 %v959_v60  ;;  %v906_v60 = vld [vmem:[%s5258_s3 + $0x2d0] sm:$0xff] }
 0x16c   :  { %v524_v6 = vadd.f32 %v523_v0, %v453_v2  ;;  %1183 = vmatpush1.msra.mxu0 %v958_v61  ;;  %v956_v0 = vld [vmem:[%s5258_s3 + $0x460] sm:$0xff]  ;;  %v955_v2 = vld [vmem:[%s5258_s3 + $0x458] sm:$0xff]  ;;  %v905_v61 = vld [vmem:[%s5258_s3 + $0x2c8] sm:$0xff] }
 0x16d   :  { %v592_v4 = vpop.f32.mrf.mxu0  ;;  %1184 = vmatprep.subr.mxu0 %v957_v63  ;;  %v904_v63 = vld [vmem:[%s5258_s3 + $0x2c0] sm:$0xff] }
 0x16e   :  { %v593_v7 = vadd.f32 %v592_v4, %v522_v3  ;;  %1185 = vmatpush1.msra.mxu0 %v956_v0  ;;  %v954_v3 = vld [vmem:[%s5258_s3 + $0x450] sm:$0xff]  ;;  %v953_v4 = vld [vmem:[%s5258_s3 + $0x448] sm:$0xff]  ;;  %v903_v0 = vld [vmem:[%s5258_s3 + $0x2b8] sm:$0xff] }
 0x16f   :  { %v594_v9 = vpop.f32.mrf.mxu0  ;;  %1186 = vmatprep.subr.mxu0 %v955_v2  ;;  %v902_v2 = vld [vmem:[%s5258_s3 + $0x2b0] sm:$0xff] }
 0x170   :  { %v595_v11 = vadd.f32 %v594_v9, %v524_v6  ;;  %v609_v12 = vadd.f32 %v602_v5, %v593_v7  ;;  %1187 = vmatpush1.msra.mxu0 %v954_v3  ;;  %v952_v5 = vld [vmem:[%s5258_s3 + $0x440] sm:$0xff]  ;;  %v951_v6 = vld [vmem:[%s5258_s3 + $0x438] sm:$0xff]  ;;  %v950_v7 = vld [vmem:[%s5258_s3 + $0x430] sm:$0xff] }
 0x171   :  { %1188 = vmatprep.subr.mxu0 %v953_v4  ;;  %v948_v9 = vld [vmem:[%s5258_s3 + $0x420] sm:$0xff]  ;;  %v901_v3 = vld [vmem:[%s5258_s3 + $0x2a8] sm:$0xff] }
 0x172   :  { %v610_v14 = vadd.f32 %v606_v8, %v595_v11  ;;  %v611_v17 = vmax.f32 %v609_v12, 0.0  ;;  %1189 = vmatpush1.msra.mxu0 %v952_v5  ;;  %v949_v8 = vld [vmem:[%s5258_s3 + $0x428] sm:$0xff]  ;;  %v947_v11 = vld [vmem:[%s5258_s3 + $0x418] sm:$0xff]  ;;  %v946_v12 = vld [vmem:[%s5258_s3 + $0x410] sm:$0xff] }
 0x173   :  { %1190 = vmatprep.subr.mxu0 %v951_v6  ;;  %v900_v4 = vld [vmem:[%s5258_s3 + $0x2a0] sm:$0xff]  ;;  %v899_v5 = vld [vmem:[%s5258_s3 + $0x298] sm:$0xff]  ;;  %v898_v6 = vld [vmem:[%s5258_s3 + $0x290] sm:$0xff] }
 0x174   :  { %v612_v16 = vmax.f32 %v610_v14, 0.0  ;;  %1191 = vmatpush1.msra.mxu0 %v950_v7  ;;  %v945_v14 = vld [vmem:[%s5258_s3 + $0x408] sm:$0xff] }
 0x175   :  { %1192 = vmatprep.subr.mxu0 %v949_v8  ;;  %v897_v7 = vld [vmem:[%s5258_s3 + $0x288] sm:$0xff]  ;;  %v896_v8 = vld [vmem:[%s5258_s3 + $0x280] sm:$0xff] }
 0x176   :  { %716 = vmatprep.mubr.f32.mxu1 %v612_v16  ;;  %1193 = vmatpush1.msra.mxu0 %v948_v9  ;;  %v944_v16 = vld [vmem:[%s5258_s3 + $0x400] sm:$0xff]  ;;  %v895_v9 = vld [vmem:[%s5258_s3 + $0x278] sm:$0xff] }
 0x177   :  { %717 = vmatmul.mubr.f32.vlgmr.msra.gmra.mxu1 %v611_v17  ;;  %1194 = vmatprep.subr.mxu0 %v947_v11  ;;  %v1007_v17 = vld [vmem:[%s5258_s3 + $0x5f8] sm:$0xff]  ;;  %v894_v11 = vld [vmem:[%s5258_s3 + $0x270] sm:$0xff] }
 0x178   :  { %2678 = vmatpush3.msra.mxu1 %v738_v18  ;;  %2709 = vmatprep.mubr.msk.f32.mxu1 %vm2934_vm1, %v3843_v20  ;;  %v1006_v18 = vld [vmem:[%s5258_s3 + $0x5f0] sm:$0xff] }
 0x179   :  { %2679 = vmatprep.subr.mxu1 %v3843_v20  ;;  %1195 = vmatpush1.msra.mxu0 %v946_v12  ;;  %v893_v12 = vld [vmem:[%s5258_s3 + $0x268] sm:$0xff] }
 0x17a   :  { %2680 = vmatpush3.msra.mxu1 %v737_v19  ;;  %1196 = vmatprep.subr.mxu0 %v945_v14  ;;  %v1005_v19 = vld [vmem:[%s5258_s3 + $0x5e8] sm:$0xff]  ;;  %v892_v14 = vld [vmem:[%s5258_s3 + $0x260] sm:$0xff] }
 0x17b   :  { %2681 = vmatprep.subr.mxu1 %v3843_v20  ;;  %1197 = vmatpush1.msra.mxu0 %v944_v16  ;;  %v891_v16 = vld [vmem:[%s5258_s3 + $0x258] sm:$0xff] }
 0x17c   :  { %2682 = vmatpush3.msra.mxu1 %v736_v21  ;;  %1198 = vmatprep.subr.mxu0 %v1007_v17  ;;  %v1004_v21 = vld [vmem:[%s5258_s3 + $0x5e0] sm:$0xff]  ;;  %v890_v17 = vld [vmem:[%s5258_s3 + $0x250] sm:$0xff] }
 0x17d   :  { %2683 = vmatprep.subr.mxu1 %v3843_v20  ;;  %1199 = vmatpush2.msra.mxu0 %v1006_v18  ;;  %v889_v18 = vld [vmem:[%s5258_s3 + $0x248] sm:$0xff] }
 0x17e   :  { %2684 = vmatpush3.msra.mxu1 %v735_v22  ;;  %1200 = vmatprep.subr.mxu0 %v1005_v19  ;;  %v1003_v22 = vld [vmem:[%s5258_s3 + $0x5d8] sm:$0xff]  ;;  %v888_v19 = vld [vmem:[%s5258_s3 + $0x240] sm:$0xff] }
 0x17f   :  { %2685 = vmatprep.subr.mxu1 %v3843_v20  ;;  %1201 = vmatpush2.msra.mxu0 %v1004_v21  ;;  %v887_v21 = vld [vmem:[%s5258_s3 + $0x238] sm:$0xff] }
 0x180   :  { %2686 = vmatpush3.msra.mxu1 %v734_v23  ;;  %1202 = vmatprep.subr.mxu0 %v1003_v22  ;;  %v1002_v23 = vld [vmem:[%s5258_s3 + $0x5d0] sm:$0xff] }
 0x181   :  { %2687 = vmatprep.subr.mxu1 %v3843_v20  ;;  %1203 = vmatpush2.msra.mxu0 %v1002_v23  ;;  %v886_v22 = vld [vmem:[%s5258_s3 + $0x230] sm:$0xff]  ;;  %v885_v23 = vld [vmem:[%s5258_s3 + $0x228] sm:$0xff] }
 0x182   :  { %2688 = vmatpush3.msra.mxu1 %v733_v24  ;;  %v1001_v24 = vld [vmem:[%s5258_s3 + $0x5c8] sm:$0xff] }
 0x183   :  { %2689 = vmatprep.subr.mxu1 %v3843_v20  ;;  %1204 = vmatprep.subr.mxu0 %v1001_v24  ;;  %v884_v24 = vld [vmem:[%s5258_s3 + $0x220] sm:$0xff] }
 0x184   :  { %2690 = vmatpush3.msra.mxu1 %v732_v25  ;;  %v1000_v25 = vld [vmem:[%s5258_s3 + $0x5c0] sm:$0xff] }
 0x185   :  { %2691 = vmatprep.subr.mxu1 %v3843_v20  ;;  %1205 = vmatpush2.msra.mxu0 %v1000_v25  ;;  %v883_v25 = vld [vmem:[%s5258_s3 + $0x218] sm:$0xff] }
 0x186   :  { %2692 = vmatpush3.msra.mxu1 %v731_v26  ;;  %v999_v26 = vld [vmem:[%s5258_s3 + $0x5b8] sm:$0xff] }
 0x187   :  { %2693 = vmatprep.subr.mxu1 %v3843_v20  ;;  %1206 = vmatprep.subr.mxu0 %v999_v26  ;;  %v882_v26 = vld [vmem:[%s5258_s3 + $0x210] sm:$0xff] }
 0x188   :  { %2694 = vmatpush3.msra.mxu1 %v730_v27  ;;  %v998_v27 = vld [vmem:[%s5258_s3 + $0x5b0] sm:$0xff] }
 0x189   :  { %2695 = vmatprep.subr.mxu1 %v3843_v20  ;;  %1207 = vmatpush2.msra.mxu0 %v998_v27  ;;  %v881_v27 = vld [vmem:[%s5258_s3 + $0x208] sm:$0xff] }
 0x18a   :  { %2696 = vmatpush3.msra.mxu1 %v729_v28  ;;  %v997_v28 = vld [vmem:[%s5258_s3 + $0x5a8] sm:$0xff] }
 0x18b   :  { %2697 = vmatprep.subr.mxu1 %v3843_v20  ;;  %1208 = vmatprep.subr.mxu0 %v997_v28  ;;  %v880_v28 = vld [vmem:[%s5258_s3 + $0x200] sm:$0xff] }
 0x18c   :  { %2698 = vmatpush3.msra.mxu1 %v728_v29  ;;  %v996_v29 = vld [vmem:[%s5258_s3 + $0x5a0] sm:$0xff] }
 0x18d   :  { %2699 = vmatprep.subr.mxu1 %v3843_v20  ;;  %1209 = vmatpush2.msra.mxu0 %v996_v29  ;;  %v943_v29 = vld [vmem:[%s5258_s3 + $0x3f8] sm:$0xff] }
 0x18e   :  { %2700 = vmatpush3.msra.mxu1 %v727_v30  ;;  %v995_v30 = vld [vmem:[%s5258_s3 + $0x598] sm:$0xff] }
 0x18f   :  { %2701 = vmatprep.subr.mxu1 %v3843_v20  ;;  %1210 = vmatprep.subr.mxu0 %v995_v30  ;;  %v942_v30 = vld [vmem:[%s5258_s3 + $0x3f0] sm:$0xff] }
 0x190   :  { %2702 = vmatpush3.msra.mxu1 %v726_v32  ;;  %1211 = vmatpush2.msra.mxu0 %v994_v31  ;;  %v992_v32 = vld [vmem:[%s5258_s3 + $0x580] sm:$0xff]  ;;  %v941_v31 = vld [vmem:[%s5258_s3 + $0x3e8] sm:$0xff] }
 0x191   :  { %2703 = vmatprep.subr.mxu1 %v3843_v20  ;;  %1212 = vmatprep.subr.mxu0 %v993_v62  ;;  %v940_v62 = vld [vmem:[%s5258_s3 + $0x3e0] sm:$0xff] }
 0x192   :  { %2704 = vmatpush3.msra.mxu1 %v725_v35  ;;  %1213 = vmatpush2.msra.mxu0 %v992_v32  ;;  %v989_v35 = vld [vmem:[%s5258_s3 + $0x568] sm:$0xff]  ;;  %v939_v32 = vld [vmem:[%s5258_s3 + $0x3d8] sm:$0xff] }
 0x193   :  { %2705 = vmatprep.subr.mxu1 %v3843_v20  ;;  %1214 = vmatprep.subr.mxu0 %v991_v33  ;;  %v938_v33 = vld [vmem:[%s5258_s3 + $0x3d0] sm:$0xff] }
 0x194   :  { %2706 = vmatpush3.msra.mxu1 %v724_v38  ;;  %1215 = vmatpush2.msra.mxu0 %v990_v34  ;;  %v986_v38 = vld [vmem:[%s5258_s3 + $0x550] sm:$0xff]  ;;  %v937_v34 = vld [vmem:[%s5258_s3 + $0x3c8] sm:$0xff] }
 0x195   :  { %2707 = vmatprep.subr.mxu1 %v3843_v20  ;;  %1216 = vmatprep.subr.mxu0 %v989_v35  ;;  %v936_v35 = vld [vmem:[%s5258_s3 + $0x3c0] sm:$0xff] }
 0x196   :  { %2708 = vmatpush3.msra.mxu1 %v723_v41  ;;  %1217 = vmatpush2.msra.mxu0 %v988_v36  ;;  %v983_v41 = vld [vmem:[%s5258_s3 + $0x538] sm:$0xff] }
 0x197   :  { %1095 = vmatprep.subr.mxu1 %v911_v43  ;;  %1218 = vmatprep.subr.mxu0 %v987_v37  ;;  %v981_v43 = vld [vmem:[%s5258_s3 + $0x528] sm:$0xff]  ;;  %v935_v36 = vld [vmem:[%s5258_s3 + $0x3b8] sm:$0xff]  ;;  %v934_v37 = vld [vmem:[%s5258_s3 + $0x3b0] sm:$0xff] }
 0x198   :  { %1219 = vmatpush2.msra.mxu0 %v986_v38  ;;  %v933_v38 = vld [vmem:[%s5258_s3 + $0x3a8] sm:$0xff] }
 0x199   :  { %1220 = vmatprep.subr.mxu0 %v985_v39  ;;  %v932_v39 = vld [vmem:[%s5258_s3 + $0x3a0] sm:$0xff] }
 0x19a   :  { %1221 = vmatpush2.msra.mxu0 %v984_v40  ;;  %v931_v40 = vld [vmem:[%s5258_s3 + $0x398] sm:$0xff] }
 0x19b   :  { %1222 = vmatprep.subr.mxu0 %v983_v41  ;;  %v930_v41 = vld [vmem:[%s5258_s3 + $0x390] sm:$0xff] }
 0x19c   :  { %1223 = vmatpush2.msra.mxu0 %v982_v42  ;;  %v929_v42 = vld [vmem:[%s5258_s3 + $0x388] sm:$0xff] }
 0x19d   :  { %1224 = vmatprep.subr.mxu0 %v981_v43  ;;  %v928_v43 = vld [vmem:[%s5258_s3 + $0x380] sm:$0xff] }
 0x19e   :  { %1225 = vmatpush2.msra.mxu0 %v980_v44  ;;  %v927_v44 = vld [vmem:[%s5258_s3 + $0x378] sm:$0xff] }
 0x19f   :  { %1226 = vmatprep.subr.mxu0 %v979_v45  ;;  %v926_v45 = vld [vmem:[%s5258_s3 + $0x370] sm:$0xff] }
 0x1a0   :  { %1227 = vmatpush2.msra.mxu0 %v978_v48  ;;  %v925_v48 = vld [vmem:[%s5258_s3 + $0x368] sm:$0xff] }
 0x1a1   :  { %1228 = vmatprep.subr.mxu0 %v977_v50  ;;  %v924_v50 = vld [vmem:[%s5258_s3 + $0x360] sm:$0xff] }
 0x1a2   :  { %1229 = vmatpush2.msra.mxu0 %v976_v1  ;;  %v923_v1 = vld [vmem:[%s5258_s3 + $0x358] sm:$0xff] }
 0x1a3   :  { %1231 = vmatmul.mubr.f32.vlgmr.msra.gmra.mxu0 %v3632_v13  ;;  %v910_v13 = vld [vmem:[%s5258_s3 + $0x2f0] sm:$0xff] }
 0x1a4   :  { %1694 = vmatprep.mubr.f32.mxu0 %v3843_v20 }
 0x237   :  { %v2552_v10 = vpop.f32.mrf.mxu1 }
 0x239   :  { %v2553_v53 = vpop.f32.mrf.mxu1 }
 0x23a   :  { %v2554_v54 = vadd.f32 %v2553_v53, %v2552_v10  ;;  %v922_v10 = vld [vmem:[%s5258_s3 + $0x350] sm:$0xff]  ;;  %v920_v53 = vld [vmem:[%s5258_s3 + $0x340] sm:$0xff] }
 0x23c   :  { %v719_v55 = vadd.f32 %v2554_v54, %v2509_v52  ;;  %v921_v52 = vld [vmem:[%s5258_s3 + $0x348] sm:$0xff]  ;;  %v919_v54 = vld [vmem:[%s5258_s3 + $0x338] sm:$0xff] }
 0x23e   :  { %v722_v56 = vmax.f32 %v719_v55, 0.0  ;;  %v918_v55 = vld [vmem:[%s5258_s3 + $0x330] sm:$0xff] }
 0x240   :  { %2710 = vmatmul.mubr.f32.vlgmr.msra.gmra.mxu1 %v722_v56  ;;  %v917_v56 = vld [vmem:[%s5258_s3 + $0x328] sm:$0xff] }
 0x241   :  { %1096 = vmatpush1.msra.mxu1 %v910_v13  ;;  %1159 = vmatprep.mubr.f32.mxu1 %v2814_v59  ;;  %v916_v13 = vld [vmem:[%s5258_s3 + $0x320] sm:$0xff] }
 0x242   :  { %1097 = vmatprep.subr.mxu1 %v909_v15  ;;  %v915_v15 = vld [vmem:[%s5258_s3 + $0x318] sm:$0xff]  ;;  %v912_v59 = vld [vmem:[%s5258_s3 + $0x300] sm:$0xff] }
 0x243   :  { %1098 = vmatpush1.msra.mxu1 %v908_v57  ;;  %v914_v57 = vld [vmem:[%s5258_s3 + $0x310] sm:$0xff] }
 0x244   :  { %1099 = vmatprep.subr.mxu1 %v907_v58  ;;  %v913_v58 = vld [vmem:[%s5258_s3 + $0x308] sm:$0xff] }
 0x245   :  { %1100 = vmatpush1.msra.mxu1 %v906_v60  ;;  %v1011_v60 = vld [vmem:[%s5258_s3 + $0x618] sm:$0xff] }
 0x246   :  { %1101 = vmatprep.subr.mxu1 %v905_v61  ;;  %v1010_v61 = vld [vmem:[%s5258_s3 + $0x610] sm:$0xff] }
 0x247   :  { %1102 = vmatpush1.msra.mxu1 %v904_v63  ;;  %v1009_v63 = vld [vmem:[%s5258_s3 + $0x608] sm:$0xff] }
 0x248   :  { %1103 = vmatprep.subr.mxu1 %v903_v0  ;;  %v2815_v0 = vld [vmem:[%s5255_s0 + $0x10] sm:$0xff] }
 0x249   :  { %1104 = vmatpush1.msra.mxu1 %v902_v2  ;;  %v1008_v2 = vld [vmem:[%s5258_s3 + $0x600] sm:$0xff] }
 0x24a   :  { %1105 = vmatprep.subr.mxu1 %v901_v3  ;;  %v2816_v3 = vld [vmem:[%s5255_s0 + $0x30] sm:$0xff] }
 0x24b   :  { %1106 = vmatpush1.msra.mxu1 %v900_v4  ;;  %v1341_v4 = vld [vmem:[#allocation5 + $0xf8] sm:$0xff] }
 0x24c   :  { %1107 = vmatprep.subr.mxu1 %v899_v5  ;;  %v1325_v5 = vld [vmem:[#allocation5 + $0x78] sm:$0xff] }
 0x24d   :  { %1108 = vmatpush1.msra.mxu1 %v898_v6  ;;  %v1340_v6 = vld [vmem:[#allocation5 + $0xf0] sm:$0xff] }
 0x24e   :  { %1109 = vmatprep.subr.mxu1 %v897_v7  ;;  %v1324_v7 = vld [vmem:[#allocation5 + $0x70] sm:$0xff] }
 0x24f   :  { %1110 = vmatpush1.msra.mxu1 %v896_v8  ;;  %v1339_v8 = vld [vmem:[#allocation5 + $0xe8] sm:$0xff] }
 0x250   :  { %1111 = vmatprep.subr.mxu1 %v895_v9  ;;  %v1323_v9 = vld [vmem:[#allocation5 + $0x68] sm:$0xff] }
 0x251   :  { %1112 = vmatpush1.msra.mxu1 %v894_v11  ;;  %v1338_v11 = vld [vmem:[#allocation5 + $0xe0] sm:$0xff] }
 0x252   :  { %1113 = vmatprep.subr.mxu1 %v893_v12  ;;  %v1322_v12 = vld [vmem:[#allocation5 + $0x60] sm:$0xff] }
 0x253   :  { %1114 = vmatpush1.msra.mxu1 %v892_v14  ;;  %v1337_v14 = vld [vmem:[#allocation5 + $0xd8] sm:$0xff] }
 0x254   :  { %1115 = vmatprep.subr.mxu1 %v891_v16  ;;  %v1321_v16 = vld [vmem:[#allocation5 + $0x58] sm:$0xff] }
 0x255   :  { %1116 = vmatpush1.msra.mxu1 %v890_v17  ;;  %v1336_v17 = vld [vmem:[#allocation5 + $0xd0] sm:$0xff] }
 0x256   :  { %1117 = vmatprep.subr.mxu1 %v889_v18  ;;  %v1335_v18 = vld [vmem:[#allocation5 + $0xc8] sm:$0xff] }
 0x257   :  { %1118 = vmatpush1.msra.mxu1 %v888_v19  ;;  %v1319_v19 = vld [vmem:[#allocation5 + $0x48] sm:$0xff] }
 0x258   :  { %1119 = vmatprep.subr.mxu1 %v887_v21  ;;  %v1334_v21 = vld [vmem:[#allocation5 + $0xc0] sm:$0xff] }
 0x259   :  { %1120 = vmatpush1.msra.mxu1 %v886_v22  ;;  %v1318_v22 = vld [vmem:[#allocation5 + $0x40] sm:$0xff] }
 0x25a   :  { %1121 = vmatprep.subr.mxu1 %v885_v23  ;;  %v1333_v23 = vld [vmem:[#allocation5 + $0xb8] sm:$0xff] }
 0x25b   :  { %1122 = vmatpush1.msra.mxu1 %v884_v24  ;;  %v1317_v24 = vld [vmem:[#allocation5 + $0x38] sm:$0xff] }
 0x25c   :  { %1123 = vmatprep.subr.mxu1 %v883_v25  ;;  %v1332_v25 = vld [vmem:[#allocation5 + $0xb0] sm:$0xff] }
 0x25d   :  { %1124 = vmatpush1.msra.mxu1 %v882_v26  ;;  %v1316_v26 = vld [vmem:[#allocation5 + $0x30] sm:$0xff] }
 0x25e   :  { %1125 = vmatprep.subr.mxu1 %v881_v27  ;;  %v1331_v27 = vld [vmem:[#allocation5 + $0xa8] sm:$0xff] }
 0x25f   :  { %1126 = vmatpush1.msra.mxu1 %v880_v28  ;;  %v1315_v28 = vld [vmem:[#allocation5 + $0x28] sm:$0xff] }
 0x260   :  { %1127 = vmatprep.subr.mxu1 %v943_v29  ;;  %v1330_v29 = vld [vmem:[#allocation5 + $0xa0] sm:$0xff] }
 0x261   :  { %1128 = vmatpush2.msra.mxu1 %v942_v30  ;;  %v1314_v30 = vld [vmem:[#allocation5 + $0x20] sm:$0xff] }
 0x262   :  { %1129 = vmatprep.subr.mxu1 %v941_v31  ;;  %v1329_v31 = vld [vmem:[#allocation5 + $0x98] sm:$0xff] }
 0x263   :  { %1130 = vmatpush2.msra.mxu1 %v940_v62  ;;  %v1313_v62 = vld [vmem:[#allocation5 + $0x18] sm:$0xff] }
 0x264   :  { %1131 = vmatprep.subr.mxu1 %v939_v32  ;;  %v1328_v32 = vld [vmem:[#allocation5 + $0x90] sm:$0xff] }
 0x265   :  { %1132 = vmatpush2.msra.mxu1 %v938_v33  ;;  %v1312_v33 = vld [vmem:[#allocation5 + $0x10] sm:$0xff] }
 0x266   :  { %1133 = vmatprep.subr.mxu1 %v937_v34  ;;  %v1327_v34 = vld [vmem:[#allocation5 + $0x88] sm:$0xff] }
 0x267   :  { %1134 = vmatpush2.msra.mxu1 %v936_v35  ;;  %v1311_v35 = vld [vmem:[#allocation5 + $0x8] sm:$0xff] }
 0x268   :  { %1135 = vmatprep.subr.mxu1 %v935_v36  ;;  %v1326_v36 = vld [vmem:[#allocation5 + $0x80] sm:$0xff] }
 0x269   :  { %1136 = vmatpush2.msra.mxu1 %v934_v37  ;;  %v1310_v37 = vld [vmem:[#allocation5] sm:$0xff] }
 0x26a   :  { %1137 = vmatprep.subr.mxu1 %v933_v38  ;;  %v2510_v38 = vld [vmem:[%s5266_s11 + $0x3] ss:$0 sm:$0xff] }
 0x26b   :  { %1138 = vmatpush2.msra.mxu1 %v932_v39 }
 0x26c   :  { %1139 = vmatprep.subr.mxu1 %v931_v40 }
 0x26d   :  { %1140 = vmatpush2.msra.mxu1 %v930_v41 }
 0x26e   :  { %1141 = vmatprep.subr.mxu1 %v929_v42 }
 0x26f   :  { %1142 = vmatpush2.msra.mxu1 %v928_v43  ;;  %v1516_v43 = vpop.permute.xlu0 %1515 }
 0x270   :  { %1143 = vmatprep.subr.mxu1 %v927_v44 }
 0x271   :  { %1144 = vmatpush2.msra.mxu1 %v926_v45 }
 0x272   :  { %1145 = vmatprep.subr.mxu1 %v925_v48  ;;  %v1012_v48 = vld [vmem:[%s5266_s11 + $0x4] sm:$0x3] }
 0x273   :  { %1146 = vmatpush2.msra.mxu1 %v924_v50  ;;  %v1090_v50 = vpop.f32.mrf.mxu0 }
 0x274   :  { %1147 = vmatprep.subr.mxu1 %v923_v1  ;;  %v1017_v1 = vrot.slane %v1012_v48, %v3822_v47 }
 0x275   :  { %1148 = vmatpush2.msra.mxu1 %v922_v10  ;;  %v1021_v10 = vrot.slane %v1012_v48, %v3828_v49  ;;  %v1611_v48 = vld [vmem:[#allocation7 + $0xc8] sm:$0xff] }
 0x276   :  { %1149 = vmatprep.subr.mxu1 %v921_v52  ;;  %v1092_v52 = vpop.f32.mrf.mxu0 }
 0x277   :  { %1150 = vmatpush2.msra.mxu1 %v920_v53  ;;  %v1091_v53 = vadd.f32 %v1090_v50, %v1017_v1  ;;  %v1610_v50 = vld [vmem:[#allocation7 + $0xc0] sm:$0xff]  ;;  %v1609_v1 = vld [vmem:[#allocation7 + $0xb8] sm:$0xff] }
 0x278   :  { %1151 = vmatprep.subr.mxu1 %v919_v54 }
 0x279   :  { %1152 = vmatpush2.msra.mxu1 %v918_v55  ;;  %v1232_v55 = vpop.f32.mrf.mxu0 }
 0x27a   :  { %1153 = vmatprep.subr.mxu1 %v917_v56  ;;  %v1093_v56 = vadd.f32 %v1092_v52, %v1021_v10  ;;  %v1608_v10 = vld [vmem:[#allocation7 + $0xb0] sm:$0xff]  ;;  %v1607_v52 = vld [vmem:[#allocation7 + $0xa8] sm:$0xff] }
 0x27b   :  { %1154 = vmatpush2.msra.mxu1 %v916_v13 }
 0x27c   :  { %1155 = vmatprep.subr.mxu1 %v915_v15 }
 0x27d   :  { %1156 = vmatpush2.msra.mxu1 %v914_v57 }
 0x27e   :  { %1157 = vmatprep.subr.mxu1 %v913_v58 }
 0x27f   :  { %1158 = vmatpush2.msra.mxu1 %v912_v59  ;;  %v1234_v59 = vpop.f32.mrf.mxu0 }
 0x280   :  { %1160 = vmatmul.mubr.f32.vlgmr.msra.gmra.mxu1 %v2815_v0  ;;  %1265 = vmatprep.subr.mxu1 %v1011_v60 }
 0x281   :  { %1266 = vmatpush1.msra.mxu1 %v1010_v61  ;;  %1301 = vmatprep.mubr.f32.mxu1 %v3843_v20 }
 0x282   :  { %1267 = vmatprep.subr.mxu1 %v1009_v63 }
 0x283   :  { %1268 = vmatpush1.msra.mxu1 %v1008_v2 }
 0x284   :  { %2511 = vmatmul.mubr.msk.f32.vlgmr.msra.gmra.mxu1 %vm309_vm0, %v2816_v3  ;;  %2572 = vmatprep.subr.mxu1 %v1341_v4 }
 0x285   :  { %2573 = vmatpush3.msra.mxu1 %v1325_v5  ;;  %v1435_v5 = vld [vmem:[%s5262_s7 + $0x78] sm:$0xff] }
 0x286   :  { %2574 = vmatprep.subr.mxu1 %v1340_v6  ;;  %v1434_v6 = vld [vmem:[%s5262_s7 + $0x70] sm:$0xff] }
 0x287   :  { %2575 = vmatpush3.msra.mxu1 %v1324_v7  ;;  %v1433_v7 = vld [vmem:[%s5262_s7 + $0x68] sm:$0xff] }
 0x288   :  { %2576 = vmatprep.subr.mxu1 %v1339_v8  ;;  %v1432_v8 = vld [vmem:[%s5262_s7 + $0x60] sm:$0xff] }
 0x289   :  { %2577 = vmatpush3.msra.mxu1 %v1323_v9  ;;  %v1431_v9 = vld [vmem:[%s5262_s7 + $0x58] sm:$0xff] }
 0x28a   :  { %2578 = vmatprep.subr.mxu1 %v1338_v11  ;;  %v1430_v11 = vld [vmem:[%s5262_s7 + $0x50] sm:$0xff] }
 0x28b   :  { %2579 = vmatpush3.msra.mxu1 %v1322_v12  ;;  %v1429_v12 = vld [vmem:[%s5262_s7 + $0x48] sm:$0xff] }
 0x28c   :  { %2580 = vmatprep.subr.mxu1 %v1337_v14  ;;  %v1428_v14 = vld [vmem:[%s5262_s7 + $0x40] sm:$0xff] }
 0x28d   :  { %2581 = vmatpush3.msra.mxu1 %v1321_v16  ;;  %v1527_v16 = vpop.permute.xlu1 %1526 }
 0x28e   :  { %2582 = vmatprep.subr.mxu1 %v1336_v17  ;;  %v1427_v17 = vld [vmem:[%s5262_s7 + $0x38] sm:$0xff] }
 0x28f   :  { %2583 = vmatpush3.msra.mxu1 %v1320_v51  ;;  %v1426_v51 = vld [vmem:[%s5262_s7 + $0x30] sm:$0xff] }
 0x290   :  { %2584 = vmatprep.subr.mxu1 %v1335_v18 }
 0x291   :  { %2585 = vmatpush3.msra.mxu1 %v1319_v19  ;;  %v1425_v19 = vld [vmem:[%s5262_s7 + $0x28] sm:$0xff] }
 0x292   :  { %2586 = vmatprep.subr.mxu1 %v1334_v21 }
 0x293   :  { %2587 = vmatpush3.msra.mxu1 %v1318_v22  ;;  %v1424_v22 = vld [vmem:[%s5262_s7 + $0x20] sm:$0xff] }
 0x294   :  { %2588 = vmatprep.subr.mxu1 %v1333_v23  ;;  %v1423_v23 = vld [vmem:[%s5262_s7 + $0x18] sm:$0xff] }
 0x295   :  { %2589 = vmatpush3.msra.mxu1 %v1317_v24  ;;  %v1422_v24 = vld [vmem:[%s5262_s7 + $0x10] sm:$0xff] }
 0x296   :  { %2590 = vmatprep.subr.mxu1 %v1332_v25  ;;  %v1421_v25 = vld [vmem:[%s5262_s7 + $0x8] sm:$0xff] }
 0x297   :  { %2591 = vmatpush3.msra.mxu1 %v1316_v26  ;;  %v1420_v26 = vld [vmem:[%s5262_s7] sm:$0xff]  ;;  %s2939_s7 = smov 4  }
 0x298   :  { %2592 = vmatprep.subr.mxu1 %v1331_v27 }
 0x299   :  { %2593 = vmatpush3.msra.mxu1 %v1315_v28  ;;  %v2512_v28 = vld [vmem:[%s5266_s11 + $0x6] ss:$0 sm:$0xff] }
 0x29a   :  { %2594 = vmatprep.subr.mxu1 %v1330_v29 }
 0x29b   :  { %2595 = vmatpush3.msra.mxu1 %v1314_v30 }
 0x29c   :  { %2596 = vmatprep.subr.mxu1 %v1329_v31 }
 0x29d   :  { %2597 = vmatpush3.msra.mxu1 %v1313_v62 }
 0x29e   :  { %2598 = vmatprep.subr.mxu1 %v1328_v32  ;;  %v2938_v32 = vmov 1  }
 0x29f   :  { %2599 = vmatpush3.msra.mxu1 %v1312_v33  ;;  %2806 = vset.pattern.permute.xlu0 %v2938_v32  ;;  %v2513_v33 = vld [vmem:[%s5266_s11 + $0x7] ss:$0 sm:$0xff] }
 0x2a0   :  { %2600 = vmatprep.subr.mxu1 %v1327_v34 }
 0x2a1   :  { %2601 = vmatpush3.msra.mxu1 %v1311_v35 }
 0x2a2   :  { %2602 = vmatprep.subr.mxu1 %v1326_v36 }
 0x2a3   :  { %2603 = vmatpush3.msra.mxu1 %v1310_v37 }
 0x2a4   :  { %2712 = vmatprep.subr.mxu1 %v3843_v20 }
 0x300   :  { %v812_v39 = vpop.f32.mrf.mxu1 }
 0x301   :  { %v4356_v40 = vadd.f32 %v2510_v38, %v812_v39 }
 0x302   :  { %v2711_v41 = vpop.f32.mrf.mxu1 }
 0x303   :  { %v1513_v42 = vmul.f32 1.442695, %v4356_v40  ;;  %2448 = vst.msk [vmem:[#allocation8] sm:$0xff] %vm2447_vm2, %v4356_v40  ;;  %v1616_v41 = vld [vmem:[#allocation7 + $0xf0] sm:$0xff] }
 0x305   :  { %2808 = vpow2.f32 %v1513_v42  ;;  %v1615_v42 = vld [vmem:[#allocation7 + $0xe8] sm:$0xff] }
 0x312   :  { %v2809_v44 = vpop.eup %2808 }
 0x313   :  { %v1518_v45 = vmul.f32 %v2809_v44, %v1516_v43  ;;  %v1614_v43 = vld [vmem:[#allocation7 + $0xe0] sm:$0xff]  ;;  %v1613_v44 = vld [vmem:[#allocation7 + $0xd8] sm:$0xff] }
 0x315   :  { %1520 = vrot.lane.b32.xlu1 %v1518_v45, %s2937_s2  ;;  %v1612_v45 = vld [vmem:[#allocation7 + $0xd0] sm:$0xff] }
 0x340   :  { %v1161_v54 = vpop.f32.mrf.mxu1 }
 0x341   :  { %v1162_v13 = vadd.f32 %v1161_v54, %v1091_v53  ;;  %v1606_v53 = vld [vmem:[#allocation7 + $0xa0] sm:$0xff]  ;;  %v1605_v54 = vld [vmem:[#allocation7 + $0x98] sm:$0xff] }
 0x342   :  { %v1163_v15 = vpop.f32.mrf.mxu1 }
 0x343   :  { %v1233_v57 = vadd.f32 %v1232_v55, %v1162_v13  ;;  %v1164_v58 = vadd.f32 %v1163_v15, %v1093_v56  ;;  %v1604_v55 = vld [vmem:[#allocation7 + $0x90] sm:$0xff]  ;;  %v1603_v56 = vld [vmem:[#allocation7 + $0x88] sm:$0xff]  ;;  %v1602_v13 = vld [vmem:[#allocation7 + $0x80] sm:$0xff] }
 0x344   :  { %v1303_v60 = vpop.f32.mrf.mxu1  ;;  %v1601_v15 = vld [vmem:[#allocation7 + $0x78] sm:$0xff] }
 0x345   :  { %v1235_v61 = vadd.f32 %v1234_v59, %v1164_v58  ;;  %v1304_v63 = vadd.f32 %v1303_v60, %v1233_v57  ;;  %v1600_v57 = vld [vmem:[#allocation7 + $0x70] sm:$0xff]  ;;  %v1599_v58 = vld [vmem:[#allocation7 + $0x68] sm:$0xff]  ;;  %v1598_v59 = vld [vmem:[#allocation7 + $0x60] sm:$0xff] }
 0x346   :  { %v1305_v0 = vpop.f32.mrf.mxu1  ;;  %v1597_v60 = vld [vmem:[#allocation7 + $0x58] sm:$0xff] }
 0x347   :  { %v1306_v2 = vadd.f32 %v1305_v0, %v1235_v61  ;;  %v1308_v4 = vmax.f32 %v1304_v63, 0.0  ;;  %v1596_v63 = vld [vmem:[#allocation7 + $0x50] sm:$0xff] }
 0x349   :  { %v1309_v3 = vmax.f32 %v1306_v2, 0.0  ;;  %v1595_v2 = vld [vmem:[#allocation7 + $0x48] sm:$0xff] }
 0x34b   :  { %1413 = vmatprep.mubr.f32.mxu1 %v1309_v3  ;;  %v1594_v3 = vld [vmem:[#allocation7 + $0x40] sm:$0xff] }
 0x34c   :  { %1414 = vmatmul.mubr.f32.vlgmr.msra.gmra.mxu1 %v1308_v4  ;;  %v1593_v4 = vld [vmem:[#allocation7 + $0x38] sm:$0xff] }
 0x34d   :  { %2713 = vmatpush3.msra.mxu1 %v1435_v5  ;;  %2744 = vmatprep.mubr.msk.f32.mxu1 %vm2934_vm1, %v3843_v20  ;;  %v1592_v5 = vld [vmem:[#allocation7 + $0x30] sm:$0xff] }
 0x34e   :  { %2714 = vmatprep.subr.mxu1 %v3843_v20 }
 0x34f   :  { %2715 = vmatpush3.msra.mxu1 %v1434_v6  ;;  %v1591_v6 = vld [vmem:[#allocation7 + $0x28] sm:$0xff] }
 0x350   :  { %2716 = vmatprep.subr.mxu1 %v3843_v20 }
 0x351   :  { %2717 = vmatpush3.msra.mxu1 %v1433_v7  ;;  %v1590_v7 = vld [vmem:[#allocation7 + $0x20] sm:$0xff] }
 0x352   :  { %2718 = vmatprep.subr.mxu1 %v3843_v20 }
 0x353   :  { %2719 = vmatpush3.msra.mxu1 %v1432_v8  ;;  %v1589_v8 = vld [vmem:[#allocation7 + $0x18] sm:$0xff] }
 0x354   :  { %2720 = vmatprep.subr.mxu1 %v3843_v20 }
 0x355   :  { %2721 = vmatpush3.msra.mxu1 %v1431_v9  ;;  %v1588_v9 = vld [vmem:[#allocation7 + $0x10] sm:$0xff] }
 0x356   :  { %2722 = vmatprep.subr.mxu1 %v3843_v20 }
 0x357   :  { %2723 = vmatpush3.msra.mxu1 %v1430_v11  ;;  %v1587_v11 = vld [vmem:[#allocation7 + $0x8] sm:$0xff] }
 0x358   :  { %2724 = vmatprep.subr.mxu1 %v3843_v20 }
 0x359   :  { %2725 = vmatpush3.msra.mxu1 %v1429_v12  ;;  %v1586_v12 = vld [vmem:[#allocation7] sm:$0xff] }
 0x35a   :  { %2726 = vmatprep.subr.mxu1 %v3843_v20 }
 0x35b   :  { %2727 = vmatpush3.msra.mxu1 %v1428_v14  ;;  %v1809_v14 = vld [vmem:[%s5264_s9 + $0x350] sm:$0xff] }
 0x35c   :  { %2728 = vmatprep.subr.mxu1 %v3843_v20 }
 0x35d   :  { %2729 = vmatpush3.msra.mxu1 %v1427_v17  ;;  %v1808_v17 = vld [vmem:[%s5264_s9 + $0x348] sm:$0xff] }
 0x35e   :  { %2730 = vmatprep.subr.mxu1 %v3843_v20 }
 0x35f   :  { %2731 = vmatpush3.msra.mxu1 %v1426_v51 }
 0x360   :  { %2732 = vmatprep.subr.mxu1 %v3843_v20 }
 0x361   :  { %2733 = vmatpush3.msra.mxu1 %v1425_v19  ;;  %v1801_v19 = vld [vmem:[%s5264_s9 + $0x310] sm:$0xff] }
 0x362   :  { %2734 = vmatprep.subr.mxu1 %v3843_v20 }
 0x363   :  { %2735 = vmatpush3.msra.mxu1 %v1424_v22  ;;  %v1794_v22 = vld [vmem:[%s5264_s9 + $0x2d8] sm:$0xff] }
 0x364   :  { %2736 = vmatprep.subr.mxu1 %v3843_v20 }
 0x365   :  { %2737 = vmatpush3.msra.mxu1 %v1423_v23 }
 0x366   :  { %2738 = vmatprep.subr.mxu1 %v3843_v20 }
 0x367   :  { %2739 = vmatpush3.msra.mxu1 %v1422_v24  ;;  %v1788_v24 = vld [vmem:[%s5264_s9 + $0x2a8] sm:$0xff] }
 0x368   :  { %2740 = vmatprep.subr.mxu1 %v3843_v20 }
 0x369   :  { %2741 = vmatpush3.msra.mxu1 %v1421_v25  ;;  %v1787_v25 = vld [vmem:[%s5264_s9 + $0x2a0] sm:$0xff] }
 0x36a   :  { %2742 = vmatprep.subr.mxu1 %v3843_v20 }
 0x36b   :  { %2743 = vmatpush3.msra.mxu1 %v1420_v26  ;;  %v1781_v26 = vld [vmem:[%s5264_s9 + $0x270] sm:$0xff] }
 0x36c   :  { %1964 = vmatprep.subr.mxu1 %v1809_v14  ;;  %v1563_v14 = vsub.s32 2, %v3819_v46 }
 0x387   :  { %v1521_v18 = vpop.permute.xlu1 %1520 }
 0x388   :  { %v4411_v21 = vadd.f32 %v1521_v18, %v4356_v40  ;;  %v1617_v40 = vld [vmem:[#allocation7 + $0xf8] sm:$0xff] }
 0x389   :  { %1630 = vmatprep.subr.mxu0 %v1617_v40  ;;  %v1802_v18 = vld [vmem:[%s5264_s9 + $0x318] sm:$0xff]  ;;  %v1731_v40 = vld [vmem:[%s5264_s9 + $0xe0] sm:$0xff] }
 0x38a   :  { %1538 = vperm.xlu1 %2805, %v4411_v21   ;;  %1631 = vmatpush1.msra.mxu0 %v1616_v41  ;;  %v1725_v41 = vld [vmem:[%s5264_s9 + $0xb0] sm:$0xff] }
 0x38b   :  { %1632 = vmatprep.subr.mxu0 %v1615_v42  ;;  %v1724_v42 = vld [vmem:[%s5264_s9 + $0xa8] sm:$0xff] }
 0x38c   :  { %1633 = vmatpush1.msra.mxu0 %v1614_v43  ;;  %v1718_v43 = vld [vmem:[%s5264_s9 + $0x78] sm:$0xff] }
 0x38d   :  { %1634 = vmatprep.subr.mxu0 %v1613_v44  ;;  %v1717_v44 = vld [vmem:[%s5264_s9 + $0x70] sm:$0xff] }
 0x38e   :  { %1635 = vmatpush1.msra.mxu0 %v1612_v45  ;;  %v1711_v45 = vld [vmem:[%s5264_s9 + $0x40] sm:$0xff] }
 0x38f   :  { %1636 = vmatprep.subr.mxu0 %v1611_v48  ;;  %v1710_v48 = vld [vmem:[%s5264_s9 + $0x38] sm:$0xff] }
 0x390   :  { %1637 = vmatpush1.msra.mxu0 %v1610_v50  ;;  %v1704_v50 = vld [vmem:[%s5264_s9 + $0x8] sm:$0xff] }
 0x391   :  { %1638 = vmatprep.subr.mxu0 %v1609_v1  ;;  %v1703_v1 = vld [vmem:[%s5264_s9] sm:$0xff] }
 0x392   :  { %1639 = vmatpush1.msra.mxu0 %v1608_v10  ;;  %v1921_v10 = vld [vmem:[%s5264_s9 + $0x6d0] sm:$0xff] }
 0x393   :  { %1640 = vmatprep.subr.mxu0 %v1607_v52  ;;  %v1920_v52 = vld [vmem:[%s5264_s9 + $0x6c8] sm:$0xff] }
 0x394   :  { %1641 = vmatpush1.msra.mxu0 %v1606_v53  ;;  %v1914_v53 = vld [vmem:[%s5264_s9 + $0x698] sm:$0xff] }
 0x395   :  { %1642 = vmatprep.subr.mxu0 %v1605_v54  ;;  %v1913_v54 = vld [vmem:[%s5264_s9 + $0x690] sm:$0xff] }
 0x396   :  { %1643 = vmatpush1.msra.mxu0 %v1604_v55  ;;  %v1907_v55 = vld [vmem:[%s5264_s9 + $0x660] sm:$0xff] }
 0x397   :  { %1644 = vmatprep.subr.mxu0 %v1603_v56  ;;  %v1906_v56 = vld [vmem:[%s5264_s9 + $0x658] sm:$0xff] }
 0x398   :  { %1645 = vmatpush1.msra.mxu0 %v1602_v13  ;;  %v1900_v13 = vld [vmem:[%s5264_s9 + $0x628] sm:$0xff] }
 0x399   :  { %1646 = vmatprep.subr.mxu0 %v1601_v15  ;;  %v1899_v15 = vld [vmem:[%s5264_s9 + $0x620] sm:$0xff] }
 0x39a   :  { %1647 = vmatpush1.msra.mxu0 %v1600_v57  ;;  %v1893_v57 = vld [vmem:[%s5264_s9 + $0x5f0] sm:$0xff] }
 0x39b   :  { %1648 = vmatprep.subr.mxu0 %v1599_v58  ;;  %v1892_v58 = vld [vmem:[%s5264_s9 + $0x5e8] sm:$0xff] }
 0x39c   :  { %1649 = vmatpush1.msra.mxu0 %v1598_v59  ;;  %v1886_v59 = vld [vmem:[%s5264_s9 + $0x5b8] sm:$0xff] }
 0x39d   :  { %1650 = vmatprep.subr.mxu0 %v1597_v60  ;;  %v1885_v60 = vld [vmem:[%s5264_s9 + $0x5b0] sm:$0xff] }
 0x39e   :  { %1651 = vmatpush1.msra.mxu0 %v1596_v63  ;;  %v1878_v63 = vld [vmem:[%s5264_s9 + $0x578] sm:$0xff] }
 0x39f   :  { %1652 = vmatprep.subr.mxu0 %v1595_v2  ;;  %v1871_v2 = vld [vmem:[%s5264_s9 + $0x540] sm:$0xff] }
 0x3a0   :  { %1653 = vmatpush1.msra.mxu0 %v1594_v3  ;;  %v1865_v3 = vld [vmem:[%s5264_s9 + $0x510] sm:$0xff] }
 0x3a1   :  { %1654 = vmatprep.subr.mxu0 %v1593_v4  ;;  %v1864_v4 = vld [vmem:[%s5264_s9 + $0x508] sm:$0xff] }
 0x3a2   :  { %1655 = vmatpush1.msra.mxu0 %v1592_v5  ;;  %v1858_v5 = vld [vmem:[%s5264_s9 + $0x4d8] sm:$0xff] }
 0x3a3   :  { %1656 = vmatprep.subr.mxu0 %v1591_v6  ;;  %v1857_v6 = vld [vmem:[%s5264_s9 + $0x4d0] sm:$0xff] }
 0x3a4   :  { %1657 = vmatpush1.msra.mxu0 %v1590_v7  ;;  %v1851_v7 = vld [vmem:[%s5264_s9 + $0x4a0] sm:$0xff] }
 0x3a5   :  { %1658 = vmatprep.subr.mxu0 %v1589_v8  ;;  %v1850_v8 = vld [vmem:[%s5264_s9 + $0x498] sm:$0xff] }
 0x3a6   :  { %1659 = vmatpush1.msra.mxu0 %v1588_v9  ;;  %v1844_v9 = vld [vmem:[%s5264_s9 + $0x468] sm:$0xff] }
 0x3a7   :  { %1660 = vmatprep.subr.mxu0 %v1587_v11  ;;  %v1843_v11 = vld [vmem:[%s5264_s9 + $0x460] sm:$0xff] }
 0x3a8   :  { %1661 = vmatpush1.msra.mxu0 %v1586_v12  ;;  %v1837_v12 = vld [vmem:[%s5264_s9 + $0x430] sm:$0xff] }
 0x40c   :  { %v2604_v27 = vpop.f32.mrf.mxu1 }
 0x40e   :  { %v2605_v29 = vpop.f32.mrf.mxu1 }
 0x40f   :  { %v2606_v30 = vadd.f32 %v2605_v29, %v2604_v27  ;;  %v1780_v27 = vld [vmem:[%s5264_s9 + $0x268] sm:$0xff]  ;;  %v1773_v29 = vld [vmem:[%s5264_s9 + $0x230] sm:$0xff] }
 0x411   :  { %v1416_v31 = vadd.f32 %v2606_v30, %v2512_v28  ;;  %v1774_v28 = vld [vmem:[%s5264_s9 + $0x238] sm:$0xff]  ;;  %v1767_v30 = vld [vmem:[%s5264_s9 + $0x200] sm:$0xff] }
 0x413   :  { %v1419_v62 = vmax.f32 %v1416_v31, 0.0  ;;  %v1766_v31 = vld [vmem:[%s5264_s9 + $0x1f8] sm:$0xff] }
 0x415   :  { %2745 = vmatmul.mubr.f32.vlgmr.msra.gmra.mxu1 %v1419_v62  ;;  %v1760_v62 = vld [vmem:[%s5264_s9 + $0x1c8] sm:$0xff] }
 0x416   :  { %1965 = vmatpush1.msra.mxu1 %v1808_v17  ;;  %v4627_v17 = vpop.permute.xlu1 %1538 }
 0x417   :  { %1966 = vmatprep.subr.mxu1 %v1802_v18 }
 0x418   :  { %1967 = vmatpush1.msra.mxu1 %v1801_v19 }
 0x4d5   :  { %v1509_v34 = vpop.f32.mrf.mxu1 }
 0x4d6   :  { %v1510_v35 = vadd.f32 %v2513_v33, %v1509_v34  ;;  %v1753_v33 = vld [vmem:[%s5264_s9 + $0x190] sm:$0xff]  ;;  %v1752_v34 = vld [vmem:[%s5264_s9 + $0x188] sm:$0xff] }
 0x4d7   :  { %v2746_v36 = vpop.f32.mrf.mxu1 }
 0x4d8   :  { %v1524_v37 = vmul.f32 1.442695, %v1510_v35  ;;  %v1745_v36 = vld [vmem:[%s5264_s9 + $0x150] sm:$0xff] }
 0x4da   :  { %2810 = vpow2.f32 %v1524_v37  ;;  %v1739_v37 = vld [vmem:[%s5264_s9 + $0x120] sm:$0xff] }
 0x4e7   :  { %v2811_v38 = vpop.eup %2810 }
 0x4e8   :  { %v1529_v39 = vmul.f32 %v2811_v38, %v1527_v16  ;;  %v1811_v16 = vld [vmem:[%s5264_s9 + $0x360] sm:$0xff]  ;;  %v1738_v38 = vld [vmem:[%s5264_s9 + $0x118] sm:$0xff] }
 0x4e9   :  { %2035 = vmatprep.subr.mxu0 %v1811_v16  ;;  %v1535_v16 = vld [vmem:[%s5265_s10 + $0x10] sm:$0xf] }
 0x4ea   :  { %1531 = vrot.lane.b32.xlu0 %v1529_v39, %s2937_s2  ;;  %s2940_s2 = smov 10   ;;  %v1732_v39 = vld [vmem:[%s5264_s9 + $0xe8] sm:$0xff]  ;;  %v1553_v18 = vrot.slane %v1535_v16, %v3828_v49  ;;  %v1544_v19 = vrot.slane %v1535_v16, %v3822_v47 }
 0x4ee   :  { %1547 = vperm.xlu0 %2806, %v4411_v21  }
 0x4f2   :  { %2450 = vrot.lane.b32.xlu0 %v1510_v35, %s2939_s7  ;;  %s2941_s7 = smov [#allocation9]  }
 0x55c   :  { %v1532_v61 = vpop.permute.xlu0 %1531 }
 0x55d   :  { %v1534_v0 = vadd.f32 %v1532_v61, %v1510_v35  ;;  %v1746_v35 = vld [vmem:[%s5264_s9 + $0x158] sm:$0xff]  ;;  %v1879_v61 = vld [vmem:[%s5264_s9 + $0x580] sm:$0xff] }
 0x55f   :  { %2460 = vrot.lane.b32.xlu0 %v1534_v0, %s2940_s2  ;;  %1558 = vperm.xlu1 %2805, %v1534_v0   ;;  %s2494_s2 = sshll.u32 %s2941_s7, 4  ;;  %s2495_s2 = int_to_ptr.vmem [resolvable:$true] %s2494_s2 }
 0x560   :  { %s2877_s29 = scalar_lea.vmem %s2495_s2, 896  ;;  %p2882_p2 = scmp.lt.s32.totalorder %s2495_s2, %s2495_s2 }
 0x561   :  { %p2878_p1 = scmp.ne.s32.totalorder %s2495_s2, %s2877_s29  ;;  %p2883_p3 = scmp.lt.s32.totalorder %s2877_s29, %s2877_s29 }
 0x563   :  { %2807 = vset.pattern.permute.xlu1 %v2938_v32  ;;  %v1759_v32 = vld [vmem:[%s5264_s9 + $0x1c0] sm:$0xff]  ;;  %p2884_p4 = por %p2883_p3, %p2882_p2 }
 0x564   :  { %1568 = vperm.xlu1 %2807, %v1534_v0   ;;  %v1872_v0 = vld [vmem:[%s5264_s9 + $0x548] sm:$0xff] }
 0x565   :  { %p2885_p5 = pnand %p2884_p4, %p2878_p1 }
 0x568   :  { %2455 = vrot.lane.b32.xlu1 %v4411_v21, %s2928_s14  ;;  %v1795_v21 = vld [vmem:[%s5264_s9 + $0x2e0] sm:$0xff] }
 0x569   :  { %v4456_v51 = vpop.permute.xlu0 %1547  ;;  %1968 = vmatprep.subr.mxu1 %v1795_v21  ;;  %v1564_v21 = vrot.slane %v1535_v16, %v1563_v14 }
 0x56a   :  { %1969 = vmatpush1.msra.mxu1 %v1794_v22  ;;  %v1573_v22 = vsub.s32 3, %v3819_v46 }
 0x56b   :  { %1970 = vmatprep.subr.mxu1 %v1788_v24 }
 0x56c   :  { %1971 = vmatpush1.msra.mxu1 %v1787_v25  ;;  %v1545_v25 = vmul.f32 %v1544_v19, %v4627_v17  ;;  %v1895_v19 = vld [vmem:[%s5264_s9 + $0x600] sm:$0xff] }
 0x56d   :  { %v2451_v23 = vpop.permute.xlu0 %2450  ;;  %1972 = vmatprep.subr.mxu1 %v1781_v26 }
 0x56e   :  { %2454 = vst.msk [vmem:[#allocation8] sm:$0xff] %vm2453_vm3, %v2451_v23  ;;  %1973 = vmatpush1.msra.mxu1 %v1780_v27  ;;  %v1554_v23 = vmul.f32 %v1553_v18, %v4456_v51  ;;  %v1574_v27 = vrot.slane %v1535_v16, %v1573_v22  ;;  %v1902_v16 = vld [vmem:[%s5264_s9 + $0x638] sm:$0xff]  ;;  %v1901_v18 = vld [vmem:[%s5264_s9 + $0x630] sm:$0xff] }
 0x56f   :  { %1974 = vmatprep.subr.mxu1 %v1774_v28 }
 0x570   :  { %1975 = vmatpush1.msra.mxu1 %v1773_v29  ;;  %v1555_v28 = vadd.f32 %v1554_v23, %v1545_v25  ;;  %v1888_v23 = vld [vmem:[%s5264_s9 + $0x5c8] sm:$0xff]  ;;  %v1881_v25 = vld [vmem:[%s5264_s9 + $0x590] sm:$0xff] }
 0x571   :  { %1976 = vmatprep.subr.mxu1 %v1767_v30 }
 0x572   :  { %1977 = vmatpush1.msra.mxu1 %v1766_v31 }
 0x573   :  { %1978 = vmatprep.subr.mxu1 %v1760_v62  ;;  %v2514_v62 = vld [vmem:[%s5266_s11 + $0x8] ss:$0 sm:$0xff] }
 0x574   :  { %1979 = vmatpush1.msra.mxu1 %v1759_v32 }
 0x575   :  { %1980 = vmatprep.subr.mxu1 %v1753_v33 }
 0x576   :  { %1981 = vmatpush1.msra.mxu1 %v1752_v34 }
 0x577   :  { %1982 = vmatprep.subr.mxu1 %v1746_v35 }
 0x578   :  { %1983 = vmatpush1.msra.mxu1 %v1745_v36 }
 0x579   :  { %1984 = vmatprep.subr.mxu1 %v1739_v37  ;;  %v1810_v37 = vld [vmem:[%s5264_s9 + $0x358] sm:$0xff] }
 0x57a   :  { %1985 = vmatpush1.msra.mxu1 %v1738_v38  ;;  %v1804_v38 = vld [vmem:[%s5264_s9 + $0x328] sm:$0xff] }
 0x57b   :  { %1986 = vmatprep.subr.mxu1 %v1732_v39  ;;  %v1803_v39 = vld [vmem:[%s5264_s9 + $0x320] sm:$0xff] }
 0x57c   :  { %1987 = vmatpush1.msra.mxu1 %v1731_v40  ;;  %v1797_v40 = vld [vmem:[%s5264_s9 + $0x2f0] sm:$0xff] }
 0x57d   :  { %1988 = vmatprep.subr.mxu1 %v1725_v41  ;;  %v1796_v41 = vld [vmem:[%s5264_s9 + $0x2e8] sm:$0xff] }
 0x57e   :  { %1989 = vmatpush1.msra.mxu1 %v1724_v42  ;;  %v1790_v42 = vld [vmem:[%s5264_s9 + $0x2b8] sm:$0xff] }
 0x57f   :  { %1990 = vmatprep.subr.mxu1 %v1718_v43  ;;  %v1789_v43 = vld [vmem:[%s5264_s9 + $0x2b0] sm:$0xff] }
 0x580   :  { %1991 = vmatpush1.msra.mxu1 %v1717_v44  ;;  %v1783_v44 = vld [vmem:[%s5264_s9 + $0x280] sm:$0xff] }
 0x581   :  { %1992 = vmatprep.subr.mxu1 %v1711_v45  ;;  %v1782_v45 = vld [vmem:[%s5264_s9 + $0x278] sm:$0xff] }
 0x582   :  { %1993 = vmatpush1.msra.mxu1 %v1710_v48  ;;  %v1776_v48 = vld [vmem:[%s5264_s9 + $0x248] sm:$0xff] }
 0x583   :  { %1994 = vmatprep.subr.mxu1 %v1704_v50  ;;  %v1775_v50 = vld [vmem:[%s5264_s9 + $0x240] sm:$0xff] }
 0x584   :  { %1995 = vmatpush1.msra.mxu1 %v1703_v1  ;;  %v1769_v1 = vld [vmem:[%s5264_s9 + $0x210] sm:$0xff] }
 0x585   :  { %1996 = vmatprep.subr.mxu1 %v1921_v10  ;;  %v1768_v10 = vld [vmem:[%s5264_s9 + $0x208] sm:$0xff] }
 0x586   :  { %1997 = vmatpush2.msra.mxu1 %v1920_v52  ;;  %v1762_v52 = vld [vmem:[%s5264_s9 + $0x1d8] sm:$0xff] }
 0x587   :  { %1998 = vmatprep.subr.mxu1 %v1914_v53  ;;  %v1761_v53 = vld [vmem:[%s5264_s9 + $0x1d0] sm:$0xff] }
 0x588   :  { %1999 = vmatpush2.msra.mxu1 %v1913_v54  ;;  %v1755_v54 = vld [vmem:[%s5264_s9 + $0x1a0] sm:$0xff] }
 0x589   :  { %2000 = vmatprep.subr.mxu1 %v1907_v55  ;;  %v1754_v55 = vld [vmem:[%s5264_s9 + $0x198] sm:$0xff] }
 0x58a   :  { %2001 = vmatpush2.msra.mxu1 %v1906_v56  ;;  %v1748_v56 = vld [vmem:[%s5264_s9 + $0x168] sm:$0xff] }
 0x58b   :  { %2002 = vmatprep.subr.mxu1 %v1900_v13  ;;  %v1747_v13 = vld [vmem:[%s5264_s9 + $0x160] sm:$0xff] }
 0x58c   :  { %2003 = vmatpush2.msra.mxu1 %v1899_v15  ;;  %v1741_v15 = vld [vmem:[%s5264_s9 + $0x130] sm:$0xff] }
 0x58d   :  { %2004 = vmatprep.subr.mxu1 %v1893_v57  ;;  %v1740_v57 = vld [vmem:[%s5264_s9 + $0x128] sm:$0xff] }
 0x58e   :  { %2005 = vmatpush2.msra.mxu1 %v1892_v58  ;;  %v1734_v58 = vld [vmem:[%s5264_s9 + $0xf8] sm:$0xff] }
 0x58f   :  { %2006 = vmatprep.subr.mxu1 %v1886_v59  ;;  %v1733_v59 = vld [vmem:[%s5264_s9 + $0xf0] sm:$0xff] }
 0x590   :  { %2007 = vmatpush2.msra.mxu1 %v1885_v60  ;;  %v1727_v60 = vld [vmem:[%s5264_s9 + $0xc0] sm:$0xff] }
 0x591   :  { %2008 = vmatprep.subr.mxu1 %v1879_v61  ;;  %v1726_v61 = vld [vmem:[%s5264_s9 + $0xb8] sm:$0xff] }
 0x592   :  { %2009 = vmatpush2.msra.mxu1 %v1878_v63  ;;  %v1720_v63 = vld [vmem:[%s5264_s9 + $0x88] sm:$0xff] }
 0x593   :  { %2010 = vmatprep.subr.mxu1 %v1872_v0  ;;  %v1719_v0 = vld [vmem:[%s5264_s9 + $0x80] sm:$0xff] }
 0x594   :  { %2011 = vmatpush2.msra.mxu1 %v1871_v2  ;;  %v1713_v2 = vld [vmem:[%s5264_s9 + $0x50] sm:$0xff] }
 0x595   :  { %2012 = vmatprep.subr.mxu1 %v1865_v3  ;;  %v1712_v3 = vld [vmem:[%s5264_s9 + $0x48] sm:$0xff] }
 0x596   :  { %2013 = vmatpush2.msra.mxu1 %v1864_v4  ;;  %v1706_v4 = vld [vmem:[%s5264_s9 + $0x18] sm:$0xff] }
 0x597   :  { %2014 = vmatprep.subr.mxu1 %v1858_v5  ;;  %v1705_v5 = vld [vmem:[%s5264_s9 + $0x10] sm:$0xff] }
 0x598   :  { %2015 = vmatpush2.msra.mxu1 %v1857_v6  ;;  %v1923_v6 = vld [vmem:[%s5264_s9 + $0x6e0] sm:$0xff] }
 0x599   :  { %2016 = vmatprep.subr.mxu1 %v1851_v7  ;;  %v1922_v7 = vld [vmem:[%s5264_s9 + $0x6d8] sm:$0xff] }
 0x59a   :  { %2017 = vmatpush2.msra.mxu1 %v1850_v8  ;;  %v1916_v8 = vld [vmem:[%s5264_s9 + $0x6a8] sm:$0xff] }
 0x59b   :  { %2018 = vmatprep.subr.mxu1 %v1844_v9  ;;  %v1915_v9 = vld [vmem:[%s5264_s9 + $0x6a0] sm:$0xff] }
 0x59c   :  { %2019 = vmatpush2.msra.mxu1 %v1843_v11  ;;  %v1909_v11 = vld [vmem:[%s5264_s9 + $0x670] sm:$0xff] }
 0x59d   :  { %2020 = vmatprep.subr.mxu1 %v1837_v12  ;;  %v1908_v12 = vld [vmem:[%s5264_s9 + $0x668] sm:$0xff] }
 0x5d1   :  { %v2461_v34 = vpop.permute.xlu0 %2460 }
 0x5da   :  { %v1559_v24 = vpop.permute.xlu1 %1558 }
 0x5db   :  { %v1565_v26 = vmul.f32 %v1564_v21, %v1559_v24  ;;  %v1894_v21 = vld [vmem:[%s5264_s9 + $0x5f8] sm:$0xff]  ;;  %v1887_v24 = vld [vmem:[%s5264_s9 + $0x5c0] sm:$0xff] }
 0x5dd   :  { %v1566_v30 = vadd.f32 %v1565_v26, %v1555_v28  ;;  %v1880_v26 = vld [vmem:[%s5264_s9 + $0x588] sm:$0xff]  ;;  %v1873_v28 = vld [vmem:[%s5264_s9 + $0x550] sm:$0xff] }
 0x5df   :  { %v1569_v29 = vpop.permute.xlu1 %1568 }
 0x5e0   :  { %v1575_v31 = vmul.f32 %v1574_v27, %v1569_v29  ;;  %v1874_v27 = vld [vmem:[%s5264_s9 + $0x558] sm:$0xff]  ;;  %v1867_v29 = vld [vmem:[%s5264_s9 + $0x520] sm:$0xff] }
 0x5e2   :  { %v1576_v32 = vadd.f32 %v1575_v31, %v1566_v30  ;;  %v1866_v30 = vld [vmem:[%s5264_s9 + $0x518] sm:$0xff]  ;;  %v1860_v31 = vld [vmem:[%s5264_s9 + $0x4e8] sm:$0xff] }
 0x5e3   :  { %v2456_v33 = vpop.permute.xlu1 %2455 }
 0x5e4   :  { %v1584_v35 = vadd.f32 %v2514_v62, %v1576_v32  ;;  %2459 = vst.msk [vmem:[#allocation8] sm:$0xff] %vm2458_vm4, %v2456_v33  ;;  %v1859_v62 = vld [vmem:[%s5264_s9 + $0x4e0] sm:$0xff]  ;;  %v1853_v32 = vld [vmem:[%s5264_s9 + $0x4b0] sm:$0xff]  ;;  %v1852_v33 = vld [vmem:[%s5264_s9 + $0x4a8] sm:$0xff] }
 0x5e5   :  { %2464 = vst.msk [vmem:[#allocation8] sm:$0xff] %vm2463_vm5, %v2461_v34  ;;  %v1846_v34 = vld [vmem:[%s5264_s9 + $0x478] sm:$0xff] }
 0x5e6   :  { %v1585_v36 = vmax.f32 %v1584_v35, 0.0  ;;  %v1845_v35 = vld [vmem:[%s5264_s9 + $0x470] sm:$0xff] }
 0x5e8   :  { %1695 = vmatmul.mubr.f32.vlgmr.msra.gmra.mxu0 %v1585_v36  ;;  %v1839_v36 = vld [vmem:[%s5264_s9 + $0x440] sm:$0xff] }
 0x5e9   :  { %2036 = vmatpush1.msra.mxu0 %v1810_v37  ;;  %v1836_v37 = vld [vmem:[%s5264_s9 + $0x428] sm:$0xff] }
 0x5ea   :  { %2037 = vmatprep.subr.mxu0 %v1804_v38  ;;  %v1838_v38 = vld [vmem:[%s5264_s9 + $0x438] sm:$0xff]  ;;  %2021 = vmatpush2.msra.mxu1 %v1836_v37 }
 0x5eb   :  { %2038 = vmatpush1.msra.mxu0 %v1803_v39  ;;  %v1830_v39 = vld [vmem:[%s5264_s9 + $0x3f8] sm:$0xff] }
 0x5ec   :  { %2039 = vmatprep.subr.mxu0 %v1797_v40  ;;  %v1832_v40 = vld [vmem:[%s5264_s9 + $0x408] sm:$0xff]  ;;  %2022 = vmatprep.subr.mxu1 %v1830_v39  ;;  %v1870_v37 = vld [vmem:[%s5264_s9 + $0x538] sm:$0xff] }
 0x5ed   :  { %2040 = vmatpush1.msra.mxu0 %v1796_v41  ;;  %v1829_v41 = vld [vmem:[%s5264_s9 + $0x3f0] sm:$0xff]  ;;  %v1758_v39 = vld [vmem:[%s5264_s9 + $0x1b8] sm:$0xff] }
 0x5ee   :  { %2041 = vmatprep.subr.mxu0 %v1790_v42  ;;  %v1831_v42 = vld [vmem:[%s5264_s9 + $0x400] sm:$0xff]  ;;  %2023 = vmatpush2.msra.mxu1 %v1829_v41 }
 0x5ef   :  { %2042 = vmatpush1.msra.mxu0 %v1789_v43  ;;  %v1823_v43 = vld [vmem:[%s5264_s9 + $0x3c0] sm:$0xff] }
 0x5f0   :  { %2043 = vmatprep.subr.mxu0 %v1783_v44  ;;  %v1825_v44 = vld [vmem:[%s5264_s9 + $0x3d0] sm:$0xff]  ;;  %2024 = vmatprep.subr.mxu1 %v1823_v43  ;;  %v1863_v41 = vld [vmem:[%s5264_s9 + $0x500] sm:$0xff] }
 0x5f1   :  { %2044 = vmatpush1.msra.mxu0 %v1782_v45  ;;  %v1822_v45 = vld [vmem:[%s5264_s9 + $0x3b8] sm:$0xff]  ;;  %v1751_v43 = vld [vmem:[%s5264_s9 + $0x180] sm:$0xff] }
 0x5f2   :  { %2045 = vmatprep.subr.mxu0 %v1776_v48  ;;  %v1824_v48 = vld [vmem:[%s5264_s9 + $0x3c8] sm:$0xff]  ;;  %2025 = vmatpush2.msra.mxu1 %v1822_v45 }
 0x5f3   :  { %2046 = vmatpush1.msra.mxu0 %v1775_v50  ;;  %v1816_v50 = vld [vmem:[%s5264_s9 + $0x388] sm:$0xff] }
 0x5f4   :  { %2047 = vmatprep.subr.mxu0 %v1769_v1  ;;  %v1818_v1 = vld [vmem:[%s5264_s9 + $0x398] sm:$0xff]  ;;  %2026 = vmatprep.subr.mxu1 %v1816_v50  ;;  %v1856_v45 = vld [vmem:[%s5264_s9 + $0x4c8] sm:$0xff] }
 0x5f5   :  { %2048 = vmatpush1.msra.mxu0 %v1768_v10  ;;  %v1815_v10 = vld [vmem:[%s5264_s9 + $0x380] sm:$0xff]  ;;  %v1744_v50 = vld [vmem:[%s5264_s9 + $0x148] sm:$0xff] }
 0x5f6   :  { %2049 = vmatprep.subr.mxu0 %v1762_v52  ;;  %v1817_v52 = vld [vmem:[%s5264_s9 + $0x390] sm:$0xff]  ;;  %2027 = vmatpush2.msra.mxu1 %v1815_v10 }
 0x5f7   :  { %2050 = vmatpush1.msra.mxu0 %v1761_v53  ;;  %v1813_v53 = vld [vmem:[%s5264_s9 + $0x370] sm:$0xff] }
 0x5f8   :  { %2051 = vmatprep.subr.mxu0 %v1755_v54  ;;  %v1926_v54 = vld [vmem:[%s5264_s9 + $0x6f8] sm:$0xff]  ;;  %2106 = vmatprep.subr.mxu1 %v1813_v53  ;;  %v1849_v10 = vld [vmem:[%s5264_s9 + $0x490] sm:$0xff] }
 0x5f9   :  { %2052 = vmatpush1.msra.mxu0 %v1754_v55  ;;  %v1618_v55 = vld [vmem:[%s5266_s11 + $0x9] sm:$0x3]  ;;  %v1737_v53 = vld [vmem:[%s5264_s9 + $0x110] sm:$0xff] }
 0x5fa   :  { %2053 = vmatprep.subr.mxu0 %v1748_v56  ;;  %v1623_v56 = vrot.slane %v1618_v55, %v3822_v47 }
 0x5fb   :  { %2054 = vmatpush1.msra.mxu0 %v1747_v13  ;;  %v1627_v13 = vrot.slane %v1618_v55, %v3828_v49  ;;  %v1842_v55 = vld [vmem:[%s5264_s9 + $0x458] sm:$0xff] }
 0x5fc   :  { %2055 = vmatprep.subr.mxu0 %v1741_v15 }
 0x5fd   :  { %2056 = vmatpush1.msra.mxu0 %v1740_v57 }
 0x5fe   :  { %2057 = vmatprep.subr.mxu0 %v1734_v58 }
 0x5ff   :  { %2058 = vmatpush1.msra.mxu0 %v1733_v59 }
 0x600   :  { %2059 = vmatprep.subr.mxu0 %v1727_v60 }
 0x601   :  { %2060 = vmatpush1.msra.mxu0 %v1726_v61 }
 0x602   :  { %2061 = vmatprep.subr.mxu0 %v1720_v63  ;;  %v1812_v63 = vld [vmem:[%s5264_s9 + $0x368] sm:$0xff] }
 0x603   :  { %2062 = vmatpush1.msra.mxu0 %v1719_v0  ;;  %v1814_v0 = vld [vmem:[%s5264_s9 + $0x378] sm:$0xff] }
 0x604   :  { %2063 = vmatprep.subr.mxu0 %v1713_v2  ;;  %v1806_v2 = vld [vmem:[%s5264_s9 + $0x338] sm:$0xff] }
 0x605   :  { %2064 = vmatpush1.msra.mxu0 %v1712_v3  ;;  %v1919_v3 = vld [vmem:[%s5264_s9 + $0x6c0] sm:$0xff] }
 0x606   :  { %2065 = vmatprep.subr.mxu0 %v1706_v4  ;;  %v1805_v4 = vld [vmem:[%s5264_s9 + $0x330] sm:$0xff] }
 0x607   :  { %2066 = vmatpush1.msra.mxu0 %v1705_v5  ;;  %v1807_v5 = vld [vmem:[%s5264_s9 + $0x340] sm:$0xff] }
 0x608   :  { %2067 = vmatprep.subr.mxu0 %v1923_v6  ;;  %v1799_v6 = vld [vmem:[%s5264_s9 + $0x300] sm:$0xff] }
 0x609   :  { %2068 = vmatpush2.msra.mxu0 %v1922_v7  ;;  %v1912_v7 = vld [vmem:[%s5264_s9 + $0x688] sm:$0xff] }
 0x60a   :  { %2069 = vmatprep.subr.mxu0 %v1916_v8  ;;  %v1798_v8 = vld [vmem:[%s5264_s9 + $0x2f8] sm:$0xff] }
 0x60b   :  { %2070 = vmatpush2.msra.mxu0 %v1915_v9  ;;  %v1800_v9 = vld [vmem:[%s5264_s9 + $0x308] sm:$0xff] }
 0x60c   :  { %2071 = vmatprep.subr.mxu0 %v1909_v11  ;;  %v1792_v11 = vld [vmem:[%s5264_s9 + $0x2c8] sm:$0xff] }
 0x60d   :  { %2072 = vmatpush2.msra.mxu0 %v1908_v12  ;;  %v1905_v12 = vld [vmem:[%s5264_s9 + $0x650] sm:$0xff] }
 0x60e   :  { %2073 = vmatprep.subr.mxu0 %v1902_v16  ;;  %v1791_v16 = vld [vmem:[%s5264_s9 + $0x2c0] sm:$0xff] }
 0x60f   :  { %2074 = vmatpush2.msra.mxu0 %v1901_v18  ;;  %v1793_v18 = vld [vmem:[%s5264_s9 + $0x2d0] sm:$0xff] }
 0x610   :  { %2075 = vmatprep.subr.mxu0 %v1895_v19  ;;  %v1785_v19 = vld [vmem:[%s5264_s9 + $0x290] sm:$0xff] }
 0x611   :  { %2076 = vmatpush2.msra.mxu0 %v1894_v21  ;;  %v1898_v21 = vld [vmem:[%s5264_s9 + $0x618] sm:$0xff] }
 0x612   :  { %2077 = vmatprep.subr.mxu0 %v1888_v23  ;;  %v1784_v23 = vld [vmem:[%s5264_s9 + $0x288] sm:$0xff] }
 0x613   :  { %2078 = vmatpush2.msra.mxu0 %v1887_v24  ;;  %v1786_v24 = vld [vmem:[%s5264_s9 + $0x298] sm:$0xff] }
 0x614   :  { %2079 = vmatprep.subr.mxu0 %v1881_v25  ;;  %v1778_v25 = vld [vmem:[%s5264_s9 + $0x258] sm:$0xff] }
 0x615   :  { %2080 = vmatpush2.msra.mxu0 %v1880_v26  ;;  %v1891_v26 = vld [vmem:[%s5264_s9 + $0x5e0] sm:$0xff] }
 0x616   :  { %2081 = vmatprep.subr.mxu0 %v1874_v27  ;;  %v1777_v27 = vld [vmem:[%s5264_s9 + $0x250] sm:$0xff] }
 0x617   :  { %2082 = vmatpush2.msra.mxu0 %v1873_v28  ;;  %v1779_v28 = vld [vmem:[%s5264_s9 + $0x260] sm:$0xff] }
 0x618   :  { %2083 = vmatprep.subr.mxu0 %v1867_v29  ;;  %v1771_v29 = vld [vmem:[%s5264_s9 + $0x220] sm:$0xff] }
 0x619   :  { %2084 = vmatpush2.msra.mxu0 %v1866_v30  ;;  %v1884_v30 = vld [vmem:[%s5264_s9 + $0x5a8] sm:$0xff] }
 0x61a   :  { %2085 = vmatprep.subr.mxu0 %v1860_v31  ;;  %v1770_v31 = vld [vmem:[%s5264_s9 + $0x218] sm:$0xff] }
 0x61b   :  { %2086 = vmatpush2.msra.mxu0 %v1859_v62  ;;  %v1772_v62 = vld [vmem:[%s5264_s9 + $0x228] sm:$0xff] }
 0x61c   :  { %2087 = vmatprep.subr.mxu0 %v1853_v32  ;;  %v1764_v32 = vld [vmem:[%s5264_s9 + $0x1e8] sm:$0xff] }
 0x61d   :  { %2088 = vmatpush2.msra.mxu0 %v1852_v33  ;;  %v1877_v33 = vld [vmem:[%s5264_s9 + $0x570] sm:$0xff] }
 0x61e   :  { %2089 = vmatprep.subr.mxu0 %v1846_v34  ;;  %v1763_v34 = vld [vmem:[%s5264_s9 + $0x1e0] sm:$0xff] }
 0x61f   :  { %2090 = vmatpush2.msra.mxu0 %v1845_v35  ;;  %v1765_v35 = vld [vmem:[%s5264_s9 + $0x1f0] sm:$0xff] }
 0x620   :  { %2091 = vmatprep.subr.mxu0 %v1839_v36  ;;  %v1757_v36 = vld [vmem:[%s5264_s9 + $0x1b0] sm:$0xff] }
 0x621   :  { %2092 = vmatpush2.msra.mxu0 %v1838_v38  ;;  %v1756_v38 = vld [vmem:[%s5264_s9 + $0x1a8] sm:$0xff] }
 0x622   :  { %2093 = vmatprep.subr.mxu0 %v1832_v40  ;;  %v1750_v40 = vld [vmem:[%s5264_s9 + $0x178] sm:$0xff] }
 0x623   :  { %2094 = vmatpush2.msra.mxu0 %v1831_v42  ;;  %v1749_v42 = vld [vmem:[%s5264_s9 + $0x170] sm:$0xff] }
 0x624   :  { %2095 = vmatprep.subr.mxu0 %v1825_v44  ;;  %v1743_v44 = vld [vmem:[%s5264_s9 + $0x140] sm:$0xff] }
 0x625   :  { %2096 = vmatpush2.msra.mxu0 %v1824_v48  ;;  %v1742_v48 = vld [vmem:[%s5264_s9 + $0x138] sm:$0xff] }
 0x626   :  { %2097 = vmatprep.subr.mxu0 %v1818_v1  ;;  %v1736_v1 = vld [vmem:[%s5264_s9 + $0x108] sm:$0xff] }
 0x627   :  { %2098 = vmatpush2.msra.mxu0 %v1817_v52  ;;  %v1735_v52 = vld [vmem:[%s5264_s9 + $0x100] sm:$0xff] }
 0x628   :  { %2624 = vmatprep.subr.mxu0 %v1926_v54  ;;  %v1729_v54 = vld [vmem:[%s5264_s9 + $0xd0] sm:$0xff] }
 0x6a8   :  { %v1696_v15 = vpop.f32.mrf.mxu0 }
 0x6a9   :  { %v1697_v57 = vadd.f32 %v1696_v15, %v1623_v56  ;;  %v1728_v56 = vld [vmem:[%s5264_s9 + $0xc8] sm:$0xff]  ;;  %v1722_v15 = vld [vmem:[%s5264_s9 + $0x98] sm:$0xff] }
 0x6aa   :  { %v1698_v58 = vpop.f32.mrf.mxu0 }
 0x6ab   :  { %v1699_v59 = vadd.f32 %v1698_v58, %v1627_v13  ;;  %v4862_v61 = vmax.f32 %v1697_v57, 0.0  ;;  %v1730_v13 = vld [vmem:[%s5264_s9 + $0xd8] sm:$0xff]  ;;  %v1835_v57 = vld [vmem:[%s5264_s9 + $0x420] sm:$0xff]  ;;  %v1721_v58 = vld [vmem:[%s5264_s9 + $0x90] sm:$0xff] }
 0x6ad   :  { %v1702_v60 = vmax.f32 %v1699_v59, 0.0  ;;  %v1723_v59 = vld [vmem:[%s5264_s9 + $0xa0] sm:$0xff] }
 0x6af   :  { %2028 = vmatprep.mubr.f32.mxu1 %v1702_v60  ;;  %2099 = vmatprep.mubr.f32.mxu0 %v1702_v60 }
 0x6b0   :  { %2029 = vmatmul.mubr.f32.vlgmr.msra.gmra.mxu1 %v4862_v61  ;;  %2100 = vmatmul.mubr.f32.vlgmr.msra.gmra.mxu0 %v4862_v61 }
 0x6b1   :  { %2107 = vmatpush1.msra.mxu1 %v1812_v63  ;;  %2625 = vmatpush3.msra.mxu0 %v1814_v0  ;;  %v1828_v63 = vld [vmem:[%s5264_s9 + $0x3e8] sm:$0xff]  ;;  %v1714_v0 = vld [vmem:[%s5264_s9 + $0x58] sm:$0xff] }
 0x6b2   :  { %2108 = vmatprep.subr.mxu1 %v1806_v2  ;;  %2170 = vmatprep.mubr.f32.mxu1 %v1702_v60  ;;  %v1716_v2 = vld [vmem:[%s5264_s9 + $0x68] sm:$0xff] }
 0x6b3   :  { %2626 = vmatprep.subr.mxu0 %v1919_v3  ;;  %2241 = vmatprep.mubr.f32.mxu0 %v1702_v60  ;;  %v1715_v60 = vld [vmem:[%s5264_s9 + $0x60] sm:$0xff]  ;;  %v1708_v3 = vld [vmem:[%s5264_s9 + $0x28] sm:$0xff] }
 0x6b4   :  { %2109 = vmatpush1.msra.mxu1 %v1805_v4  ;;  %2627 = vmatpush3.msra.mxu0 %v1807_v5  ;;  %v1821_v4 = vld [vmem:[%s5264_s9 + $0x3b0] sm:$0xff]  ;;  %v1707_v5 = vld [vmem:[%s5264_s9 + $0x20] sm:$0xff] }
 0x6b5   :  { %2110 = vmatprep.subr.mxu1 %v1799_v6  ;;  %2628 = vmatprep.subr.mxu0 %v1912_v7  ;;  %v1709_v6 = vld [vmem:[%s5264_s9 + $0x30] sm:$0xff] }
 0x6b6   :  { %2111 = vmatpush1.msra.mxu1 %v1798_v8  ;;  %2629 = vmatpush3.msra.mxu0 %v1800_v9  ;;  %v1925_v7 = vld [vmem:[%s5264_s9 + $0x6f0] sm:$0xff]  ;;  %v2247_v8 = vld [vmem:[%s5265_s10 + $0x20] sm:$0x3]  ;;  %v1924_v9 = vld [vmem:[%s5264_s9 + $0x6e8] sm:$0xff] }
 0x6b7   :  { %2112 = vmatprep.subr.mxu1 %v1792_v11  ;;  %2630 = vmatprep.subr.mxu0 %v1905_v12  ;;  %v2256_v11 = vrot.slane %v2247_v8, %v3828_v49  ;;  %v2275_v12 = vld [vmem:[%s5265_s10 + $0xa0] sm:$0xff] }
 0x6b8   :  { %2113 = vmatpush1.msra.mxu1 %v1791_v16  ;;  %2631 = vmatpush3.msra.mxu0 %v1793_v18  ;;  %v1918_v16 = vld [vmem:[%s5264_s9 + $0x6b8] sm:$0xff]  ;;  %v1917_v18 = vld [vmem:[%s5264_s9 + $0x6b0] sm:$0xff] }
 0x6b9   :  { %2114 = vmatprep.subr.mxu1 %v1785_v19  ;;  %2632 = vmatprep.subr.mxu0 %v1898_v21  ;;  %v2251_v19 = vrot.slane %v2247_v8, %v3822_v47  ;;  %v2274_v21 = vld [vmem:[%s5265_s10 + $0x90] sm:$0xff] }
 0x6ba   :  { %2115 = vmatpush1.msra.mxu1 %v1784_v23  ;;  %2633 = vmatpush3.msra.mxu0 %v1786_v24  ;;  %v1911_v23 = vld [vmem:[%s5264_s9 + $0x680] sm:$0xff]  ;;  %v1910_v24 = vld [vmem:[%s5264_s9 + $0x678] sm:$0xff] }
 0x6bb   :  { %2116 = vmatprep.subr.mxu1 %v1778_v25  ;;  %2634 = vmatprep.subr.mxu0 %v1891_v26  ;;  %v2257_v25 = vmul.f32 %v2256_v11, %v4456_v51  ;;  %v2273_v26 = vld [vmem:[%s5265_s10 + $0x80] sm:$0xff]  ;;  %v2272_v51 = vld [vmem:[%s5265_s10 + $0x70] sm:$0xff] }
 0x6bc   :  { %2117 = vmatpush1.msra.mxu1 %v1777_v27  ;;  %2635 = vmatpush3.msra.mxu0 %v1779_v28  ;;  %v1904_v27 = vld [vmem:[%s5264_s9 + $0x648] sm:$0xff]  ;;  %v1903_v28 = vld [vmem:[%s5264_s9 + $0x640] sm:$0xff] }
 0x6bd   :  { %2118 = vmatprep.subr.mxu1 %v1771_v29  ;;  %2636 = vmatprep.subr.mxu0 %v1884_v30  ;;  %v2252_v29 = vmul.f32 %v2251_v19, %v4627_v17  ;;  %v1897_v30 = vld [vmem:[%s5264_s9 + $0x610] sm:$0xff]  ;;  %v2271_v17 = vld [vmem:[%s5265_s10 + $0x60] sm:$0xff] }
 0x6be   :  { %2119 = vmatpush1.msra.mxu1 %v1770_v31  ;;  %2637 = vmatpush3.msra.mxu0 %v1772_v62  ;;  %v1896_v31 = vld [vmem:[%s5264_s9 + $0x608] sm:$0xff] }
 0x6bf   :  { %2120 = vmatprep.subr.mxu1 %v1764_v32  ;;  %2638 = vmatprep.subr.mxu0 %v1877_v33  ;;  %v2258_v62 = vadd.f32 %v2257_v25, %v2252_v29  ;;  %v1890_v32 = vld [vmem:[%s5264_s9 + $0x5d8] sm:$0xff]  ;;  %v2515_v33 = vld [vmem:[%s5266_s11 + $0x12] ss:$0 sm:$0xff] }
 0x6c0   :  { %2121 = vmatpush1.msra.mxu1 %v1763_v34  ;;  %2639 = vmatpush3.msra.mxu0 %v1765_v35  ;;  %v1889_v34 = vld [vmem:[%s5264_s9 + $0x5d0] sm:$0xff] }
 0x6c1   :  { %2122 = vmatprep.subr.mxu1 %v1757_v36  ;;  %2640 = vmatprep.subr.mxu0 %v1870_v37  ;;  %v2270_v35 = vld [vmem:[%s5265_s10 + $0x50] sm:$0xff]  ;;  %v1883_v36 = vld [vmem:[%s5264_s9 + $0x5a0] sm:$0xff]  ;;  %v1882_v37 = vld [vmem:[%s5264_s9 + $0x598] sm:$0xff] }
 0x6c2   :  { %2123 = vmatpush1.msra.mxu1 %v1756_v38  ;;  %2641 = vmatpush3.msra.mxu0 %v1758_v39  ;;  %v2266_v38 = vadd.f32 %v2515_v33, %v2258_v62  ;;  %v2269_v39 = vld [vmem:[%s5265_s10 + $0x40] sm:$0xff]  ;;  %v1951_v62 = vsub.s32 5, %v3819_v46 }
 0x6c3   :  { %2124 = vmatprep.subr.mxu1 %v1750_v40  ;;  %2642 = vmatprep.subr.mxu0 %v1863_v41  ;;  %v1876_v40 = vld [vmem:[%s5264_s9 + $0x568] sm:$0xff]  ;;  %v1875_v41 = vld [vmem:[%s5264_s9 + $0x560] sm:$0xff] }
 0x6c4   :  { %2125 = vmatpush1.msra.mxu1 %v1749_v42  ;;  %2643 = vmatpush3.msra.mxu0 %v1751_v43  ;;  %v2268_v42 = vld [vmem:[%s5265_s10 + $0x30] sm:$0xff] }
 0x6c5   :  { %2126 = vmatprep.subr.mxu1 %v1743_v44  ;;  %2644 = vmatprep.subr.mxu0 %v1856_v45  ;;  %v1869_v43 = vld [vmem:[%s5264_s9 + $0x530] sm:$0xff]  ;;  %v2267_v44 = vmax.f32 %v2266_v38, 0.0  ;;  %v1868_v45 = vld [vmem:[%s5264_s9 + $0x528] sm:$0xff] }
 0x6c6   :  { %2127 = vmatpush1.msra.mxu1 %v1742_v48  ;;  %2645 = vmatpush3.msra.mxu0 %v1744_v50  ;;  %v1862_v48 = vld [vmem:[%s5264_s9 + $0x4f8] sm:$0xff]  ;;  %v1861_v50 = vld [vmem:[%s5264_s9 + $0x4f0] sm:$0xff] }
 0x6c7   :  { %2128 = vmatprep.subr.mxu1 %v1736_v1  ;;  %2646 = vmatprep.subr.mxu0 %v1849_v10  ;;  %v1855_v1 = vld [vmem:[%s5264_s9 + $0x4c0] sm:$0xff]  ;;  %v1854_v10 = vld [vmem:[%s5264_s9 + $0x4b8] sm:$0xff] }
 0x6c8   :  { %2129 = vmatpush1.msra.mxu1 %v1735_v52  ;;  %2647 = vmatpush3.msra.mxu0 %v1737_v53  ;;  %v1848_v52 = vld [vmem:[%s5264_s9 + $0x488] sm:$0xff]  ;;  %v1847_v53 = vld [vmem:[%s5264_s9 + $0x480] sm:$0xff] }
 0x6c9   :  { %2130 = vmatprep.subr.mxu1 %v1729_v54  ;;  %2648 = vmatprep.subr.mxu0 %v1842_v55  ;;  %v1841_v54 = vld [vmem:[%s5264_s9 + $0x450] sm:$0xff]  ;;  %v1840_v55 = vld [vmem:[%s5264_s9 + $0x448] sm:$0xff] }
 0x6ca   :  { %2131 = vmatpush1.msra.mxu1 %v1728_v56  ;;  %2649 = vmatpush3.msra.mxu0 %v1730_v13  ;;  %v1834_v56 = vld [vmem:[%s5264_s9 + $0x418] sm:$0xff]  ;;  %v1833_v13 = vld [vmem:[%s5264_s9 + $0x410] sm:$0xff] }
 0x6cb   :  { %2132 = vmatprep.subr.mxu1 %v1722_v15  ;;  %2650 = vmatprep.subr.mxu0 %v1835_v57  ;;  %v1827_v15 = vld [vmem:[%s5264_s9 + $0x3e0] sm:$0xff]  ;;  %v1826_v57 = vld [vmem:[%s5264_s9 + $0x3d8] sm:$0xff] }
 0x6cc   :  { %2133 = vmatpush1.msra.mxu1 %v1721_v58  ;;  %2651 = vmatpush3.msra.mxu0 %v1723_v59  ;;  %v1820_v58 = vld [vmem:[%s5264_s9 + $0x3a8] sm:$0xff]  ;;  %v1819_v59 = vld [vmem:[%s5264_s9 + $0x3a0] sm:$0xff] }
 0x6cd   :  { %2134 = vmatprep.subr.mxu1 %v1715_v60  ;;  %2652 = vmatprep.subr.mxu0 %v1828_v63  ;;  %v2365_v60 = vld [vmem:[%s5265_s10 + $0x120] sm:$0xff]  ;;  %v2364_v63 = vld [vmem:[%s5265_s10 + $0x110] sm:$0xff] }
 0x6ce   :  { %2135 = vmatpush1.msra.mxu1 %v1714_v0  ;;  %2653 = vmatpush3.msra.mxu0 %v1716_v2  ;;  %v2362_v0 = vld [vmem:[%s5265_s10 + $0xf0] sm:$0xff]  ;;  %v2361_v2 = vld [vmem:[%s5265_s10 + $0xe0] sm:$0xff] }
 0x6cf   :  { %2136 = vmatprep.subr.mxu1 %v1708_v3  ;;  %2654 = vmatprep.subr.mxu0 %v1821_v4  ;;  %v2360_v3 = vld [vmem:[%s5265_s10 + $0xd0] sm:$0xff]  ;;  %v2359_v4 = vld [vmem:[%s5265_s10 + $0xc0] sm:$0xff] }
 0x6d0   :  { %2137 = vmatpush1.msra.mxu1 %v1707_v5  ;;  %2655 = vmatpush3.msra.mxu0 %v1709_v6  ;;  %v2358_v5 = vld [vmem:[%s5265_s10 + $0xb0] sm:$0xff] }
 0x6d1   :  { %2138 = vmatprep.subr.mxu1 %v1925_v7  ;;  %2242 = vmatmul.mubr.f32.vlgmr.msra.gmra.mxu0 %v4862_v61  ;;  %v1927_v6 = vld [vmem:[%s5266_s11 + $0xb] sm:$0x7f] }
 0x6d2   :  { %2747 = vmatprep.subr.mxu0 %v3843_v20  ;;  %2139 = vmatpush2.msra.mxu1 %v1924_v9  ;;  %v1932_v7 = vrot.slane %v1927_v6, %v3822_v47  ;;  %v1940_v8 = vrot.slane %v1927_v6, %v1563_v14  ;;  %v1936_v9 = vrot.slane %v1927_v6, %v3828_v49  ;;  %v1955_v47 = vsub.s32 6, %v3819_v46 }
 0x6d3   :  { %2748 = vmatpush3.msra.mxu0 %v2275_v12  ;;  %2140 = vmatprep.subr.mxu1 %v1918_v16  ;;  %v1944_v11 = vrot.slane %v1927_v6, %v1573_v22  ;;  %v2516_v22 = vld [vmem:[%s5266_s11 + $0x13] ss:$0 sm:$0xff] }
 0x6d4   :  { %2749 = vmatprep.subr.mxu0 %v3843_v20  ;;  %2141 = vmatpush2.msra.mxu1 %v1917_v18  ;;  %v1956_v25 = vrot.slane %v1927_v6, %v1955_v47 }
 0x6d5   :  { %2750 = vmatpush3.msra.mxu0 %v2274_v21  ;;  %2142 = vmatprep.subr.mxu1 %v1911_v23 }
 0x6d6   :  { %2751 = vmatprep.subr.mxu0 %v3843_v20  ;;  %2143 = vmatpush2.msra.mxu1 %v1910_v24 }
 0x6d7   :  { %2752 = vmatpush3.msra.mxu0 %v2273_v26  ;;  %2144 = vmatprep.subr.mxu1 %v1904_v27 }
 0x6d8   :  { %2753 = vmatprep.subr.mxu0 %v3843_v20  ;;  %2145 = vmatpush2.msra.mxu1 %v1903_v28 }
 0x6d9   :  { %2754 = vmatpush3.msra.mxu0 %v2272_v51  ;;  %2146 = vmatprep.subr.mxu1 %v1897_v30 }
 0x6da   :  { %2755 = vmatprep.subr.mxu0 %v3843_v20  ;;  %2147 = vmatpush2.msra.mxu1 %v1896_v31  ;;  %v1947_v31 = vsub.s32 4, %v3819_v46 }
 0x6db   :  { %2756 = vmatpush3.msra.mxu0 %v2271_v17  ;;  %2148 = vmatprep.subr.mxu1 %v1890_v32  ;;  %v1952_v32 = vrot.slane %v1927_v6, %v1951_v62 }
 0x6dc   :  { %2757 = vmatprep.subr.mxu0 %v3843_v20  ;;  %2149 = vmatpush2.msra.mxu1 %v1889_v34  ;;  %v1948_v17 = vrot.slane %v1927_v6, %v1947_v31 }
 0x6dd   :  { %2758 = vmatpush3.msra.mxu0 %v2270_v35  ;;  %2150 = vmatprep.subr.mxu1 %v1883_v36 }
 0x6de   :  { %2759 = vmatprep.subr.mxu0 %v3843_v20  ;;  %2151 = vmatpush2.msra.mxu1 %v1882_v37 }
 0x6df   :  { %2760 = vmatpush3.msra.mxu0 %v2269_v39  ;;  %2152 = vmatprep.subr.mxu1 %v1876_v40 }
 0x6e0   :  { %2761 = vmatprep.subr.mxu0 %v3843_v20  ;;  %2153 = vmatpush2.msra.mxu1 %v1875_v41 }
 0x6e1   :  { %2762 = vmatpush3.msra.mxu0 %v2268_v42  ;;  %2763 = vmatprep.mubr.msk.f32.mxu0 %vm2934_vm1, %v3843_v20 }
 0x6e2   :  { %2154 = vmatprep.subr.mxu1 %v1869_v43  ;;  %2764 = vmatmul.mubr.msk.f32.vlgmr.msra.gmra.mxu0 %vm2283_vm6, %v2267_v44 }
 0x6e3   :  { %2155 = vmatpush2.msra.mxu1 %v1868_v45 }
 0x6e4   :  { %2156 = vmatprep.subr.mxu1 %v1862_v48 }
 0x6e5   :  { %2157 = vmatpush2.msra.mxu1 %v1861_v50 }
 0x6e6   :  { %2158 = vmatprep.subr.mxu1 %v1855_v1 }
 0x6e7   :  { %2159 = vmatpush2.msra.mxu1 %v1854_v10 }
 0x6e8   :  { %2160 = vmatprep.subr.mxu1 %v1848_v52 }
 0x6e9   :  { %2161 = vmatpush2.msra.mxu1 %v1847_v53 }
 0x6ea   :  { %2162 = vmatprep.subr.mxu1 %v1841_v54 }
 0x6eb   :  { %2163 = vmatpush2.msra.mxu1 %v1840_v55 }
 0x6ec   :  { %2164 = vmatprep.subr.mxu1 %v1834_v56 }
 0x6ed   :  { %2165 = vmatpush2.msra.mxu1 %v1833_v13 }
 0x6ee   :  { %2166 = vmatprep.subr.mxu1 %v1827_v15 }
 0x6ef   :  { %2167 = vmatpush2.msra.mxu1 %v1826_v57 }
 0x6f0   :  { %2168 = vmatprep.subr.mxu1 %v1820_v58 }
 0x6f1   :  { %2169 = vmatpush2.msra.mxu1 %v1819_v59 }
 0x6f2   :  { %2171 = vmatmul.mubr.f32.vlgmr.msra.gmra.mxu1 %v4862_v61  ;;  %2766 = vmatprep.subr.mxu1 %v3843_v20  ;;  %v2363_v61 = vld [vmem:[%s5265_s10 + $0x100] sm:$0xff] }
 0x6f3   :  { %2782 = vmatprep.mubr.msk.f32.mxu1 %vm2934_vm1, %v3843_v20  ;;  %2767 = vmatpush3.msra.mxu1 %v2365_v60 }
 0x6f4   :  { %2768 = vmatprep.subr.mxu1 %v3843_v20 }
 0x6f5   :  { %2769 = vmatpush3.msra.mxu1 %v2364_v63 }
 0x6f6   :  { %2770 = vmatprep.subr.mxu1 %v3843_v20 }
 0x6f7   :  { %2771 = vmatpush3.msra.mxu1 %v2363_v61 }
 0x6f8   :  { %2772 = vmatprep.subr.mxu1 %v3843_v20 }
 0x6f9   :  { %2773 = vmatpush3.msra.mxu1 %v2362_v0 }
 0x6fa   :  { %2774 = vmatprep.subr.mxu1 %v3843_v20 }
 0x6fb   :  { %2775 = vmatpush3.msra.mxu1 %v2361_v2 }
 0x6fc   :  { %2776 = vmatprep.subr.mxu1 %v3843_v20 }
 0x6fd   :  { %2777 = vmatpush3.msra.mxu1 %v2360_v3 }
 0x6fe   :  { %2778 = vmatprep.subr.mxu1 %v3843_v20 }
 0x6ff   :  { %2779 = vmatpush3.msra.mxu1 %v2359_v4 }
 0x700   :  { %2780 = vmatprep.subr.mxu1 %v3843_v20 }
 0x701   :  { %2781 = vmatpush3.msra.mxu1 %v2358_v5 }
 0x770   :  { %v2030_v20 = vpop.f32.mrf.mxu1  ;;  %v2101_v12 = vpop.f32.mrf.mxu0 }
 0x771   :  { %v2031_v16 = vadd.f32 %v2030_v20, %v1932_v7  ;;  %v2102_v18 = vadd.f32 %v2101_v12, %v1940_v8 }
 0x772   :  { %v2032_v19 = vpop.f32.mrf.mxu1  ;;  %v2103_v21 = vpop.f32.mrf.mxu0 }
 0x773   :  { %2471 = vst [vmem:[#allocation9] sm:$0xff] %v2031_v16  ;;  %2473 = vst [vmem:[#allocation9 + $0x10] sm:$0xff] %v2102_v18  ;;  %v2033_v23 = vadd.f32 %v2032_v19, %v1936_v9  ;;  %v2104_v24 = vadd.f32 %v2103_v21, %v1944_v11 }
 0x775   :  { %2472 = vst [vmem:[#allocation9 + $0x8] sm:$0xff] %v2033_v23  ;;  %2474 = vst [vmem:[#allocation9 + $0x18] sm:$0xff] %v2104_v24 }
 0x791   :  { %v2656_v14 = vpop.f32.mrf.mxu0 }
 0x793   :  { %v2657_v49 = vpop.f32.mrf.mxu0 }
 0x794   :  { %v2658_v26 = vadd.f32 %v2657_v49, %v2656_v14 }
 0x796   :  { %v2244_v27 = vadd.f32 %v2658_v26, %v1956_v25 }
 0x798   :  { %2477 = vst.msk [vmem:[#allocation9 + $0x30] sm:$0xff] %vm309_vm0, %v2244_v27 }
 0x7a2   :  { %v2353_v28 = vpop.f32.mrf.mxu0 }
 0x7a3   :  { %v2354_v29 = vadd.f32 %v2516_v22, %v2353_v28 }
 0x7a4   :  { %v2765_v51 = vpop.f32.mrf.mxu0 }
 0x7a5   :  { %v2357_v30 = vmax.f32 %v2354_v29, 0.0 }
 0x7a7   :  { %2783 = vmatmul.mubr.msk.f32.vlgmr.msra.gmra.mxu1 %vm2283_vm6, %v2357_v30 }
 0x7b2   :  { %v2172_v33 = vpop.f32.mrf.mxu1 }
 0x7b3   :  { %v2173_v34 = vadd.f32 %v2172_v33, %v1948_v17 }
 0x7b4   :  { %v2174_v35 = vpop.f32.mrf.mxu1 }
 0x7b5   :  { %2475 = vst [vmem:[#allocation9 + $0x20] sm:$0xff] %v2173_v34  ;;  %v2175_v36 = vadd.f32 %v2174_v35, %v1952_v32 }
 0x7b7   :  { %2476 = vst [vmem:[#allocation9 + $0x28] sm:$0xff] %v2175_v36 }
 0x7b8   :  { %2888 = shalt.err (!%p2885_p5)
}
 0x7b9   :  { %2497 = dma.vmem_to_hbm [thread:$0]  %s2495_s2, 896, %s5268_s13, [#allocation10]   ;;  %v2518_v46 = vld [vmem:[%s5266_s11 + $0x14] ss:$0 sm:$0xff]  ;;  %vm2469_vm7 = vcmask 113760  }
 0x7ba   :  { %s2942_s8 = smov 12   ;;  %s2943_s0 = smov [#allocation8]  }
 0x7bb   :  { %s2484_s3 = sshll.u32 %s2943_s0, 4  ;;  %s2485_s3 = int_to_ptr.vmem [resolvable:$true] %s2484_s3 }
 0x7bc   :  { %s2897_s14 = scalar_lea.vmem %s2485_s3, 128  ;;  %p2902_p7 = scmp.lt.s32.totalorder %s2485_s3, %s2485_s3 }
 0x7bd   :  { %p2898_p6 = scmp.ne.s32.totalorder %s2485_s3, %s2897_s14  ;;  %p2903_p8 = scmp.lt.s32.totalorder %s2897_s14, %s2897_s14 }
 0x7bf   :  { %p2904_p9 = por %p2903_p8, %p2902_p7 }
 0x7c1   :  { %p2905_p10 = pnand %p2904_p9, %p2898_p6 }
 0x867   :  { %v2442_v37 = vpop.f32.mrf.mxu1 }
 0x868   :  { %v2443_v38 = vadd.f32 %v2518_v46, %v2442_v37 }
 0x869   :  { %v2784_v39 = vpop.f32.mrf.mxu1 }
 0x86a   :  { %2466 = vrot.lane.b32.xlu1 %v2443_v38, %s2942_s8 }
 0x8dc   :  { %v2467_v40 = vpop.permute.xlu1 %2466 }
 0x8dd   :  { %2470 = vst.msk [vmem:[#allocation8] sm:$0xff] %vm2469_vm7, %v2467_v40 }
 0x8de   :  { %2908 = shalt.err (!%p2905_p10)
}
 0x8df   :  { %2487 = dma.vmem_to_hbm [thread:$0]  %s2485_s3, 128, %s5267_s12, [#allocation4]  }
 0x8e0   :  { %2921 = dma.done.wait [#allocation4], 128  }
 0x8e1   :  { %2922 = vsyncadd [#allocation4], 4294967168 }
 0x8e2   :  { %2923 = dma.done.wait [#allocation10], 896  }
 0x8e3   :  { %2924 = vsyncadd [#allocation10], 4294966400 }
 0x8e4   :  { %2504 = vsyncpa [#allocation3], 1 }
 0x8e5   :  { %2505 = vsyncpa [#allocation6], 1 }
 0x8e6   :  { %2506 = vsyncpa [#allocation4], 1 }
 0x8e7   :  { %2507 = vsyncpa [#allocation10], 1 }

</bundles_post_ra>
